<compile_context>
chip_gen: v7x
topology: tpu7x:2x2x1
jax: 0.10.0
libtpu: 0.0.40
codegen_flags: <defaults>
</compile_context>

<pallas_src>
import functools

import jax
import jax.numpy as jnp
from jax import lax
from jax.experimental import pallas as pl
from jax.experimental.pallas import tpu as pltpu


# ------------------------------ kernel helpers ------------------------------ #

def _layernorm_f32(x, g, b, eps=1e-5):
    mu = jnp.mean(x, axis=-1, keepdims=True)
    var = jnp.mean(jnp.square(x - mu), axis=-1, keepdims=True)
    return (x - mu) * lax.rsqrt(var + eps) * g + b


# ------------------------------ fused kernels ------------------------------- #

def _attn_block_kernel(*refs, num_heads, scale, add_pos):
    """One batch slice: x = x (+ pos) ; x = x + out_proj(MHA(ln_1(x)))."""
    if add_pos:
        (x_ref, pos_ref, g1_ref, b1_ref, wqkv_ref, bqkv_ref,
         wo_ref, bo_ref, o_ref, attn_ref) = refs
    else:
        (x_ref, g1_ref, b1_ref, wqkv_ref, bqkv_ref,
         wo_ref, bo_ref, o_ref, attn_ref) = refs
        pos_ref = None

    x = x_ref[0].astype(jnp.float32)                    # [L, D] residual stream
    if add_pos:
        x = x + pos_ref[0].astype(jnp.float32)
    L, D = x.shape
    dh = D // num_heads

    h = _layernorm_f32(x, g1_ref[...], b1_ref[...]).astype(jnp.bfloat16)
    qkv = jnp.dot(h, wqkv_ref[...], preferred_element_type=jnp.float32)
    qkv = qkv + bqkv_ref[...]                           # [L, 3D] f32

    # TODO(synk): no causal attn_mask -- TextEncoder.forward calls
    # self.transformer(x) without a mask, so none is applied here.
    for i in range(num_heads):
        q = qkv[:, i * dh:(i + 1) * dh].astype(jnp.bfloat16)
        k = qkv[:, D + i * dh: D + (i + 1) * dh].astype(jnp.bfloat16)
        v = qkv[:, 2 * D + i * dh: 2 * D + (i + 1) * dh].astype(jnp.bfloat16)
        s = lax.dot_general(q, k, (((1,), (1,)), ((), ())),
                            preferred_element_type=jnp.float32) * scale  # [L, L]
        s = s - jnp.max(s, axis=-1, keepdims=True)
        p = jnp.exp(s)
        p = p * pl.reciprocal(jnp.sum(p, axis=-1, keepdims=True), approx=True)
        attn_ref[:, i * dh:(i + 1) * dh] = jnp.dot(
            p.astype(jnp.bfloat16), v, preferred_element_type=jnp.float32)

    y = jnp.dot(attn_ref[...].astype(jnp.bfloat16), wo_ref[...],
                preferred_element_type=jnp.float32)
    o_ref[0] = (y + bo_ref[...] + x).astype(o_ref.dtype)


def _mlp_block_kernel(x_ref, g2_ref, b2_ref, wfc_ref, bfc_ref,
                      wproj_ref, bproj_ref, o_ref):
    """One batch slice: x = x + c_proj(QuickGELU(c_fc(ln_2(x))))."""
    x = x_ref[0].astype(jnp.float32)                     # [L, D]
    h = _layernorm_f32(x, g2_ref[...], b2_ref[...]).astype(jnp.bfloat16)
    m = jnp.dot(h, wfc_ref[...], preferred_element_type=jnp.float32)
    m = m + bfc_ref[...]                                 # [L, 4D]
    m = m * jax.nn.sigmoid(1.702 * m)                    # QuickGELU
    y = jnp.dot(m.astype(jnp.bfloat16), wproj_ref[...],
                preferred_element_type=jnp.float32)
    o_ref[0] = (y + bproj_ref[...] + x).astype(o_ref.dtype)


def _final_kernel(x_ref, g_ref, b_ref, proj_ref, o_ref):
    """ln_final (per-token -> commutes with argmax pooling) + text_projection."""
    x = x_ref[...].astype(jnp.float32)                   # [B, D]
    h = _layernorm_f32(x, g_ref[...], b_ref[...]).astype(jnp.bfloat16)
    o_ref[...] = jnp.dot(h, proj_ref[...],
                         preferred_element_type=jnp.float32).astype(o_ref.dtype)


# ------------------------------ op wrappers --------------------------------- #

def _rep_spec(shape):
    # Weight / bias block: full array, same block for every grid step.
    return pl.BlockSpec(shape, lambda *_: (0,) * len(shape))


def attn_block(x, pos, lp, *, num_heads, add_pos):
    B, L, D = x.shape
    scale = 1.0 / float(D // num_heads) ** 0.5
    kernel = functools.partial(_attn_block_kernel, num_heads=num_heads,
                               scale=scale, add_pos=add_pos)
    act_spec = pl.BlockSpec((1, L, D), lambda b: (b, 0, 0))

    args = [x]
    in_specs = [act_spec]
    if add_pos:
        args.append(pos)
        in_specs.append(_rep_spec(pos.shape))
    weight_args = [lp["ln1_g"], lp["ln1_b"], lp["in_proj_w"], lp["in_proj_b"],
                   lp["out_proj_w"], lp["out_proj_b"]]
    args += weight_args
    in_specs += [_rep_spec(a.shape) for a in weight_args]

    return pl.pallas_call(
        kernel,
        grid=(B,),
        in_specs=in_specs,
        out_specs=act_spec,
        out_shape=jax.ShapeDtypeStruct((B, L, D), x.dtype),
        scratch_shapes=[pltpu.VMEM((L, D), jnp.float32)],
        input_output_aliases={0: 0},
        compiler_params=pltpu.CompilerParams(dimension_semantics=("parallel",)),
    )(*args)


def mlp_block(x, lp):
    B, L, D = x.shape
    act_spec = pl.BlockSpec((1, L, D), lambda b: (b, 0, 0))
    weight_args = [lp["ln2_g"], lp["ln2_b"], lp["fc_w"], lp["fc_b"],
                   lp["proj_w"], lp["proj_b"]]
    return pl.pallas_call(
        _mlp_block_kernel,
        grid=(B,),
        in_specs=[act_spec] + [_rep_spec(a.shape) for a in weight_args],
        out_specs=act_spec,
        out_shape=jax.ShapeDtypeStruct((B, L, D), x.dtype),
        input_output_aliases={0: 0},
        compiler_params=pltpu.CompilerParams(dimension_semantics=("parallel",)),
    )(x, *weight_args)


def final_project(pooled, g, b, proj):
    B, _ = pooled.shape
    E = proj.shape[1]
    return pl.pallas_call(
        _final_kernel,
        out_shape=jax.ShapeDtypeStruct((B, E), jnp.float32),
    )(pooled, g, b, proj)


# ------------------------- parameter construction --------------------------- #

def init_params(key, *, width, heads, layers, embed_dim, context_len, seq_len=40):
    del heads  # head count is a static argument to the forward, not a parameter

    def nrm(k, shape, scale=0.02):
        return scale * jax.random.normal(k, shape, dtype=jnp.float32)

    keys = jax.random.split(key, 2 + 6 * layers)
    params = {
        # Module slices positional_embedding[:40] at construction time; slice
        # and broadcast-prep it here so the add fuses into the first block.
        "positional_embedding": nrm(keys[0], (context_len, width))[:seq_len][None],
        "text_projection": nrm(keys[1], (width, embed_dim)).astype(jnp.bfloat16),
        "ln_final_g": jnp.ones((1, width), jnp.float32),
        "ln_final_b": jnp.zeros((1, width), jnp.float32),
        "layers": [],
    }
    for i in range(layers):
        k = keys[2 + 6 * i: 2 + 6 * (i + 1)]
        params["layers"].append({
            "ln1_g": jnp.ones((1, width), jnp.float32),
            "ln1_b": jnp.zeros((1, width), jnp.float32),
            # Matmul weights pre-transposed to [in, out] layout, bf16 MXU operands.
            # (Loading a torch checkpoint would do the transpose once here.)
            "in_proj_w": nrm(k[0], (width, 3 * width)).astype(jnp.bfloat16),
            "in_proj_b": nrm(k[1], (1, 3 * width)),
            "out_proj_w": nrm(k[2], (width, width)).astype(jnp.bfloat16),
            "out_proj_b": jnp.zeros((1, width), jnp.float32),
            "ln2_g": jnp.ones((1, width), jnp.float32),
            "ln2_b": jnp.zeros((1, width), jnp.float32),
            "fc_w": nrm(k[3], (width, 4 * width)).astype(jnp.bfloat16),
            "fc_b": nrm(k[4], (1, 4 * width)),
            "proj_w": nrm(k[5], (4 * width, width)).astype(jnp.bfloat16),
            "proj_b": jnp.zeros((1, width), jnp.float32),
        })
    return params


# ------------------------------ forward pass --------------------------------- #

def text_encoder_forward(params, prompts, tokenized_prompts, *, num_heads):
    """Mirrors TextEncoder.forward: pos-emb add -> transformer -> ln_final ->
    argmax pooling -> text projection."""
    B, L, D = prompts.shape
    pos = params["positional_embedding"]
    assert pos.shape == (1, L, D), (pos.shape, prompts.shape)

    x = prompts.astype(jnp.bfloat16)          # bf16 activation stream (MXU operands)
    for i, lp in enumerate(params["layers"]):
        # positional-embedding add is fused into the first attention-block kernel
        x = attn_block(x, pos, lp, num_heads=num_heads, add_pos=(i == 0))
        x = mlp_block(x, lp)

    # text_global_pool(pool_type='argmax'): tiny (B rows) gather, plain-JAX glue.
    # ln_final is per-token, so pooling first and LN'ing only the B pooled rows
    # is numerically identical to ln_final(x) followed by pooling.
    idx = jnp.argmax(tokenized_prompts, axis=-1)
    pooled = x[jnp.arange(B), idx]                                    # [B, D]
    return final_project(pooled, params["ln_final_g"], params["ln_final_b"],
                         params["text_projection"])                   # [B, E]


# ------------------------------ f32 reference -------------------------------- #

def _reference_forward(params, prompts, tokenized_prompts, *, num_heads):
    f32 = lambda a: a.astype(jnp.float32)
    x = f32(prompts) + f32(params["positional_embedding"])
    B, L, D = x.shape
    dh = D // num_heads
    scale = 1.0 / dh ** 0.5

    def ln(t, g, b):
        mu = t.mean(-1, keepdims=True)
        var = ((t - mu) ** 2).mean(-1, keepdims=True)
        return (t - mu) / jnp.sqrt(var + 1e-5) * g + b

    for lp in params["layers"]:
        h = ln(x, f32(lp["ln1_g"]), f32(lp["ln1_b"]))
        qkv = h @ f32(lp["in_proj_w"]) + f32(lp["in_proj_b"])
        q, k, v = jnp.split(qkv, 3, axis=-1)
        q = q.reshape(B, L, num_heads, dh).transpose(0, 2, 1, 3)
        k = k.reshape(B, L, num_heads, dh).transpose(0, 2, 1, 3)
        v = v.reshape(B, L, num_heads, dh).transpose(0, 2, 1, 3)
        s = jnp.einsum("bhqd,bhkd->bhqk", q, k) * scale
        p = jax.nn.softmax(s, axis=-1)
        o = jnp.einsum("bhqk,bhkd->bhqd", p, v).transpose(0, 2, 1, 3).reshape(B, L, D)
        x = x + o @ f32(lp["out_proj_w"]) + f32(lp["out_proj_b"])
        h2 = ln(x, f32(lp["ln2_g"]), f32(lp["ln2_b"]))
        m = h2 @ f32(lp["fc_w"]) + f32(lp["fc_b"])
        m = m * jax.nn.sigmoid(1.702 * m)
        x = x + m @ f32(lp["proj_w"]) + f32(lp["proj_b"])

    x = ln(x, f32(params["ln_final_g"]), f32(params["ln_final_b"]))
    idx = jnp.argmax(tokenized_prompts, axis=-1)
    pooled = x[jnp.arange(B), idx]
    return pooled @ f32(params["text_projection"])


# ---------------------------------- main ------------------------------------- #

if __name__ == "__main__":
    B = 2            # batch of prompts
    L = 40           # seq length (matches positional_embedding[:40])
    D = 32           # transformer width
    HEADS = 4
    LAYERS = 2
    EMBED_DIM = 16   # text_projection output dim
    CONTEXT_LEN = 77
    VOCAB = 100

    key = jax.random.PRNGKey(0)
    kp, kx, kt = jax.random.split(key, 3)

    params = init_params(kp, width=D, heads=HEADS, layers=LAYERS,
                         embed_dim=EMBED_DIM, context_len=CONTEXT_LEN, seq_len=L)

    prompts = (0.02 * jax.random.normal(kx, (B, L, D))).astype(jnp.float32)
    tokenized_prompts = jax.random.randint(kt, (B, L), 1, VOCAB, dtype=jnp.int32)

    fwd = jax.jit(functools.partial(text_encoder_forward, num_heads=HEADS))
    out = jax.block_until_ready(fwd(params, prompts, tokenized_prompts))

    assert out.shape == (B, EMBED_DIM), out.shape
    assert bool(jnp.all(jnp.isfinite(out)))

    ref = _reference_forward(params, prompts, tokenized_prompts, num_heads=HEADS)
    err = float(jnp.max(jnp.abs(out - ref)))
    assert err < 5e-2, f"max abs err vs f32 reference = {err}"

    print("KERNEL_OK")
</pallas_src>

<mosaic_0001>
module attributes {stable_mosaic.version = 11 : i64} {
  func.func @_attn_block_kernel(%arg0: i32, %arg1: memref<1x40x32xbf16, #tpu.memory_space<vmem>>, %arg2: memref<1x40x32xf32, #tpu.memory_space<vmem>>, %arg3: memref<1x32xf32, #tpu.memory_space<vmem>>, %arg4: memref<1x32xf32, #tpu.memory_space<vmem>>, %arg5: memref<32x96xbf16, #tpu.memory_space<vmem>>, %arg6: memref<1x96xf32, #tpu.memory_space<vmem>>, %arg7: memref<32x32xbf16, #tpu.memory_space<vmem>>, %arg8: memref<1x32xf32, #tpu.memory_space<vmem>>, %arg9: memref<1x40x32xbf16, #tpu.memory_space<vmem>>, %arg10: memref<40x32xf32, #tpu.memory_space<vmem>>) attributes {dimension_semantics = [#tpu.dimension_semantics<parallel>], iteration_bounds = array<i64: 2>, scalar_prefetch = 0 : i64, scratch_operands = 1 : i64, tpu.core_type = #tpu.core_type<tc>, window_params = [{transform_indices = @transform_0, window_bounds = array<i64: 1, 40, 32>}, {pipeline_mode = #tpu.pipeline_mode<synchronous>, transform_indices = @transform_1, window_bounds = array<i64: 1, 40, 32>}, {pipeline_mode = #tpu.pipeline_mode<synchronous>, transform_indices = @transform_2, window_bounds = array<i64: 1, 32>}, {pipeline_mode = #tpu.pipeline_mode<synchronous>, transform_indices = @transform_3, window_bounds = array<i64: 1, 32>}, {pipeline_mode = #tpu.pipeline_mode<synchronous>, transform_indices = @transform_4, window_bounds = array<i64: 32, 96>}, {pipeline_mode = #tpu.pipeline_mode<synchronous>, transform_indices = @transform_5, window_bounds = array<i64: 1, 96>}, {pipeline_mode = #tpu.pipeline_mode<synchronous>, transform_indices = @transform_6, window_bounds = array<i64: 32, 32>}, {pipeline_mode = #tpu.pipeline_mode<synchronous>, transform_indices = @transform_7, window_bounds = array<i64: 1, 32>}, {transform_indices = @transform_8, window_bounds = array<i64: 1, 40, 32>}]} {
    %c0 = arith.constant 0 : index
    %c0_0 = arith.constant 0 : index
    %c0_1 = arith.constant 0 : index
    %0 = vector.load %arg1[%c0, %c0_0, %c0_1] : memref<1x40x32xbf16, #tpu.memory_space<vmem>>, vector<1x40x32xbf16>
    %1 = vector.shape_cast %0 : vector<1x40x32xbf16> to vector<40x32xbf16>
    %2 = arith.extf %1 : vector<40x32xbf16> to vector<40x32xf32>
    %c0_2 = arith.constant 0 : index
    %c0_3 = arith.constant 0 : index
    %c0_4 = arith.constant 0 : index
    %3 = vector.load %arg2[%c0_2, %c0_3, %c0_4] : memref<1x40x32xf32, #tpu.memory_space<vmem>>, vector<1x40x32xf32>
    %4 = vector.shape_cast %3 : vector<1x40x32xf32> to vector<40x32xf32>
    %5 = arith.addf %2, %4 : vector<40x32xf32>
    %c0_5 = arith.constant 0 : index
    %c0_6 = arith.constant 0 : index
    %6 = vector.load %arg3[%c0_5, %c0_6] : memref<1x32xf32, #tpu.memory_space<vmem>>, vector<1x32xf32>
    %c0_7 = arith.constant 0 : index
    %c0_8 = arith.constant 0 : index
    %7 = vector.load %arg4[%c0_7, %c0_8] : memref<1x32xf32, #tpu.memory_space<vmem>>, vector<1x32xf32>
    %cst = arith.constant dense<0.000000e+00> : vector<40xf32>
    %8 = vector.multi_reduction <add>, %5, %cst [1] : vector<40x32xf32> to vector<40xf32>
    %9 = vector.shape_cast %8 : vector<40xf32> to vector<40x1xf32>
    %cst_9 = arith.constant 3.200000e+01 : f32
    %10 = vector.broadcast %cst_9 : f32 to vector<40x1xf32>
    %11 = arith.divf %9, %10 : vector<40x1xf32>
    %12 = vector.broadcast %11 : vector<40x1xf32> to vector<40x32xf32>
    %13 = arith.subf %5, %12 : vector<40x32xf32>
    %14 = arith.mulf %13, %13 : vector<40x32xf32>
    %cst_10 = arith.constant dense<0.000000e+00> : vector<40xf32>
    %15 = vector.multi_reduction <add>, %14, %cst_10 [1] : vector<40x32xf32> to vector<40xf32>
    %16 = vector.shape_cast %15 : vector<40xf32> to vector<40x1xf32>
    %cst_11 = arith.constant 3.200000e+01 : f32
    %17 = vector.broadcast %cst_11 : f32 to vector<40x1xf32>
    %18 = arith.divf %16, %17 : vector<40x1xf32>
    %19 = vector.broadcast %11 : vector<40x1xf32> to vector<40x32xf32>
    %20 = arith.subf %5, %19 : vector<40x32xf32>
    %cst_12 = arith.constant 9.99999974E-6 : f32
    %21 = vector.broadcast %cst_12 : f32 to vector<40x1xf32>
    %22 = arith.addf %18, %21 : vector<40x1xf32>
    %23 = math.rsqrt %22 : vector<40x1xf32>
    %24 = vector.broadcast %23 : vector<40x1xf32> to vector<40x32xf32>
    %25 = arith.mulf %20, %24 : vector<40x32xf32>
    %26 = vector.broadcast %6 : vector<1x32xf32> to vector<40x32xf32>
    %27 = arith.mulf %25, %26 : vector<40x32xf32>
    %28 = vector.broadcast %7 : vector<1x32xf32> to vector<40x32xf32>
    %29 = arith.addf %27, %28 : vector<40x32xf32>
    %30 = arith.truncf %29 : vector<40x32xf32> to vector<40x32xbf16>
    %c0_13 = arith.constant 0 : index
    %c0_14 = arith.constant 0 : index
    %31 = vector.load %arg5[%c0_13, %c0_14] : memref<32x96xbf16, #tpu.memory_space<vmem>>, vector<32x96xbf16>
    %cst_15 = arith.constant dense<0.000000e+00> : vector<40x96xf32>
    %32 = tpu.matmul %30, %31, %cst_15 {dimension_numbers = #tpu.dot_dimension_numbers<[1], [0], [0], [1], [0, 0, 1, 1], [], []>} : vector<40x32xbf16>, vector<32x96xbf16>, vector<40x96xf32> -> vector<40x96xf32>
    %c0_16 = arith.constant 0 : index
    %c0_17 = arith.constant 0 : index
    %33 = vector.load %arg6[%c0_16, %c0_17] : memref<1x96xf32, #tpu.memory_space<vmem>>, vector<1x96xf32>
    %34 = vector.broadcast %33 : vector<1x96xf32> to vector<40x96xf32>
    %35 = arith.addf %32, %34 : vector<40x96xf32>
    %36 = vector.extract_strided_slice %35 {offsets = [0, 0], sizes = [40, 8], strides = [1, 1]} : vector<40x96xf32> to vector<40x8xf32>
    %37 = arith.truncf %36 : vector<40x8xf32> to vector<40x8xbf16>
    %38 = vector.extract_strided_slice %35 {offsets = [0, 32], sizes = [40, 8], strides = [1, 1]} : vector<40x96xf32> to vector<40x8xf32>
    %39 = arith.truncf %38 : vector<40x8xf32> to vector<40x8xbf16>
    %40 = vector.extract_strided_slice %35 {offsets = [0, 64], sizes = [40, 8], strides = [1, 1]} : vector<40x96xf32> to vector<40x8xf32>
    %41 = arith.truncf %40 : vector<40x8xf32> to vector<40x8xbf16>
    %cst_18 = arith.constant dense<0.000000e+00> : vector<40x40xf32>
    %42 = tpu.matmul %37, %39, %cst_18 {dimension_numbers = #tpu.dot_dimension_numbers<[1], [1], [0], [0], [0, 0, 1, 0], [], []>} : vector<40x8xbf16>, vector<40x8xbf16>, vector<40x40xf32> -> vector<40x40xf32>
    %cst_19 = arith.constant 0.353553385 : f32
    %43 = vector.broadcast %cst_19 : f32 to vector<40x40xf32>
    %44 = arith.mulf %42, %43 : vector<40x40xf32>
    %cst_20 = arith.constant dense<0xFF800000> : vector<40xf32>
    %45 = vector.multi_reduction <maximumf>, %44, %cst_20 [1] : vector<40x40xf32> to vector<40xf32>
    %46 = vector.shape_cast %45 : vector<40xf32> to vector<40x1xf32>
    %47 = vector.broadcast %46 : vector<40x1xf32> to vector<40x40xf32>
    %48 = arith.subf %44, %47 : vector<40x40xf32>
    %49 = math.exp %48 : vector<40x40xf32>
    %cst_21 = arith.constant dense<0.000000e+00> : vector<40xf32>
    %50 = vector.multi_reduction <add>, %49, %cst_21 [1] : vector<40x40xf32> to vector<40xf32>
    %51 = vector.shape_cast %50 : vector<40xf32> to vector<40x1xf32>
    %52 = tpu.reciprocal %51 {approx = true} : vector<40x1xf32> -> vector<40x1xf32>
    %53 = vector.broadcast %52 : vector<40x1xf32> to vector<40x40xf32>
    %54 = arith.mulf %49, %53 : vector<40x40xf32>
    %55 = arith.truncf %54 : vector<40x40xf32> to vector<40x40xbf16>
    %cst_22 = arith.constant dense<0.000000e+00> : vector<40x8xf32>
    %56 = tpu.matmul %55, %41, %cst_22 {dimension_numbers = #tpu.dot_dimension_numbers<[1], [0], [0], [1], [0, 0, 1, 1], [], []>} : vector<40x40xbf16>, vector<40x8xbf16>, vector<40x8xf32> -> vector<40x8xf32>
    %c0_23 = arith.constant 0 : index
    %c0_24 = arith.constant 0 : index
    %57 = vector.load %arg10[%c0_23, %c0_24] : memref<40x32xf32, #tpu.memory_space<vmem>>, vector<40x8xf32>
    tpu.vector_store %arg10[%c0_23, %c0_24], %56 {strides = array<i32>} : memref<40x32xf32, #tpu.memory_space<vmem>>, vector<40x8xf32>,
    %58 = vector.extract_strided_slice %35 {offsets = [0, 8], sizes = [40, 8], strides = [1, 1]} : vector<40x96xf32> to vector<40x8xf32>
    %59 = arith.truncf %58 : vector<40x8xf32> to vector<40x8xbf16>
    %60 = vector.extract_strided_slice %35 {offsets = [0, 40], sizes = [40, 8], strides = [1, 1]} : vector<40x96xf32> to vector<40x8xf32>
    %61 = arith.truncf %60 : vector<40x8xf32> to vector<40x8xbf16>
    %62 = vector.extract_strided_slice %35 {offsets = [0, 72], sizes = [40, 8], strides = [1, 1]} : vector<40x96xf32> to vector<40x8xf32>
    %63 = arith.truncf %62 : vector<40x8xf32> to vector<40x8xbf16>
    %cst_25 = arith.constant dense<0.000000e+00> : vector<40x40xf32>
    %64 = tpu.matmul %59, %61, %cst_25 {dimension_numbers = #tpu.dot_dimension_numbers<[1], [1], [0], [0], [0, 0, 1, 0], [], []>} : vector<40x8xbf16>, vector<40x8xbf16>, vector<40x40xf32> -> vector<40x40xf32>
    %cst_26 = arith.constant 0.353553385 : f32
    %65 = vector.broadcast %cst_26 : f32 to vector<40x40xf32>
    %66 = arith.mulf %64, %65 : vector<40x40xf32>
    %cst_27 = arith.constant dense<0xFF800000> : vector<40xf32>
    %67 = vector.multi_reduction <maximumf>, %66, %cst_27 [1] : vector<40x40xf32> to vector<40xf32>
    %68 = vector.shape_cast %67 : vector<40xf32> to vector<40x1xf32>
    %69 = vector.broadcast %68 : vector<40x1xf32> to vector<40x40xf32>
    %70 = arith.subf %66, %69 : vector<40x40xf32>
    %71 = math.exp %70 : vector<40x40xf32>
    %cst_28 = arith.constant dense<0.000000e+00> : vector<40xf32>
    %72 = vector.multi_reduction <add>, %71, %cst_28 [1] : vector<40x40xf32> to vector<40xf32>
    %73 = vector.shape_cast %72 : vector<40xf32> to vector<40x1xf32>
    %74 = tpu.reciprocal %73 {approx = true} : vector<40x1xf32> -> vector<40x1xf32>
    %75 = vector.broadcast %74 : vector<40x1xf32> to vector<40x40xf32>
    %76 = arith.mulf %71, %75 : vector<40x40xf32>
    %77 = arith.truncf %76 : vector<40x40xf32> to vector<40x40xbf16>
    %cst_29 = arith.constant dense<0.000000e+00> : vector<40x8xf32>
    %78 = tpu.matmul %77, %63, %cst_29 {dimension_numbers = #tpu.dot_dimension_numbers<[1], [0], [0], [1], [0, 0, 1, 1], [], []>} : vector<40x40xbf16>, vector<40x8xbf16>, vector<40x8xf32> -> vector<40x8xf32>
    %c0_30 = arith.constant 0 : index
    %c8 = arith.constant 8 : index
    %79 = vector.load %arg10[%c0_30, %c8] : memref<40x32xf32, #tpu.memory_space<vmem>>, vector<40x8xf32>
    tpu.vector_store %arg10[%c0_30, %c8], %78 {strides = array<i32>} : memref<40x32xf32, #tpu.memory_space<vmem>>, vector<40x8xf32>,
    %80 = vector.extract_strided_slice %35 {offsets = [0, 16], sizes = [40, 8], strides = [1, 1]} : vector<40x96xf32> to vector<40x8xf32>
    %81 = arith.truncf %80 : vector<40x8xf32> to vector<40x8xbf16>
    %82 = vector.extract_strided_slice %35 {offsets = [0, 48], sizes = [40, 8], strides = [1, 1]} : vector<40x96xf32> to vector<40x8xf32>
    %83 = arith.truncf %82 : vector<40x8xf32> to vector<40x8xbf16>
    %84 = vector.extract_strided_slice %35 {offsets = [0, 80], sizes = [40, 8], strides = [1, 1]} : vector<40x96xf32> to vector<40x8xf32>
    %85 = arith.truncf %84 : vector<40x8xf32> to vector<40x8xbf16>
    %cst_31 = arith.constant dense<0.000000e+00> : vector<40x40xf32>
    %86 = tpu.matmul %81, %83, %cst_31 {dimension_numbers = #tpu.dot_dimension_numbers<[1], [1], [0], [0], [0, 0, 1, 0], [], []>} : vector<40x8xbf16>, vector<40x8xbf16>, vector<40x40xf32> -> vector<40x40xf32>
    %cst_32 = arith.constant 0.353553385 : f32
    %87 = vector.broadcast %cst_32 : f32 to vector<40x40xf32>
    %88 = arith.mulf %86, %87 : vector<40x40xf32>
    %cst_33 = arith.constant dense<0xFF800000> : vector<40xf32>
    %89 = vector.multi_reduction <maximumf>, %88, %cst_33 [1] : vector<40x40xf32> to vector<40xf32>
    %90 = vector.shape_cast %89 : vector<40xf32> to vector<40x1xf32>
    %91 = vector.broadcast %90 : vector<40x1xf32> to vector<40x40xf32>
    %92 = arith.subf %88, %91 : vector<40x40xf32>
    %93 = math.exp %92 : vector<40x40xf32>
    %cst_34 = arith.constant dense<0.000000e+00> : vector<40xf32>
    %94 = vector.multi_reduction <add>, %93, %cst_34 [1] : vector<40x40xf32> to vector<40xf32>
    %95 = vector.shape_cast %94 : vector<40xf32> to vector<40x1xf32>
    %96 = tpu.reciprocal %95 {approx = true} : vector<40x1xf32> -> vector<40x1xf32>
    %97 = vector.broadcast %96 : vector<40x1xf32> to vector<40x40xf32>
    %98 = arith.mulf %93, %97 : vector<40x40xf32>
    %99 = arith.truncf %98 : vector<40x40xf32> to vector<40x40xbf16>
    %cst_35 = arith.constant dense<0.000000e+00> : vector<40x8xf32>
    %100 = tpu.matmul %99, %85, %cst_35 {dimension_numbers = #tpu.dot_dimension_numbers<[1], [0], [0], [1], [0, 0, 1, 1], [], []>} : vector<40x40xbf16>, vector<40x8xbf16>, vector<40x8xf32> -> vector<40x8xf32>
    %c0_36 = arith.constant 0 : index
    %c16 = arith.constant 16 : index
    %101 = vector.load %arg10[%c0_36, %c16] : memref<40x32xf32, #tpu.memory_space<vmem>>, vector<40x8xf32>
    tpu.vector_store %arg10[%c0_36, %c16], %100 {strides = array<i32>} : memref<40x32xf32, #tpu.memory_space<vmem>>, vector<40x8xf32>,
    %102 = vector.extract_strided_slice %35 {offsets = [0, 24], sizes = [40, 8], strides = [1, 1]} : vector<40x96xf32> to vector<40x8xf32>
    %103 = arith.truncf %102 : vector<40x8xf32> to vector<40x8xbf16>
    %104 = vector.extract_strided_slice %35 {offsets = [0, 56], sizes = [40, 8], strides = [1, 1]} : vector<40x96xf32> to vector<40x8xf32>
    %105 = arith.truncf %104 : vector<40x8xf32> to vector<40x8xbf16>
    %106 = vector.extract_strided_slice %35 {offsets = [0, 88], sizes = [40, 8], strides = [1, 1]} : vector<40x96xf32> to vector<40x8xf32>
    %107 = arith.truncf %106 : vector<40x8xf32> to vector<40x8xbf16>
    %cst_37 = arith.constant dense<0.000000e+00> : vector<40x40xf32>
    %108 = tpu.matmul %103, %105, %cst_37 {dimension_numbers = #tpu.dot_dimension_numbers<[1], [1], [0], [0], [0, 0, 1, 0], [], []>} : vector<40x8xbf16>, vector<40x8xbf16>, vector<40x40xf32> -> vector<40x40xf32>
    %cst_38 = arith.constant 0.353553385 : f32
    %109 = vector.broadcast %cst_38 : f32 to vector<40x40xf32>
    %110 = arith.mulf %108, %109 : vector<40x40xf32>
    %cst_39 = arith.constant dense<0xFF800000> : vector<40xf32>
    %111 = vector.multi_reduction <maximumf>, %110, %cst_39 [1] : vector<40x40xf32> to vector<40xf32>
    %112 = vector.shape_cast %111 : vector<40xf32> to vector<40x1xf32>
    %113 = vector.broadcast %112 : vector<40x1xf32> to vector<40x40xf32>
    %114 = arith.subf %110, %113 : vector<40x40xf32>
    %115 = math.exp %114 : vector<40x40xf32>
    %cst_40 = arith.constant dense<0.000000e+00> : vector<40xf32>
    %116 = vector.multi_reduction <add>, %115, %cst_40 [1] : vector<40x40xf32> to vector<40xf32>
    %117 = vector.shape_cast %116 : vector<40xf32> to vector<40x1xf32>
    %118 = tpu.reciprocal %117 {approx = true} : vector<40x1xf32> -> vector<40x1xf32>
    %119 = vector.broadcast %118 : vector<40x1xf32> to vector<40x40xf32>
    %120 = arith.mulf %115, %119 : vector<40x40xf32>
    %121 = arith.truncf %120 : vector<40x40xf32> to vector<40x40xbf16>
    %cst_41 = arith.constant dense<0.000000e+00> : vector<40x8xf32>
    %122 = tpu.matmul %121, %107, %cst_41 {dimension_numbers = #tpu.dot_dimension_numbers<[1], [0], [0], [1], [0, 0, 1, 1], [], []>} : vector<40x40xbf16>, vector<40x8xbf16>, vector<40x8xf32> -> vector<40x8xf32>
    %c0_42 = arith.constant 0 : index
    %c24 = arith.constant 24 : index
    %123 = vector.load %arg10[%c0_42, %c24] : memref<40x32xf32, #tpu.memory_space<vmem>>, vector<40x8xf32>
    tpu.vector_store %arg10[%c0_42, %c24], %122 {strides = array<i32>} : memref<40x32xf32, #tpu.memory_space<vmem>>, vector<40x8xf32>,
    %c0_43 = arith.constant 0 : index
    %c0_44 = arith.constant 0 : index
    %124 = vector.load %arg10[%c0_43, %c0_44] : memref<40x32xf32, #tpu.memory_space<vmem>>, vector<40x32xf32>
    %125 = arith.truncf %124 : vector<40x32xf32> to vector<40x32xbf16>
    %c0_45 = arith.constant 0 : index
    %c0_46 = arith.constant 0 : index
    %126 = vector.load %arg7[%c0_45, %c0_46] : memref<32x32xbf16, #tpu.memory_space<vmem>>, vector<32x32xbf16>
    %cst_47 = arith.constant dense<0.000000e+00> : vector<40x32xf32>
    %127 = tpu.matmul %125, %126, %cst_47 {dimension_numbers = #tpu.dot_dimension_numbers<[1], [0], [0], [1], [0, 0, 1, 1], [], []>} : vector<40x32xbf16>, vector<32x32xbf16>, vector<40x32xf32> -> vector<40x32xf32>
    %c0_48 = arith.constant 0 : index
    %c0_49 = arith.constant 0 : index
    %128 = vector.load %arg8[%c0_48, %c0_49] : memref<1x32xf32, #tpu.memory_space<vmem>>, vector<1x32xf32>
    %129 = vector.broadcast %128 : vector<1x32xf32> to vector<40x32xf32>
    %130 = arith.addf %127, %129 : vector<40x32xf32>
    %131 = arith.addf %130, %5 : vector<40x32xf32>
    %132 = arith.truncf %131 : vector<40x32xf32> to vector<40x32xbf16>
    %c0_50 = arith.constant 0 : index
    %c0_51 = arith.constant 0 : index
    %c0_52 = arith.constant 0 : index
    %133 = vector.load %arg9[%c0_50, %c0_51, %c0_52] : memref<1x40x32xbf16, #tpu.memory_space<vmem>>, vector<1x40x32xbf16>
    %134 = vector.shape_cast %133 : vector<1x40x32xbf16> to vector<40x32xbf16>
    %135 = vector.shape_cast %132 : vector<40x32xbf16> to vector<1x40x32xbf16>
    tpu.vector_store %arg9[%c0_50, %c0_51, %c0_52], %135 {strides = array<i32>} : memref<1x40x32xbf16, #tpu.memory_space<vmem>>, vector<1x40x32xbf16>,
    return
  }
  func.func @transform_0(%arg0: i32) -> (i32, i32, i32) {
    %c0_i32 = arith.constant 0 : i32
    %c0_i32_0 = arith.constant 0 : i32
    %c0_i32_1 = arith.constant 0 : i32
    return %arg0, %c0_i32, %c0_i32_0 : i32, i32, i32
  }
  func.func @transform_1(%arg0: i32) -> (i32, i32, i32) {
    %c0_i32 = arith.constant 0 : i32
    %c0_i32_0 = arith.constant 0 : i32
    %c0_i32_1 = arith.constant 0 : i32
    %c0_i32_2 = arith.constant 0 : i32
    return %c0_i32, %c0_i32_0, %c0_i32_1 : i32, i32, i32
  }
  func.func @transform_2(%arg0: i32) -> (i32, i32) {
    %c0_i32 = arith.constant 0 : i32
    %c0_i32_0 = arith.constant 0 : i32
    %c0_i32_1 = arith.constant 0 : i32
    return %c0_i32, %c0_i32_0 : i32, i32
  }
  func.func @transform_3(%arg0: i32) -> (i32, i32) {
    %c0_i32 = arith.constant 0 : i32
    %c0_i32_0 = arith.constant 0 : i32
    %c0_i32_1 = arith.constant 0 : i32
    return %c0_i32, %c0_i32_0 : i32, i32
  }
  func.func @transform_4(%arg0: i32) -> (i32, i32) {
    %c0_i32 = arith.constant 0 : i32
    %c0_i32_0 = arith.constant 0 : i32
    %c0_i32_1 = arith.constant 0 : i32
    return %c0_i32, %c0_i32_0 : i32, i32
  }
  func.func @transform_5(%arg0: i32) -> (i32, i32) {
    %c0_i32 = arith.constant 0 : i32
    %c0_i32_0 = arith.constant 0 : i32
    %c0_i32_1 = arith.constant 0 : i32
    return %c0_i32, %c0_i32_0 : i32, i32
  }
  func.func @transform_6(%arg0: i32) -> (i32, i32) {
    %c0_i32 = arith.constant 0 : i32
    %c0_i32_0 = arith.constant 0 : i32
    %c0_i32_1 = arith.constant 0 : i32
    return %c0_i32, %c0_i32_0 : i32, i32
  }
  func.func @transform_7(%arg0: i32) -> (i32, i32) {
    %c0_i32 = arith.constant 0 : i32
    %c0_i32_0 = arith.constant 0 : i32
    %c0_i32_1 = arith.constant 0 : i32
    return %c0_i32, %c0_i32_0 : i32, i32
  }
  func.func @transform_8(%arg0: i32) -> (i32, i32, i32) {
    %c0_i32 = arith.constant 0 : i32
    %c0_i32_0 = arith.constant 0 : i32
    %c0_i32_1 = arith.constant 0 : i32
    return %arg0, %c0_i32, %c0_i32_0 : i32, i32, i32
  }
}

module attributes {stable_mosaic.version = 11 : i64} {
  func.func @_mlp_block_kernel(%arg0: i32, %arg1: memref<1x40x32xbf16, #tpu.memory_space<vmem>>, %arg2: memref<1x32xf32, #tpu.memory_space<vmem>>, %arg3: memref<1x32xf32, #tpu.memory_space<vmem>>, %arg4: memref<32x128xbf16, #tpu.memory_space<vmem>>, %arg5: memref<1x128xf32, #tpu.memory_space<vmem>>, %arg6: memref<128x32xbf16, #tpu.memory_space<vmem>>, %arg7: memref<1x32xf32, #tpu.memory_space<vmem>>, %arg8: memref<1x40x32xbf16, #tpu.memory_space<vmem>>) attributes {dimension_semantics = [#tpu.dimension_semantics<parallel>], iteration_bounds = array<i64: 2>, scalar_prefetch = 0 : i64, scratch_operands = 0 : i64, tpu.core_type = #tpu.core_type<tc>, window_params = [{transform_indices = @transform_0, window_bounds = array<i64: 1, 40, 32>}, {pipeline_mode = #tpu.pipeline_mode<synchronous>, transform_indices = @transform_1, window_bounds = array<i64: 1, 32>}, {pipeline_mode = #tpu.pipeline_mode<synchronous>, transform_indices = @transform_2, window_bounds = array<i64: 1, 32>}, {pipeline_mode = #tpu.pipeline_mode<synchronous>, transform_indices = @transform_3, window_bounds = array<i64: 32, 128>}, {pipeline_mode = #tpu.pipeline_mode<synchronous>, transform_indices = @transform_4, window_bounds = array<i64: 1, 128>}, {pipeline_mode = #tpu.pipeline_mode<synchronous>, transform_indices = @transform_5, window_bounds = array<i64: 128, 32>}, {pipeline_mode = #tpu.pipeline_mode<synchronous>, transform_indices = @transform_6, window_bounds = array<i64: 1, 32>}, {transform_indices = @transform_7, window_bounds = array<i64: 1, 40, 32>}]} {
    %c0 = arith.constant 0 : index
    %c0_0 = arith.constant 0 : index
    %c0_1 = arith.constant 0 : index
    %0 = vector.load %arg1[%c0, %c0_0, %c0_1] : memref<1x40x32xbf16, #tpu.memory_space<vmem>>, vector<1x40x32xbf16>
    %1 = vector.shape_cast %0 : vector<1x40x32xbf16> to vector<40x32xbf16>
    %2 = arith.extf %1 : vector<40x32xbf16> to vector<40x32xf32>
    %c0_2 = arith.constant 0 : index
    %c0_3 = arith.constant 0 : index
    %3 = vector.load %arg2[%c0_2, %c0_3] : memref<1x32xf32, #tpu.memory_space<vmem>>, vector<1x32xf32>
    %c0_4 = arith.constant 0 : index
    %c0_5 = arith.constant 0 : index
    %4 = vector.load %arg3[%c0_4, %c0_5] : memref<1x32xf32, #tpu.memory_space<vmem>>, vector<1x32xf32>
    %cst = arith.constant dense<0.000000e+00> : vector<40xf32>
    %5 = vector.multi_reduction <add>, %2, %cst [1] : vector<40x32xf32> to vector<40xf32>
    %6 = vector.shape_cast %5 : vector<40xf32> to vector<40x1xf32>
    %cst_6 = arith.constant 3.200000e+01 : f32
    %7 = vector.broadcast %cst_6 : f32 to vector<40x1xf32>
    %8 = arith.divf %6, %7 : vector<40x1xf32>
    %9 = vector.broadcast %8 : vector<40x1xf32> to vector<40x32xf32>
    %10 = arith.subf %2, %9 : vector<40x32xf32>
    %11 = arith.mulf %10, %10 : vector<40x32xf32>
    %cst_7 = arith.constant dense<0.000000e+00> : vector<40xf32>
    %12 = vector.multi_reduction <add>, %11, %cst_7 [1] : vector<40x32xf32> to vector<40xf32>
    %13 = vector.shape_cast %12 : vector<40xf32> to vector<40x1xf32>
    %cst_8 = arith.constant 3.200000e+01 : f32
    %14 = vector.broadcast %cst_8 : f32 to vector<40x1xf32>
    %15 = arith.divf %13, %14 : vector<40x1xf32>
    %16 = vector.broadcast %8 : vector<40x1xf32> to vector<40x32xf32>
    %17 = arith.subf %2, %16 : vector<40x32xf32>
    %cst_9 = arith.constant 9.99999974E-6 : f32
    %18 = vector.broadcast %cst_9 : f32 to vector<40x1xf32>
    %19 = arith.addf %15, %18 : vector<40x1xf32>
    %20 = math.rsqrt %19 : vector<40x1xf32>
    %21 = vector.broadcast %20 : vector<40x1xf32> to vector<40x32xf32>
    %22 = arith.mulf %17, %21 : vector<40x32xf32>
    %23 = vector.broadcast %3 : vector<1x32xf32> to vector<40x32xf32>
    %24 = arith.mulf %22, %23 : vector<40x32xf32>
    %25 = vector.broadcast %4 : vector<1x32xf32> to vector<40x32xf32>
    %26 = arith.addf %24, %25 : vector<40x32xf32>
    %27 = arith.truncf %26 : vector<40x32xf32> to vector<40x32xbf16>
    %c0_10 = arith.constant 0 : index
    %c0_11 = arith.constant 0 : index
    %28 = vector.load %arg4[%c0_10, %c0_11] : memref<32x128xbf16, #tpu.memory_space<vmem>>, vector<32x128xbf16>
    %cst_12 = arith.constant dense<0.000000e+00> : vector<40x128xf32>
    %29 = tpu.matmul %27, %28, %cst_12 {dimension_numbers = #tpu.dot_dimension_numbers<[1], [0], [0], [1], [0, 0, 1, 1], [], []>} : vector<40x32xbf16>, vector<32x128xbf16>, vector<40x128xf32> -> vector<40x128xf32>
    %c0_13 = arith.constant 0 : index
    %c0_14 = arith.constant 0 : index
    %30 = vector.load %arg5[%c0_13, %c0_14] : memref<1x128xf32, #tpu.memory_space<vmem>>, vector<1x128xf32>
    %31 = vector.broadcast %30 : vector<1x128xf32> to vector<40x128xf32>
    %32 = arith.addf %29, %31 : vector<40x128xf32>
    %cst_15 = arith.constant 1.702000e+00 : f32
    %33 = vector.broadcast %cst_15 : f32 to vector<40x128xf32>
    %34 = arith.mulf %33, %32 : vector<40x128xf32>
    %35 = arith.negf %34 : vector<40x128xf32>
    %36 = math.exp %35 : vector<40x128xf32>
    %cst_16 = arith.constant 1.000000e+00 : f32
    %37 = vector.broadcast %cst_16 : f32 to vector<40x128xf32>
    %38 = arith.addf %37, %36 : vector<40x128xf32>
    %39 = arith.divf %37, %38 : vector<40x128xf32>
    %40 = arith.mulf %32, %39 : vector<40x128xf32>
    %41 = arith.truncf %40 : vector<40x128xf32> to vector<40x128xbf16>
    %c0_17 = arith.constant 0 : index
    %c0_18 = arith.constant 0 : index
    %42 = vector.load %arg6[%c0_17, %c0_18] : memref<128x32xbf16, #tpu.memory_space<vmem>>, vector<128x32xbf16>
    %cst_19 = arith.constant dense<0.000000e+00> : vector<40x32xf32>
    %43 = tpu.matmul %41, %42, %cst_19 {dimension_numbers = #tpu.dot_dimension_numbers<[1], [0], [0], [1], [0, 0, 1, 1], [], []>} : vector<40x128xbf16>, vector<128x32xbf16>, vector<40x32xf32> -> vector<40x32xf32>
    %c0_20 = arith.constant 0 : index
    %c0_21 = arith.constant 0 : index
    %44 = vector.load %arg7[%c0_20, %c0_21] : memref<1x32xf32, #tpu.memory_space<vmem>>, vector<1x32xf32>
    %45 = vector.broadcast %44 : vector<1x32xf32> to vector<40x32xf32>
    %46 = arith.addf %43, %45 : vector<40x32xf32>
    %47 = arith.addf %46, %2 : vector<40x32xf32>
    %48 = arith.truncf %47 : vector<40x32xf32> to vector<40x32xbf16>
    %c0_22 = arith.constant 0 : index
    %c0_23 = arith.constant 0 : index
    %c0_24 = arith.constant 0 : index
    %49 = vector.load %arg8[%c0_22, %c0_23, %c0_24] : memref<1x40x32xbf16, #tpu.memory_space<vmem>>, vector<1x40x32xbf16>
    %50 = vector.shape_cast %49 : vector<1x40x32xbf16> to vector<40x32xbf16>
    %51 = vector.shape_cast %48 : vector<40x32xbf16> to vector<1x40x32xbf16>
    tpu.vector_store %arg8[%c0_22, %c0_23, %c0_24], %51 {strides = array<i32>} : memref<1x40x32xbf16, #tpu.memory_space<vmem>>, vector<1x40x32xbf16>,
    return
  }
  func.func @transform_0(%arg0: i32) -> (i32, i32, i32) {
    %c0_i32 = arith.constant 0 : i32
    %c0_i32_0 = arith.constant 0 : i32
    %c0_i32_1 = arith.constant 0 : i32
    return %arg0, %c0_i32, %c0_i32_0 : i32, i32, i32
  }
  func.func @transform_1(%arg0: i32) -> (i32, i32) {
    %c0_i32 = arith.constant 0 : i32
    %c0_i32_0 = arith.constant 0 : i32
    %c0_i32_1 = arith.constant 0 : i32
    return %c0_i32, %c0_i32_0 : i32, i32
  }
  func.func @transform_2(%arg0: i32) -> (i32, i32) {
    %c0_i32 = arith.constant 0 : i32
    %c0_i32_0 = arith.constant 0 : i32
    %c0_i32_1 = arith.constant 0 : i32
    return %c0_i32, %c0_i32_0 : i32, i32
  }
  func.func @transform_3(%arg0: i32) -> (i32, i32) {
    %c0_i32 = arith.constant 0 : i32
    %c0_i32_0 = arith.constant 0 : i32
    %c0_i32_1 = arith.constant 0 : i32
    return %c0_i32, %c0_i32_0 : i32, i32
  }
  func.func @transform_4(%arg0: i32) -> (i32, i32) {
    %c0_i32 = arith.constant 0 : i32
    %c0_i32_0 = arith.constant 0 : i32
    %c0_i32_1 = arith.constant 0 : i32
    return %c0_i32, %c0_i32_0 : i32, i32
  }
  func.func @transform_5(%arg0: i32) -> (i32, i32) {
    %c0_i32 = arith.constant 0 : i32
    %c0_i32_0 = arith.constant 0 : i32
    %c0_i32_1 = arith.constant 0 : i32
    return %c0_i32, %c0_i32_0 : i32, i32
  }
  func.func @transform_6(%arg0: i32) -> (i32, i32) {
    %c0_i32 = arith.constant 0 : i32
    %c0_i32_0 = arith.constant 0 : i32
    %c0_i32_1 = arith.constant 0 : i32
    return %c0_i32, %c0_i32_0 : i32, i32
  }
  func.func @transform_7(%arg0: i32) -> (i32, i32, i32) {
    %c0_i32 = arith.constant 0 : i32
    %c0_i32_0 = arith.constant 0 : i32
    %c0_i32_1 = arith.constant 0 : i32
    return %arg0, %c0_i32, %c0_i32_0 : i32, i32, i32
  }
}

module attributes {stable_mosaic.version = 11 : i64} {
  func.func @_attn_block_kernel(%arg0: i32, %arg1: memref<1x40x32xbf16, #tpu.memory_space<vmem>>, %arg2: memref<1x32xf32, #tpu.memory_space<vmem>>, %arg3: memref<1x32xf32, #tpu.memory_space<vmem>>, %arg4: memref<32x96xbf16, #tpu.memory_space<vmem>>, %arg5: memref<1x96xf32, #tpu.memory_space<vmem>>, %arg6: memref<32x32xbf16, #tpu.memory_space<vmem>>, %arg7: memref<1x32xf32, #tpu.memory_space<vmem>>, %arg8: memref<1x40x32xbf16, #tpu.memory_space<vmem>>, %arg9: memref<40x32xf32, #tpu.memory_space<vmem>>) attributes {dimension_semantics = [#tpu.dimension_semantics<parallel>], iteration_bounds = array<i64: 2>, scalar_prefetch = 0 : i64, scratch_operands = 1 : i64, tpu.core_type = #tpu.core_type<tc>, window_params = [{transform_indices = @transform_0, window_bounds = array<i64: 1, 40, 32>}, {pipeline_mode = #tpu.pipeline_mode<synchronous>, transform_indices = @transform_1, window_bounds = array<i64: 1, 32>}, {pipeline_mode = #tpu.pipeline_mode<synchronous>, transform_indices = @transform_2, window_bounds = array<i64: 1, 32>}, {pipeline_mode = #tpu.pipeline_mode<synchronous>, transform_indices = @transform_3, window_bounds = array<i64: 32, 96>}, {pipeline_mode = #tpu.pipeline_mode<synchronous>, transform_indices = @transform_4, window_bounds = array<i64: 1, 96>}, {pipeline_mode = #tpu.pipeline_mode<synchronous>, transform_indices = @transform_5, window_bounds = array<i64: 32, 32>}, {pipeline_mode = #tpu.pipeline_mode<synchronous>, transform_indices = @transform_6, window_bounds = array<i64: 1, 32>}, {transform_indices = @transform_7, window_bounds = array<i64: 1, 40, 32>}]} {
    %c0 = arith.constant 0 : index
    %c0_0 = arith.constant 0 : index
    %c0_1 = arith.constant 0 : index
    %0 = vector.load %arg1[%c0, %c0_0, %c0_1] : memref<1x40x32xbf16, #tpu.memory_space<vmem>>, vector<1x40x32xbf16>
    %1 = vector.shape_cast %0 : vector<1x40x32xbf16> to vector<40x32xbf16>
    %2 = arith.extf %1 : vector<40x32xbf16> to vector<40x32xf32>
    %c0_2 = arith.constant 0 : index
    %c0_3 = arith.constant 0 : index
    %3 = vector.load %arg2[%c0_2, %c0_3] : memref<1x32xf32, #tpu.memory_space<vmem>>, vector<1x32xf32>
    %c0_4 = arith.constant 0 : index
    %c0_5 = arith.constant 0 : index
    %4 = vector.load %arg3[%c0_4, %c0_5] : memref<1x32xf32, #tpu.memory_space<vmem>>, vector<1x32xf32>
    %cst = arith.constant dense<0.000000e+00> : vector<40xf32>
    %5 = vector.multi_reduction <add>, %2, %cst [1] : vector<40x32xf32> to vector<40xf32>
    %6 = vector.shape_cast %5 : vector<40xf32> to vector<40x1xf32>
    %cst_6 = arith.constant 3.200000e+01 : f32
    %7 = vector.broadcast %cst_6 : f32 to vector<40x1xf32>
    %8 = arith.divf %6, %7 : vector<40x1xf32>
    %9 = vector.broadcast %8 : vector<40x1xf32> to vector<40x32xf32>
    %10 = arith.subf %2, %9 : vector<40x32xf32>
    %11 = arith.mulf %10, %10 : vector<40x32xf32>
    %cst_7 = arith.constant dense<0.000000e+00> : vector<40xf32>
    %12 = vector.multi_reduction <add>, %11, %cst_7 [1] : vector<40x32xf32> to vector<40xf32>
    %13 = vector.shape_cast %12 : vector<40xf32> to vector<40x1xf32>
    %cst_8 = arith.constant 3.200000e+01 : f32
    %14 = vector.broadcast %cst_8 : f32 to vector<40x1xf32>
    %15 = arith.divf %13, %14 : vector<40x1xf32>
    %16 = vector.broadcast %8 : vector<40x1xf32> to vector<40x32xf32>
    %17 = arith.subf %2, %16 : vector<40x32xf32>
    %cst_9 = arith.constant 9.99999974E-6 : f32
    %18 = vector.broadcast %cst_9 : f32 to vector<40x1xf32>
    %19 = arith.addf %15, %18 : vector<40x1xf32>
    %20 = math.rsqrt %19 : vector<40x1xf32>
    %21 = vector.broadcast %20 : vector<40x1xf32> to vector<40x32xf32>
    %22 = arith.mulf %17, %21 : vector<40x32xf32>
    %23 = vector.broadcast %3 : vector<1x32xf32> to vector<40x32xf32>
    %24 = arith.mulf %22, %23 : vector<40x32xf32>
    %25 = vector.broadcast %4 : vector<1x32xf32> to vector<40x32xf32>
    %26 = arith.addf %24, %25 : vector<40x32xf32>
    %27 = arith.truncf %26 : vector<40x32xf32> to vector<40x32xbf16>
    %c0_10 = arith.constant 0 : index
    %c0_11 = arith.constant 0 : index
    %28 = vector.load %arg4[%c0_10, %c0_11] : memref<32x96xbf16, #tpu.memory_space<vmem>>, vector<32x96xbf16>
    %cst_12 = arith.constant dense<0.000000e+00> : vector<40x96xf32>
    %29 = tpu.matmul %27, %28, %cst_12 {dimension_numbers = #tpu.dot_dimension_numbers<[1], [0], [0], [1], [0, 0, 1, 1], [], []>} : vector<40x32xbf16>, vector<32x96xbf16>, vector<40x96xf32> -> vector<40x96xf32>
    %c0_13 = arith.constant 0 : index
    %c0_14 = arith.constant 0 : index
    %30 = vector.load %arg5[%c0_13, %c0_14] : memref<1x96xf32, #tpu.memory_space<vmem>>, vector<1x96xf32>
    %31 = vector.broadcast %30 : vector<1x96xf32> to vector<40x96xf32>
    %32 = arith.addf %29, %31 : vector<40x96xf32>
    %33 = vector.extract_strided_slice %32 {offsets = [0, 0], sizes = [40, 8], strides = [1, 1]} : vector<40x96xf32> to vector<40x8xf32>
    %34 = arith.truncf %33 : vector<40x8xf32> to vector<40x8xbf16>
    %35 = vector.extract_strided_slice %32 {offsets = [0, 32], sizes = [40, 8], strides = [1, 1]} : vector<40x96xf32> to vector<40x8xf32>
    %36 = arith.truncf %35 : vector<40x8xf32> to vector<40x8xbf16>
    %37 = vector.extract_strided_slice %32 {offsets = [0, 64], sizes = [40, 8], strides = [1, 1]} : vector<40x96xf32> to vector<40x8xf32>
    %38 = arith.truncf %37 : vector<40x8xf32> to vector<40x8xbf16>
    %cst_15 = arith.constant dense<0.000000e+00> : vector<40x40xf32>
    %39 = tpu.matmul %34, %36, %cst_15 {dimension_numbers = #tpu.dot_dimension_numbers<[1], [1], [0], [0], [0, 0, 1, 0], [], []>} : vector<40x8xbf16>, vector<40x8xbf16>, vector<40x40xf32> -> vector<40x40xf32>
    %cst_16 = arith.constant 0.353553385 : f32
    %40 = vector.broadcast %cst_16 : f32 to vector<40x40xf32>
    %41 = arith.mulf %39, %40 : vector<40x40xf32>
    %cst_17 = arith.constant dense<0xFF800000> : vector<40xf32>
    %42 = vector.multi_reduction <maximumf>, %41, %cst_17 [1] : vector<40x40xf32> to vector<40xf32>
    %43 = vector.shape_cast %42 : vector<40xf32> to vector<40x1xf32>
    %44 = vector.broadcast %43 : vector<40x1xf32> to vector<40x40xf32>
    %45 = arith.subf %41, %44 : vector<40x40xf32>
    %46 = math.exp %45 : vector<40x40xf32>
    %cst_18 = arith.constant dense<0.000000e+00> : vector<40xf32>
    %47 = vector.multi_reduction <add>, %46, %cst_18 [1] : vector<40x40xf32> to vector<40xf32>
    %48 = vector.shape_cast %47 : vector<40xf32> to vector<40x1xf32>
    %49 = tpu.reciprocal %48 {approx = true} : vector<40x1xf32> -> vector<40x1xf32>
    %50 = vector.broadcast %49 : vector<40x1xf32> to vector<40x40xf32>
    %51 = arith.mulf %46, %50 : vector<40x40xf32>
    %52 = arith.truncf %51 : vector<40x40xf32> to vector<40x40xbf16>
    %cst_19 = arith.constant dense<0.000000e+00> : vector<40x8xf32>
    %53 = tpu.matmul %52, %38, %cst_19 {dimension_numbers = #tpu.dot_dimension_numbers<[1], [0], [0], [1], [0, 0, 1, 1], [], []>} : vector<40x40xbf16>, vector<40x8xbf16>, vector<40x8xf32> -> vector<40x8xf32>
    %c0_20 = arith.constant 0 : index
    %c0_21 = arith.constant 0 : index
    %54 = vector.load %arg9[%c0_20, %c0_21] : memref<40x32xf32, #tpu.memory_space<vmem>>, vector<40x8xf32>
    tpu.vector_store %arg9[%c0_20, %c0_21], %53 {strides = array<i32>} : memref<40x32xf32, #tpu.memory_space<vmem>>, vector<40x8xf32>,
    %55 = vector.extract_strided_slice %32 {offsets = [0, 8], sizes = [40, 8], strides = [1, 1]} : vector<40x96xf32> to vector<40x8xf32>
    %56 = arith.truncf %55 : vector<40x8xf32> to vector<40x8xbf16>
    %57 = vector.extract_strided_slice %32 {offsets = [0, 40], sizes = [40, 8], strides = [1, 1]} : vector<40x96xf32> to vector<40x8xf32>
    %58 = arith.truncf %57 : vector<40x8xf32> to vector<40x8xbf16>
    %59 = vector.extract_strided_slice %32 {offsets = [0, 72], sizes = [40, 8], strides = [1, 1]} : vector<40x96xf32> to vector<40x8xf32>
    %60 = arith.truncf %59 : vector<40x8xf32> to vector<40x8xbf16>
    %cst_22 = arith.constant dense<0.000000e+00> : vector<40x40xf32>
    %61 = tpu.matmul %56, %58, %cst_22 {dimension_numbers = #tpu.dot_dimension_numbers<[1], [1], [0], [0], [0, 0, 1, 0], [], []>} : vector<40x8xbf16>, vector<40x8xbf16>, vector<40x40xf32> -> vector<40x40xf32>
    %cst_23 = arith.constant 0.353553385 : f32
    %62 = vector.broadcast %cst_23 : f32 to vector<40x40xf32>
    %63 = arith.mulf %61, %62 : vector<40x40xf32>
    %cst_24 = arith.constant dense<0xFF800000> : vector<40xf32>
    %64 = vector.multi_reduction <maximumf>, %63, %cst_24 [1] : vector<40x40xf32> to vector<40xf32>
    %65 = vector.shape_cast %64 : vector<40xf32> to vector<40x1xf32>
    %66 = vector.broadcast %65 : vector<40x1xf32> to vector<40x40xf32>
    %67 = arith.subf %63, %66 : vector<40x40xf32>
    %68 = math.exp %67 : vector<40x40xf32>
    %cst_25 = arith.constant dense<0.000000e+00> : vector<40xf32>
    %69 = vector.multi_reduction <add>, %68, %cst_25 [1] : vector<40x40xf32> to vector<40xf32>
    %70 = vector.shape_cast %69 : vector<40xf32> to vector<40x1xf32>
    %71 = tpu.reciprocal %70 {approx = true} : vector<40x1xf32> -> vector<40x1xf32>
    %72 = vector.broadcast %71 : vector<40x1xf32> to vector<40x40xf32>
    %73 = arith.mulf %68, %72 : vector<40x40xf32>
    %74 = arith.truncf %73 : vector<40x40xf32> to vector<40x40xbf16>
    %cst_26 = arith.constant dense<0.000000e+00> : vector<40x8xf32>
    %75 = tpu.matmul %74, %60, %cst_26 {dimension_numbers = #tpu.dot_dimension_numbers<[1], [0], [0], [1], [0, 0, 1, 1], [], []>} : vector<40x40xbf16>, vector<40x8xbf16>, vector<40x8xf32> -> vector<40x8xf32>
    %c0_27 = arith.constant 0 : index
    %c8 = arith.constant 8 : index
    %76 = vector.load %arg9[%c0_27, %c8] : memref<40x32xf32, #tpu.memory_space<vmem>>, vector<40x8xf32>
    tpu.vector_store %arg9[%c0_27, %c8], %75 {strides = array<i32>} : memref<40x32xf32, #tpu.memory_space<vmem>>, vector<40x8xf32>,
    %77 = vector.extract_strided_slice %32 {offsets = [0, 16], sizes = [40, 8], strides = [1, 1]} : vector<40x96xf32> to vector<40x8xf32>
    %78 = arith.truncf %77 : vector<40x8xf32> to vector<40x8xbf16>
    %79 = vector.extract_strided_slice %32 {offsets = [0, 48], sizes = [40, 8], strides = [1, 1]} : vector<40x96xf32> to vector<40x8xf32>
    %80 = arith.truncf %79 : vector<40x8xf32> to vector<40x8xbf16>
    %81 = vector.extract_strided_slice %32 {offsets = [0, 80], sizes = [40, 8], strides = [1, 1]} : vector<40x96xf32> to vector<40x8xf32>
    %82 = arith.truncf %81 : vector<40x8xf32> to vector<40x8xbf16>
    %cst_28 = arith.constant dense<0.000000e+00> : vector<40x40xf32>
    %83 = tpu.matmul %78, %80, %cst_28 {dimension_numbers = #tpu.dot_dimension_numbers<[1], [1], [0], [0], [0, 0, 1, 0], [], []>} : vector<40x8xbf16>, vector<40x8xbf16>, vector<40x40xf32> -> vector<40x40xf32>
    %cst_29 = arith.constant 0.353553385 : f32
    %84 = vector.broadcast %cst_29 : f32 to vector<40x40xf32>
    %85 = arith.mulf %83, %84 : vector<40x40xf32>
    %cst_30 = arith.constant dense<0xFF800000> : vector<40xf32>
    %86 = vector.multi_reduction <maximumf>, %85, %cst_30 [1] : vector<40x40xf32> to vector<40xf32>
    %87 = vector.shape_cast %86 : vector<40xf32> to vector<40x1xf32>
    %88 = vector.broadcast %87 : vector<40x1xf32> to vector<40x40xf32>
    %89 = arith.subf %85, %88 : vector<40x40xf32>
    %90 = math.exp %89 : vector<40x40xf32>
    %cst_31 = arith.constant dense<0.000000e+00> : vector<40xf32>
    %91 = vector.multi_reduction <add>, %90, %cst_31 [1] : vector<40x40xf32> to vector<40xf32>
    %92 = vector.shape_cast %91 : vector<40xf32> to vector<40x1xf32>
    %93 = tpu.reciprocal %92 {approx = true} : vector<40x1xf32> -> vector<40x1xf32>
    %94 = vector.broadcast %93 : vector<40x1xf32> to vector<40x40xf32>
    %95 = arith.mulf %90, %94 : vector<40x40xf32>
    %96 = arith.truncf %95 : vector<40x40xf32> to vector<40x40xbf16>
    %cst_32 = arith.constant dense<0.000000e+00> : vector<40x8xf32>
    %97 = tpu.matmul %96, %82, %cst_32 {dimension_numbers = #tpu.dot_dimension_numbers<[1], [0], [0], [1], [0, 0, 1, 1], [], []>} : vector<40x40xbf16>, vector<40x8xbf16>, vector<40x8xf32> -> vector<40x8xf32>
    %c0_33 = arith.constant 0 : index
    %c16 = arith.constant 16 : index
    %98 = vector.load %arg9[%c0_33, %c16] : memref<40x32xf32, #tpu.memory_space<vmem>>, vector<40x8xf32>
    tpu.vector_store %arg9[%c0_33, %c16], %97 {strides = array<i32>} : memref<40x32xf32, #tpu.memory_space<vmem>>, vector<40x8xf32>,
    %99 = vector.extract_strided_slice %32 {offsets = [0, 24], sizes = [40, 8], strides = [1, 1]} : vector<40x96xf32> to vector<40x8xf32>
    %100 = arith.truncf %99 : vector<40x8xf32> to vector<40x8xbf16>
    %101 = vector.extract_strided_slice %32 {offsets = [0, 56], sizes = [40, 8], strides = [1, 1]} : vector<40x96xf32> to vector<40x8xf32>
    %102 = arith.truncf %101 : vector<40x8xf32> to vector<40x8xbf16>
    %103 = vector.extract_strided_slice %32 {offsets = [0, 88], sizes = [40, 8], strides = [1, 1]} : vector<40x96xf32> to vector<40x8xf32>
    %104 = arith.truncf %103 : vector<40x8xf32> to vector<40x8xbf16>
    %cst_34 = arith.constant dense<0.000000e+00> : vector<40x40xf32>
    %105 = tpu.matmul %100, %102, %cst_34 {dimension_numbers = #tpu.dot_dimension_numbers<[1], [1], [0], [0], [0, 0, 1, 0], [], []>} : vector<40x8xbf16>, vector<40x8xbf16>, vector<40x40xf32> -> vector<40x40xf32>
    %cst_35 = arith.constant 0.353553385 : f32
    %106 = vector.broadcast %cst_35 : f32 to vector<40x40xf32>
    %107 = arith.mulf %105, %106 : vector<40x40xf32>
    %cst_36 = arith.constant dense<0xFF800000> : vector<40xf32>
    %108 = vector.multi_reduction <maximumf>, %107, %cst_36 [1] : vector<40x40xf32> to vector<40xf32>
    %109 = vector.shape_cast %108 : vector<40xf32> to vector<40x1xf32>
    %110 = vector.broadcast %109 : vector<40x1xf32> to vector<40x40xf32>
    %111 = arith.subf %107, %110 : vector<40x40xf32>
    %112 = math.exp %111 : vector<40x40xf32>
    %cst_37 = arith.constant dense<0.000000e+00> : vector<40xf32>
    %113 = vector.multi_reduction <add>, %112, %cst_37 [1] : vector<40x40xf32> to vector<40xf32>
    %114 = vector.shape_cast %113 : vector<40xf32> to vector<40x1xf32>
    %115 = tpu.reciprocal %114 {approx = true} : vector<40x1xf32> -> vector<40x1xf32>
    %116 = vector.broadcast %115 : vector<40x1xf32> to vector<40x40xf32>
    %117 = arith.mulf %112, %116 : vector<40x40xf32>
    %118 = arith.truncf %117 : vector<40x40xf32> to vector<40x40xbf16>
    %cst_38 = arith.constant dense<0.000000e+00> : vector<40x8xf32>
    %119 = tpu.matmul %118, %104, %cst_38 {dimension_numbers = #tpu.dot_dimension_numbers<[1], [0], [0], [1], [0, 0, 1, 1], [], []>} : vector<40x40xbf16>, vector<40x8xbf16>, vector<40x8xf32> -> vector<40x8xf32>
    %c0_39 = arith.constant 0 : index
    %c24 = arith.constant 24 : index
    %120 = vector.load %arg9[%c0_39, %c24] : memref<40x32xf32, #tpu.memory_space<vmem>>, vector<40x8xf32>
    tpu.vector_store %arg9[%c0_39, %c24], %119 {strides = array<i32>} : memref<40x32xf32, #tpu.memory_space<vmem>>, vector<40x8xf32>,
    %c0_40 = arith.constant 0 : index
    %c0_41 = arith.constant 0 : index
    %121 = vector.load %arg9[%c0_40, %c0_41] : memref<40x32xf32, #tpu.memory_space<vmem>>, vector<40x32xf32>
    %122 = arith.truncf %121 : vector<40x32xf32> to vector<40x32xbf16>
    %c0_42 = arith.constant 0 : index
    %c0_43 = arith.constant 0 : index
    %123 = vector.load %arg6[%c0_42, %c0_43] : memref<32x32xbf16, #tpu.memory_space<vmem>>, vector<32x32xbf16>
    %cst_44 = arith.constant dense<0.000000e+00> : vector<40x32xf32>
    %124 = tpu.matmul %122, %123, %cst_44 {dimension_numbers = #tpu.dot_dimension_numbers<[1], [0], [0], [1], [0, 0, 1, 1], [], []>} : vector<40x32xbf16>, vector<32x32xbf16>, vector<40x32xf32> -> vector<40x32xf32>
    %c0_45 = arith.constant 0 : index
    %c0_46 = arith.constant 0 : index
    %125 = vector.load %arg7[%c0_45, %c0_46] : memref<1x32xf32, #tpu.memory_space<vmem>>, vector<1x32xf32>
    %126 = vector.broadcast %125 : vector<1x32xf32> to vector<40x32xf32>
    %127 = arith.addf %124, %126 : vector<40x32xf32>
    %128 = arith.addf %127, %2 : vector<40x32xf32>
    %129 = arith.truncf %128 : vector<40x32xf32> to vector<40x32xbf16>
    %c0_47 = arith.constant 0 : index
    %c0_48 = arith.constant 0 : index
    %c0_49 = arith.constant 0 : index
    %130 = vector.load %arg8[%c0_47, %c0_48, %c0_49] : memref<1x40x32xbf16, #tpu.memory_space<vmem>>, vector<1x40x32xbf16>
    %131 = vector.shape_cast %130 : vector<1x40x32xbf16> to vector<40x32xbf16>
    %132 = vector.shape_cast %129 : vector<40x32xbf16> to vector<1x40x32xbf16>
    tpu.vector_store %arg8[%c0_47, %c0_48, %c0_49], %132 {strides = array<i32>} : memref<1x40x32xbf16, #tpu.memory_space<vmem>>, vector<1x40x32xbf16>,
    return
  }
  func.func @transform_0(%arg0: i32) -> (i32, i32, i32) {
    %c0_i32 = arith.constant 0 : i32
    %c0_i32_0 = arith.constant 0 : i32
    %c0_i32_1 = arith.constant 0 : i32
    return %arg0, %c0_i32, %c0_i32_0 : i32, i32, i32
  }
  func.func @transform_1(%arg0: i32) -> (i32, i32) {
    %c0_i32 = arith.constant 0 : i32
    %c0_i32_0 = arith.constant 0 : i32
    %c0_i32_1 = arith.constant 0 : i32
    return %c0_i32, %c0_i32_0 : i32, i32
  }
  func.func @transform_2(%arg0: i32) -> (i32, i32) {
    %c0_i32 = arith.constant 0 : i32
    %c0_i32_0 = arith.constant 0 : i32
    %c0_i32_1 = arith.constant 0 : i32
    return %c0_i32, %c0_i32_0 : i32, i32
  }
  func.func @transform_3(%arg0: i32) -> (i32, i32) {
    %c0_i32 = arith.constant 0 : i32
    %c0_i32_0 = arith.constant 0 : i32
    %c0_i32_1 = arith.constant 0 : i32
    return %c0_i32, %c0_i32_0 : i32, i32
  }
  func.func @transform_4(%arg0: i32) -> (i32, i32) {
    %c0_i32 = arith.constant 0 : i32
    %c0_i32_0 = arith.constant 0 : i32
    %c0_i32_1 = arith.constant 0 : i32
    return %c0_i32, %c0_i32_0 : i32, i32
  }
  func.func @transform_5(%arg0: i32) -> (i32, i32) {
    %c0_i32 = arith.constant 0 : i32
    %c0_i32_0 = arith.constant 0 : i32
    %c0_i32_1 = arith.constant 0 : i32
    return %c0_i32, %c0_i32_0 : i32, i32
  }
  func.func @transform_6(%arg0: i32) -> (i32, i32) {
    %c0_i32 = arith.constant 0 : i32
    %c0_i32_0 = arith.constant 0 : i32
    %c0_i32_1 = arith.constant 0 : i32
    return %c0_i32, %c0_i32_0 : i32, i32
  }
  func.func @transform_7(%arg0: i32) -> (i32, i32, i32) {
    %c0_i32 = arith.constant 0 : i32
    %c0_i32_0 = arith.constant 0 : i32
    %c0_i32_1 = arith.constant 0 : i32
    return %arg0, %c0_i32, %c0_i32_0 : i32, i32, i32
  }
}

module attributes {stable_mosaic.version = 11 : i64} {
  func.func @_final_kernel(%arg0: memref<2x32xbf16, #tpu.memory_space<vmem>>, %arg1: memref<1x32xf32, #tpu.memory_space<vmem>>, %arg2: memref<1x32xf32, #tpu.memory_space<vmem>>, %arg3: memref<32x16xbf16, #tpu.memory_space<vmem>>, %arg4: memref<2x16xf32, #tpu.memory_space<vmem>>) attributes {dimension_semantics = [], scalar_prefetch = 0 : i64, scratch_operands = 0 : i64, tpu.core_type = #tpu.core_type<tc>} {
    %c0 = arith.constant 0 : index
    %c0_0 = arith.constant 0 : index
    %0 = vector.load %arg0[%c0, %c0_0] : memref<2x32xbf16, #tpu.memory_space<vmem>>, vector<2x32xbf16>
    %1 = arith.extf %0 : vector<2x32xbf16> to vector<2x32xf32>
    %c0_1 = arith.constant 0 : index
    %c0_2 = arith.constant 0 : index
    %2 = vector.load %arg1[%c0_1, %c0_2] : memref<1x32xf32, #tpu.memory_space<vmem>>, vector<1x32xf32>
    %c0_3 = arith.constant 0 : index
    %c0_4 = arith.constant 0 : index
    %3 = vector.load %arg2[%c0_3, %c0_4] : memref<1x32xf32, #tpu.memory_space<vmem>>, vector<1x32xf32>
    %cst = arith.constant dense<0.000000e+00> : vector<2xf32>
    %4 = vector.multi_reduction <add>, %1, %cst [1] : vector<2x32xf32> to vector<2xf32>
    %5 = vector.shape_cast %4 : vector<2xf32> to vector<2x1xf32>
    %cst_5 = arith.constant 3.200000e+01 : f32
    %6 = vector.broadcast %cst_5 : f32 to vector<2x1xf32>
    %7 = arith.divf %5, %6 : vector<2x1xf32>
    %8 = vector.broadcast %7 : vector<2x1xf32> to vector<2x32xf32>
    %9 = arith.subf %1, %8 : vector<2x32xf32>
    %10 = arith.mulf %9, %9 : vector<2x32xf32>
    %cst_6 = arith.constant dense<0.000000e+00> : vector<2xf32>
    %11 = vector.multi_reduction <add>, %10, %cst_6 [1] : vector<2x32xf32> to vector<2xf32>
    %12 = vector.shape_cast %11 : vector<2xf32> to vector<2x1xf32>
    %cst_7 = arith.constant 3.200000e+01 : f32
    %13 = vector.broadcast %cst_7 : f32 to vector<2x1xf32>
    %14 = arith.divf %12, %13 : vector<2x1xf32>
    %15 = vector.broadcast %7 : vector<2x1xf32> to vector<2x32xf32>
    %16 = arith.subf %1, %15 : vector<2x32xf32>
    %cst_8 = arith.constant 9.99999974E-6 : f32
    %17 = vector.broadcast %cst_8 : f32 to vector<2x1xf32>
    %18 = arith.addf %14, %17 : vector<2x1xf32>
    %19 = math.rsqrt %18 : vector<2x1xf32>
    %20 = vector.broadcast %19 : vector<2x1xf32> to vector<2x32xf32>
    %21 = arith.mulf %16, %20 : vector<2x32xf32>
    %22 = vector.broadcast %2 : vector<1x32xf32> to vector<2x32xf32>
    %23 = arith.mulf %21, %22 : vector<2x32xf32>
    %24 = vector.broadcast %3 : vector<1x32xf32> to vector<2x32xf32>
    %25 = arith.addf %23, %24 : vector<2x32xf32>
    %26 = arith.truncf %25 : vector<2x32xf32> to vector<2x32xbf16>
    %c0_9 = arith.constant 0 : index
    %c0_10 = arith.constant 0 : index
    %27 = vector.load %arg3[%c0_9, %c0_10] : memref<32x16xbf16, #tpu.memory_space<vmem>>, vector<32x16xbf16>
    %cst_11 = arith.constant dense<0.000000e+00> : vector<2x16xf32>
    %28 = tpu.matmul %26, %27, %cst_11 {dimension_numbers = #tpu.dot_dimension_numbers<[1], [0], [0], [1], [0, 0, 1, 1], [], []>} : vector<2x32xbf16>, vector<32x16xbf16>, vector<2x16xf32> -> vector<2x16xf32>
    %c0_12 = arith.constant 0 : index
    %c0_13 = arith.constant 0 : index
    %29 = vector.load %arg4[%c0_12, %c0_13] : memref<2x16xf32, #tpu.memory_space<vmem>>, vector<2x16xf32>
    tpu.vector_store %arg4[%c0_12, %c0_13], %28 {strides = array<i32>} : memref<2x16xf32, #tpu.memory_space<vmem>>, vector<2x16xf32>,
    return
  }
}

</mosaic_0001>

<bundles_post_ra>
// kernel: text_encoder_forward.6
= control target key start
LH: loop header
LB: loop body
LE: loop exit
PB: predicated region body
PF: predicated region fallthrough
CT: control target
= control target key end

     0   :  { %s956_s24 = smov 0   ;;  %s1100_s0 = inlined_call_operand.vmem [shape: bf16[2,40,32], index: 0, kind: input, shape index: {}, may-alias: {0,7}]   ;;  %s1101_s1 = inlined_call_operand.vmem [shape: f32[1,32], index: 1, kind: input, shape index: {}]   ;;  %s1102_s2 = inlined_call_operand.vmem [shape: f32[1,32], index: 2, kind: input, shape index: {}]   ;;  %s1103_s3 = inlined_call_operand.vmem [shape: bf16[32,128], index: 3, kind: input, shape index: {}]   ;;  %s1104_s4 = inlined_call_operand.vmem [shape: f32[1,128], index: 4, kind: input, shape index: {}]   ;;  %s1105_s5 = inlined_call_operand.vmem [shape: bf16[128,32], index: 5, kind: input, shape index: {}]   ;;  %s1106_s6 = inlined_call_operand.vmem [shape: f32[1,32], index: 6, kind: input, shape index: {}]   ;;  %s1107_s7 = inlined_call_operand.vmem [shape: bf16[2,40,32], index: 7, kind: output, shape index: {}, may-alias: {0,7}]  }
   0x1 LB: > { %s729_s25 = sadd.s32 4294967295, %s912_s24   ;;  %p733_p0 = scmp.ge.s32.totalorder %s912_s24, 1  ;;  %s912_s24 = sphi %s956_s24, %s17_s24  }
   0x2   : > { %p237_p1 = scmp.lt.s32.totalorder %s912_s24, 3 }
   0x4   : > { %p238_p2 = pnand %p733_p0, %p237_p1 }
   0x5   : > { %p269_p3 = scmp.lt.s32.totalorder (!%p238_p2), %s729_s25, 1  ;;  %vm292_vm0 = vcmask (!%p238_p2), 261120   ;;  %v866_v38 = vld [vmem:[%s1103_s3] sm:$0xff] (!%p238_p2)   ;;  %v914_v39 = vmov (!%p238_p2), 0.0   ;;  %v867_v40 = vld [vmem:[%s1103_s3 + $0x8] sm:$0xff] (!%p238_p2)   ;;  %vm915_vm1 = vmmov (!%p238_p2), 0  }
   0x6   : > { %241 = sbr.rel (%p238_p2) target bundleno = 822 (0x336), region = 48  ;;  %795 = vmatprep.subr.bf16.mxu0 (!%p238_p2), %v914_v39  ;;  %839 = vmatprep.subr.bf16.mxu1 (!%p238_p2), %v914_v39  ;;  %v736_v58 = vld [vmem:[%s1101_s1] ss:$0 sm:$0xff] (!%p238_p2)  ;;  %vm668_vm2 = vcmask (!%p238_p2), 257024  }
   0x7   : > { %796 = vmatpush3.bf16.msra.mxu0 (!%p238_p2), %v866_v38  ;;  %799 = vmatprep.mubr.msk.bf16.mxu0 (!%p238_p2), %vm915_vm1, %v914_v39  ;;  %v737_v63 = vld [vmem:[%s1102_s2] ss:$0 sm:$0xff] (!%p238_p2) }
   0x8   : > { %797 = vmatprep.subr.bf16.mxu0 (!%p238_p2), %v914_v39  ;;  %831 = vmatprep.mubr.msk.bf16.mxu1 (!%p238_p2), %vm915_vm1, %v914_v39 }
   0xb   : > { %798 = vmatpush3.bf16.msra.mxu0 (!%p238_p2), %v867_v40 }
   0xc   : > { %811 = vmatprep.subr.bf16.mxu0 (!%p238_p2), %v914_v39 }
   0xd   : > { %s1109_s25 = smov (!%p269_p3, %s729_s25), 1 }
   0xe   : > { %s855_s26 = smul.u32 20, %s1109_s25 }
  0x10   : > { %s273_s29 = scalar_lea.vmem %s1100_s0, %s855_s26  ;;  %s278_s17 = scalar_lea.vmem %s1107_s7, %s855_s26 }
  0x11   : > { %v771_v0 = vld [vmem:[%s273_s29] sm:$0xff]   ;;  %v778_v1 = vld [vmem:[%s273_s29 + $0x8] sm:$0xff]   ;;  %v284_v6 = vld [vmem:[%s273_s29 + $0x10] sm:$0xf] }
  0x12   : > { %v972_v2 = vunpack.c.l.bf16 %v771_v0  ;;  %v974_v3 = vunpack.c.l.bf16 %v778_v1  ;;  %v976_v4 = vunpack.c.h.bf16 %v771_v0  ;;  %v978_v5 = vunpack.c.h.bf16 %v778_v1 }
  0x13   : > { %v988_v11 = vunpack.c.l.bf16 %v284_v6 }
  0x14   : > { %v293_v7 = vsel %vm292_vm0, %v972_v2, 0.0  ;;  %v299_v8 = vsel %vm292_vm0, %v974_v3, 0.0  ;;  %v296_v9 = vsel %vm292_vm0, %v976_v4, 0.0  ;;  %v302_v10 = vsel %vm292_vm0, %v978_v5, 0.0 }
  0x15   : > { %294 = vadd.xlane.f32.xlu0 %v293_v7  ;;  %300 = vadd.xlane.f32.xlu1 %v299_v8  ;;  %v305_v12 = vsel %vm292_vm0, %v988_v11, 0.0 }
  0x19   : > { %297 = vadd.xlane.f32.xlu0 %v296_v9  ;;  %303 = vadd.xlane.f32.xlu1 %v302_v10 }
  0x1d   : > { %306 = vadd.xlane.f32.xlu0 %v305_v12 }
  0xa2   : > { %v295_v13 = vpop.xlane.xlu0 %294  ;;  %v301_v14 = vpop.xlane.xlu1 %300 }
  0xa3   : > { %v309_v15 = vmul.f32 0.03125, %v295_v13  ;;  %v311_v16 = vmul.f32 0.03125, %v301_v14 }
  0xa5   : > { %v314_v17 = vsub.f32 %v972_v2, %v309_v15  ;;  %v994_v18 = vsub.f32 %v974_v3, %v311_v16 }
  0xa6   : > { %v298_v19 = vpop.xlane.xlu0 %297  ;;  %v304_v20 = vpop.xlane.xlu1 %303 }
  0xa7   : > { %v310_v21 = vmul.f32 0.03125, %v298_v19  ;;  %v312_v22 = vmul.f32 0.03125, %v304_v20  ;;  %v319_v23 = vmul.f32 %v314_v17, %v314_v17  ;;  %v321_v24 = vmul.f32 %v994_v18, %v994_v18 }
  0xa9   : > { %v315_v25 = vsub.f32 %v976_v4, %v310_v21  ;;  %v317_v26 = vsub.f32 %v978_v5, %v312_v22  ;;  %v324_v27 = vsel %vm292_vm0, %v319_v23, 0.0  ;;  %v330_v30 = vsel %vm292_vm0, %v321_v24, 0.0  ;;  %v868_v22 = vld [vmem:[%s1105_s5] sm:$0xff]   ;;  %v869_v23 = vld [vmem:[%s1105_s5 + $0x8] sm:$0xff]   ;;  %v870_v24 = vld [vmem:[%s1105_s5 + $0x10] sm:$0xff]  }
  0xaa   : > { %325 = vadd.xlane.f32.xlu1 %v324_v27  ;;  %v307_v28 = vpop.xlane.xlu0 %306  ;;  %847 = vmatpush3.bf16.msra.mxu1 %v868_v22  ;;  %v873_v27 = vld [vmem:[%s1105_s5 + $0x28] sm:$0xff]  }
  0xab   : > { %v313_v29 = vmul.f32 0.03125, %v307_v28  ;;  %v320_v31 = vmul.f32 %v315_v25, %v315_v25  ;;  %v322_v32 = vmul.f32 %v317_v26, %v317_v26  ;;  %840 = vmatprep.subr.bf16.mxu1 %v914_v39  ;;  %v874_v28 = vld [vmem:[%s1105_s5 + $0x30] sm:$0xff]  }
  0xad   : > { %v318_v33 = vsub.f32 %v988_v11, %v313_v29  ;;  %v327_v34 = vsel %vm292_vm0, %v320_v31, 0.0  ;;  %v333_v35 = vsel %vm292_vm0, %v322_v32, 0.0  ;;  %v875_v29 = vld [vmem:[%s1105_s5 + $0x38] sm:$0xff]  }
  0xae   : > { %331 = vadd.xlane.f32.xlu1 %v330_v30  ;;  %328 = vadd.xlane.f32.xlu0 %v327_v34  ;;  %v738_v30 = vld [vmem:[%s1104_s4] ss:$0 sm:$0xff] }
  0xaf   : > { %v323_v36 = vmul.f32 %v318_v33, %v318_v33  ;;  %848 = vmatpush3.bf16.msra.mxu1 %v869_v23 }
  0xb0   : > { %841 = vmatprep.subr.bf16.mxu1 %v914_v39 }
  0xb1   : > { %v336_v37 = vsel %vm292_vm0, %v323_v36, 0.0 }
  0xb2   : > { %334 = vadd.xlane.f32.xlu0 %v333_v35  ;;  %337 = vadd.xlane.f32.xlu1 %v336_v37 }
  0xb3   : > { %849 = vmatpush3.bf16.msra.mxu1 %v870_v24 }
  0xb4   : > { %842 = vmatprep.subr.bf16.mxu1 %v914_v39 }
 0x137   : > { %v326_v41 = vpop.xlane.xlu1 %325 }
 0x138   : > { %v339_v42 = vmul.f32 0.03125, %v326_v41 }
 0x13a   : > { %v344_v43 = vadd.f32 1e-05, %v339_v42 }
 0x13b   : > { %v332_v44 = vpop.xlane.xlu1 %331  ;;  %v329_v45 = vpop.xlane.xlu0 %328 }
 0x13c   : > { %876 = vrsqrt.f32 %v344_v43  ;;  %v341_v46 = vmul.f32 0.03125, %v332_v44  ;;  %v340_v47 = vmul.f32 0.03125, %v329_v45 }
 0x13e   : > { %v345_v48 = vadd.f32 1e-05, %v340_v47  ;;  %v346_v49 = vadd.f32 1e-05, %v341_v46 }
 0x13f   : > { %v338_v50 = vpop.xlane.xlu1 %337  ;;  %v335_v51 = vpop.xlane.xlu0 %334 }
 0x140   : > { %v342_v52 = vmul.f32 0.03125, %v335_v51  ;;  %878 = vrsqrt.f32 %v345_v48  ;;  %v343_v53 = vmul.f32 0.03125, %v338_v50 }
 0x141   : > { %880 = vrsqrt.f32 %v346_v49 }
 0x142   : > { %v347_v54 = vadd.f32 1e-05, %v342_v52  ;;  %v348_v55 = vadd.f32 1e-05, %v343_v53 }
 0x144   : > { %882 = vrsqrt.f32 %v347_v54 }
 0x145   : > { %884 = vrsqrt.f32 %v348_v55 }
 0x146   : > { %v877_v56 = vpop.eup %876 }
 0x147   : > { %v354_v57 = vmul.f32 %v877_v56, %v314_v17 }
 0x149   : > { %v365_v61 = vmul.f32 %v736_v58, %v354_v57 }
 0x14a   : > { %v879_v59 = vpop.eup %878 }
 0x14b   : > { %v355_v60 = vmul.f32 %v879_v59, %v315_v25  ;;  %v881_v62 = vpop.eup %880  ;;  %v376_v8 = vadd.f32 %v737_v63, %v365_v61  ;;  %v871_v25 = vld [vmem:[%s1105_s5 + $0x18] sm:$0xff]  }
 0x14c   : > { %v356_v6 = vmul.f32 %v881_v62, %v994_v18  ;;  %850 = vmatpush3.bf16.msra.mxu1 %v871_v25 }
 0x14d   : > { %v366_v0 = vmul.f32 %v736_v58, %v355_v60  ;;  %843 = vmatprep.subr.bf16.mxu1 %v914_v39 }
 0x14e   : > { %v883_v1 = vpop.eup %882  ;;  %v367_v14 = vmul.f32 %v736_v58, %v356_v6 }
 0x14f   : > { %v357_v7 = vmul.f32 %v883_v1, %v317_v26  ;;  %v377_v9 = vadd.f32 %v737_v63, %v366_v0  ;;  %v885_v13 = vpop.eup %884  ;;  %v872_v26 = vld [vmem:[%s1105_s5 + $0x20] sm:$0xff]  }
 0x150   : > { %v358_v15 = vmul.f32 %v885_v13, %v318_v33  ;;  %v378_v17 = vadd.f32 %v737_v63, %v367_v14  ;;  %851 = vmatpush3.bf16.msra.mxu1 %v872_v26 }
 0x151   : > { %v381_v10 = vpack.c.bf16 %v377_v9, %v376_v8  ;;  %v368_v12 = vmul.f32 %v736_v58, %v357_v7  ;;  %844 = vmatprep.subr.bf16.mxu1 %v914_v39 }
 0x152   : > { %v369_v20 = vmul.f32 %v736_v58, %v358_v15 }
 0x153   : > { %800 = vmatmul.mubr.msk.bf16.vlgmr.msra.gmra.mrb[0].mxu0 %vm292_vm0, %v381_v10  ;;  %v379_v16 = vadd.f32 %v737_v63, %v368_v12 }
 0x154   : > { %803 = vmatprep.mubr.msk.bf16.mxu0 %vm915_vm1, %v914_v39  ;;  %v380_v18 = vadd.f32 %v737_v63, %v369_v20  ;;  %812 = vmatpush3.bf16.msra.mxu0 %v868_v22 }
 0x155   : > { %v382_v19 = vpack.c.bf16 %v379_v16, %v378_v17  ;;  %813 = vmatprep.subr.bf16.mxu0 %v914_v39  ;;  %852 = vmatpush3.bf16.msra.mxu1 %v873_v27 }
 0x156   : > { %v383_v21 = vpack.c.bf16 %v380_v18, %v380_v18  ;;  %845 = vmatprep.subr.bf16.mxu1 %v914_v39 }
 0x158   : > { %814 = vmatpush3.bf16.msra.mxu0 %v869_v23  ;;  %v749_v23 = vld [vmem:[%s1106_s6] ss:$0 sm:$0xff] }
 0x159   : > { %815 = vmatprep.subr.bf16.mxu0 %v914_v39  ;;  %853 = vmatpush3.bf16.msra.mxu1 %v874_v28 }
 0x15a   : > { %846 = vmatprep.subr.bf16.mxu1 %v914_v39 }
 0x15b   : > { %804 = vmatmul.mubr.msk.bf16.gmra.mrb[4].mxu0 %vm292_vm0, %v382_v19 }
 0x15c   : > { %807 = vmatprep.mubr.msk.bf16.mxu0 %vm915_vm1, %v914_v39  ;;  %816 = vmatpush3.bf16.msra.mxu0 %v870_v24 }
 0x15d   : > { %817 = vmatprep.subr.bf16.mxu0 %v914_v39  ;;  %854 = vmatpush3.bf16.msra.mxu1 %v875_v29 }
 0x160   : > { %818 = vmatpush3.bf16.msra.mxu0 %v871_v25 }
 0x161   : > { %819 = vmatprep.subr.bf16.mxu0 %v914_v39 }
 0x163   : > { %808 = vmatmul.mubr.msk.bf16.gmra.mrb[8].mxu0 %vm292_vm0, %v383_v21 }
 0x164   : > { %827 = vmatprep.mubr.msk.bf16.mxu0 %vm915_vm1, %v914_v39  ;;  %820 = vmatpush3.bf16.msra.mxu0 %v872_v26 }
 0x165   : > { %821 = vmatprep.subr.bf16.mxu0 %v914_v39 }
 0x168   : > { %822 = vmatpush3.bf16.msra.mxu0 %v873_v27 }
 0x169   : > { %823 = vmatprep.subr.bf16.mxu0 %v914_v39 }
 0x16c   : > { %824 = vmatpush3.bf16.msra.mxu0 %v874_v28 }
 0x16d   : > { %825 = vmatprep.subr.bf16.mxu0 %v914_v39 }
 0x170   : > { %826 = vmatpush3.bf16.msra.mxu0 %v875_v29 }
 0x226   : > { %v450_v31 = vpop.f32.mrb[0].mxu0 }
 0x227   : > { %v451_v32 = vadd.f32 %v738_v30, %v450_v31  ;;  %v801_v33 = vpop.f32.mrb[1].mxu0 }
 0x228   : > { %v453_v34 = vpop.f32.mrb[2].mxu0 }
 0x229   : > { %v744_v35 = vmul.f32 -1.702, %v451_v32  ;;  %v454_v36 = vadd.f32 %v738_v30, %v453_v34  ;;  %v802_v37 = vpop.f32.mrb[3].mxu0 }
 0x22b   : > { %v482_v38 = vmul.f32 1.442695, %v744_v35  ;;  %v745_v40 = vmul.f32 -1.702, %v454_v36 }
 0x22d   : > { %886 = vpow2.f32 %v482_v38  ;;  %v484_v41 = vmul.f32 1.442695, %v745_v40 }
 0x22e   : > { %v458_v42 = vpop.f32.mrb[4].mxu0 }
 0x22f   : > { %888 = vpow2.f32 %v484_v41  ;;  %v459_v43 = vadd.f32 %v738_v30, %v458_v42  ;;  %v805_v44 = vpop.f32.mrb[5].mxu0 }
 0x230   : > { %v461_v45 = vpop.f32.mrb[6].mxu0 }
 0x231   : > { %v746_v46 = vmul.f32 -1.702, %v459_v43  ;;  %v462_v47 = vadd.f32 %v738_v30, %v461_v45  ;;  %v806_v48 = vpop.f32.mrb[7].mxu0 }
 0x233   : > { %v486_v49 = vmul.f32 1.442695, %v746_v46  ;;  %v747_v50 = vmul.f32 -1.702, %v462_v47 }
 0x235   : > { %890 = vpow2.f32 %v486_v49  ;;  %v488_v51 = vmul.f32 1.442695, %v747_v50 }
 0x236   : > { %v466_v52 = vpop.f32.mrb[8].mxu0 }
 0x237   : > { %v887_v53 = vpop.eup %886  ;;  %892 = vpow2.f32 %v488_v51  ;;  %v467_v54 = vadd.f32 %v738_v30, %v466_v52  ;;  %v809_v55 = vpop.f32.mrb[9].mxu0 }
 0x238   : > { %v492_v56 = vadd.f32 1.0, %v887_v53  ;;  %v469_v57 = vpop.f32.mrb[10].mxu0 }
 0x239   : > { %v889_v58 = vpop.eup %888  ;;  %v748_v59 = vmul.f32 -1.702, %v467_v54  ;;  %v810_v60 = vpop.f32.mrb[11].mxu0 }
 0x23a   : > { %894 = vrcp.f32 %v492_v56  ;;  %v493_v61 = vadd.f32 1.0, %v889_v58 }
 0x23b   : > { %v490_v62 = vmul.f32 1.442695, %v748_v59 }
 0x23c   : > { %896 = vrcp.f32 %v493_v61 }
 0x23d   : > { %898 = vpow2.f32 %v490_v62 }
 0x23f   : > { %v891_v63 = vpop.eup %890 }
 0x240   : > { %v494_v0 = vadd.f32 1.0, %v891_v63 }
 0x241   : > { %v893_v1 = vpop.eup %892 }
 0x242   : > { %900 = vrcp.f32 %v494_v0  ;;  %v495_v6 = vadd.f32 1.0, %v893_v1 }
 0x244   : > { %v895_v7 = vpop.eup %894  ;;  %902 = vrcp.f32 %v495_v6 }
 0x245   : > { %v507_v10 = vmul.f32 %v895_v7, %v451_v32 }
 0x246   : > { %v897_v8 = vpop.eup %896 }
 0x247   : > { %v899_v9 = vpop.eup %898  ;;  %v508_v12 = vmul.f32 %v897_v8, %v454_v36 }
 0x248   : > { %v496_v13 = vadd.f32 1.0, %v899_v9 }
 0x249   : > { %v512_v14 = vpack.c.bf16 %v508_v12, %v507_v10 }
 0x24a   : > { %904 = vrcp.f32 %v496_v13 }
 0x24b   : > { %828 = vmatmul.mubr.bf16.vlgmr.msra.gmra.mrb[12].mxu0 %v512_v14 }
 0x24c   : > { %v901_v15 = vpop.eup %900 }
 0x24d   : > { %v509_v17 = vmul.f32 %v901_v15, %v459_v43 }
 0x24e   : > { %v903_v16 = vpop.eup %902 }
 0x24f   : > { %v510_v19 = vmul.f32 %v903_v16, %v462_v47 }
 0x251   : > { %v513_v20 = vpack.c.bf16 %v510_v19, %v509_v17 }
 0x253   : > { %832 = vmatmul.mubr.bf16.vlgmr.msra.gmra.mrb[0].mxu1 %v513_v20 }
 0x254   : > { %v905_v18 = vpop.eup %904  ;;  %835 = vmatprep.mubr.msk.bf16.mxu1 %vm915_vm1, %v914_v39 }
 0x255   : > { %v511_v21 = vmul.f32 %v905_v18, %v467_v54 }
 0x257   : > { %v514_v22 = vpack.c.bf16 %v511_v21, %v511_v21 }
 0x25b   : > { %836 = vmatmul.mubr.bf16.gmra.mrb[4].mxu1 %v514_v22 }
 0x31e   : > { %v620_v24 = vpop.f32.mrb[12].mxu0 }
 0x31f   : > { %v621_v25 = vadd.f32 %v749_v23, %v620_v24  ;;  %v829_v26 = vpop.f32.mrb[13].mxu0 }
 0x320   : > { %v623_v27 = vpop.f32.mrb[14].mxu0 }
 0x321   : > { %v642_v28 = vadd.f32 %v972_v2, %v621_v25  ;;  %v624_v29 = vadd.f32 %v749_v23, %v623_v27  ;;  %v830_v30 = vpop.f32.mrb[15].mxu0 }
 0x323   : > { %v765_v39 = vpack.c.bf16 %v642_v28, %v642_v28  ;;  %v643_v31 = vadd.f32 %v976_v4, %v624_v29 }
 0x325   : > { %669 = vst.msk [vmem:[%s278_s17] sm:$0xf] %vm668_vm2, %v765_v39  ;;  %v766_v32 = vpack.c.bf16 %v643_v31, %v643_v31 }
 0x326   : > { %v628_v33 = vpop.f32.mrb[0].mxu1 }
 0x327   : > { %670 = vst.msk [vmem:[%s278_s17 + $0x4] sm:$0xf] %vm668_vm2, %v766_v32  ;;  %v629_v34 = vadd.f32 %v749_v23, %v628_v33  ;;  %v833_v35 = vpop.f32.mrb[1].mxu1 }
 0x328   : > { %v631_v2 = vpop.f32.mrb[2].mxu1 }
 0x329   : > { %v644_v36 = vadd.f32 %v974_v3, %v629_v34  ;;  %v632_v37 = vadd.f32 %v749_v23, %v631_v2  ;;  %v834_v38 = vpop.f32.mrb[3].mxu1 }
 0x32b   : > { %v767_v40 = vpack.c.bf16 %v644_v36, %v644_v36  ;;  %v645_v41 = vadd.f32 %v978_v5, %v632_v37 }
 0x32d   : > { %671 = vst.msk [vmem:[%s278_s17 + $0x8] sm:$0xf] %vm668_vm2, %v767_v40  ;;  %v768_v42 = vpack.c.bf16 %v645_v41, %v645_v41 }
 0x32e   : > { %v636_v4 = vpop.f32.mrb[4].mxu1 }
 0x32f   : > { %672 = vst.msk [vmem:[%s278_s17 + $0xc] sm:$0xf] %vm668_vm2, %v768_v42  ;;  %v637_v43 = vadd.f32 %v749_v23, %v636_v4  ;;  %v837_v44 = vpop.f32.mrb[5].mxu1 }
 0x330   : > { %v639_v45 = vpop.f32.mrb[6].mxu1 }
 0x331   : > { %v646_v46 = vadd.f32 %v637_v43, %v988_v11  ;;  %v838_v47 = vpop.f32.mrb[7].mxu1 }
 0x333   : > { %v769_v48 = vpack.c.bf16 %v646_v46, %v646_v46 }
 0x335   : > { %673 = vst.msk [vmem:[%s278_s17 + $0x10] sm:$0xf] %vm668_vm2, %v769_v48 }
 0x336 PF: > { %s17_s24 = sadd.s32 1, %s912_s24  }
 0x337   : > { %p14_p4 = scmp.ge.s32.totalorder %s17_s24, 4  }
 0x339   :  { %16 = sbr.rel (!%p14_p4) target bundleno = 1 (0x1), region = 78 }

// kernel: text_encoder_forward.9
= control target key start
LH: loop header
LB: loop body
LE: loop exit
PB: predicated region body
PF: predicated region fallthrough
CT: control target
= control target key end

     0   :  { %vm23_vm0 = vcmask 254976   ;;  %s231_s0 = inlined_call_operand.vmem [shape: bf16[2,32], index: 0, kind: input, shape index: {}]   ;;  %s232_s1 = inlined_call_operand.vmem [shape: f32[1,32], index: 1, kind: input, shape index: {}]   ;;  %s233_s2 = inlined_call_operand.vmem [shape: f32[1,32], index: 2, kind: input, shape index: {}]   ;;  %s234_s3 = inlined_call_operand.vmem [shape: bf16[32,16], index: 3, kind: input, shape index: {}]   ;;  %s235_s4 = inlined_call_operand.hbm [shape: f32[2,16], index: 4, kind: output, shape index: {}]  }
   0x1   :  { %v19_v0 = vld [vmem:[%s231_s0] sm:$0x1] }
   0x2   :  { %v20_v1 = vunpack.c.l.bf16 %v19_v0 }
   0x3   :  { %9 = vsyncpa [#allocation3], 0  ;;  %v148_v8 = vld [vmem:[%s234_s3] sm:$0xff]   ;;  %v176_v9 = vmov 0.0   ;;  %v149_v10 = vld [vmem:[%s234_s3 + $0x8] sm:$0xff]   ;;  %vm177_vm1 = vmmov 0  }
   0x4   :  { %v24_v2 = vsel %vm23_vm0, %v20_v1, 0.0  ;;  %137 = vmatprep.subr.bf16.mxu0 %v176_v9  ;;  %141 = vmatprep.mubr.msk.bf16.mxu0 %vm177_vm1, %v176_v9  ;;  %v129_v15 = vld [vmem:[%s232_s1] ss:$0 sm:$0xff]  ;;  %vm69_vm2 = vcmask 261120   ;;  %s178_s3 = smov [#allocation2]   ;;  %vm113_vm3 = vcmask 123904  }
   0x5   :  { %25 = vadd.xlane.f32.xlu0 %v24_v2  ;;  %138 = vmatpush3.bf16.msra.mxu0 %v148_v8  ;;  %v130_v17 = vld [vmem:[%s233_s2] ss:$0 sm:$0xff]  ;;  %s121_s24 = sshll.u32 %s178_s3, 4  ;;  %s122_s24 = int_to_ptr.vmem [resolvable:$true] %s121_s24 }
   0x6   :  { %139 = vmatprep.subr.bf16.mxu0 %v176_v9  ;;  %s152_s25 = scalar_lea.vmem %s122_s24, 32  ;;  %p157_p1 = scmp.lt.s32.totalorder %s122_s24, %s122_s24 }
   0x7   :  { %p153_p0 = scmp.ne.s32.totalorder %s122_s24, %s152_s25  ;;  %p158_p2 = scmp.lt.s32.totalorder %s152_s25, %s152_s25 }
   0x9   :  { %140 = vmatpush3.bf16.msra.mxu0 %v149_v10  ;;  %p159_p3 = por %p158_p2, %p157_p1 }
   0xb   :  { %p160_p4 = pnand %p159_p3, %p153_p0 }
  0x92   :  { %v26_v3 = vpop.xlane.xlu0 %25 }
  0x93   :  { %v28_v4 = vmul.f32 0.03125, %v26_v3 }
  0x95   :  { %v29_v5 = vsub.f32 %v20_v1, %v28_v4 }
  0x97   :  { %v30_v6 = vmul.f32 %v29_v5, %v29_v5 }
  0x99   :  { %v31_v7 = vsel %vm23_vm0, %v30_v6, 0.0 }
  0x9a   :  { %32 = vadd.xlane.f32.xlu0 %v31_v7 }
 0x127   :  { %v33_v11 = vpop.xlane.xlu0 %32 }
 0x128   :  { %v34_v12 = vmul.f32 0.03125, %v33_v11 }
 0x12a   :  { %v35_v13 = vadd.f32 1e-05, %v34_v12 }
 0x12c   :  { %150 = vrsqrt.f32 %v35_v13 }
 0x136   :  { %v151_v14 = vpop.eup %150 }
 0x137   :  { %v37_v16 = vmul.f32 %v151_v14, %v29_v5 }
 0x139   :  { %v44_v18 = vmul.f32 %v129_v15, %v37_v16 }
 0x13b   :  { %v51_v19 = vadd.f32 %v130_v17, %v44_v18 }
 0x13d   :  { %v52_v20 = vpack.c.bf16 %v51_v19, %v51_v19 }
 0x13f   :  { %142 = vmatmul.mubr.msk.bf16.vlgmr.msra.gmra.mrb[0].mxu0 %vm69_vm2, %v52_v20 }
 0x212   :  { %v107_v21 = vpop.f32.mrb[0].mxu0 }
 0x213   :  { %114 = vst.msk [vmem:[#allocation2] sm:$0x3] %vm113_vm3, %v107_v21  ;;  %v143_v22 = vpop.f32.mrb[1].mxu0 }
 0x214   :  { %v110_v23 = vpop.f32.mrb[2].mxu0 }
 0x215   :  { %163 = shalt.err (!%p160_p4)
}
 0x216   :  { %s164_s26 = scalar_lea.hbm %s235_s4, 32 }
 0x217   :  { %p165_p5 = scmp.ne.s32.totalorder %s235_s4, %s164_s26  ;;  %p168_p6 = scmp.lt.u32.totalorder %s164_s26, %s235_s4 }
 0x219   :  { %p170_p7 = pnand %p168_p6, %p165_p5 }
 0x21b   :  { %173 = shalt.err (!%p170_p7)
}
 0x21c   :  { %124 = dma.vmem_to_hbm [thread:$0]  %s122_s24, 32, %s235_s4, [#allocation3]   ;;  %v144_v24 = vpop.f32.mrb[3].mxu0 }
 0x21d   :  { %174 = dma.done.wait [#allocation3], 32  }
 0x21e   :  { %175 = vsyncadd [#allocation3], 4294967264 }
 0x21f   :  { %128 = vsyncpa [#allocation3], 1 }

// kernel: text_encoder_forward.5
= control target key start
LH: loop header
LB: loop body
LE: loop exit
PB: predicated region body
PF: predicated region fallthrough
CT: control target
= control target key end

     0   :  { %s2170_s27 = smov 0   ;;  %s2691_s0 = inlined_call_operand.vmem [shape: bf16[2,40,32], index: 0, kind: input, shape index: {}, may-alias: {0,8}]   ;;  %s2692_s1 = inlined_call_operand.vmem [shape: f32[1,40,32], index: 1, kind: input, shape index: {}]   ;;  %s2693_s2 = inlined_call_operand.vmem [shape: f32[1,32], index: 2, kind: input, shape index: {}]   ;;  %s2694_s3 = inlined_call_operand.vmem [shape: f32[1,32], index: 3, kind: input, shape index: {}]   ;;  %s2695_s4 = inlined_call_operand.vmem [shape: bf16[32,96], index: 4, kind: input, shape index: {}]   ;;  %s2696_s5 = inlined_call_operand.vmem [shape: f32[1,96], index: 5, kind: input, shape index: {}]   ;;  %s2697_s6 = inlined_call_operand.vmem [shape: bf16[32,32], index: 6, kind: input, shape index: {}]   ;;  %s2698_s7 = inlined_call_operand.vmem [shape: f32[1,32], index: 7, kind: input, shape index: {}]   ;;  %s2699_s8 = inlined_call_operand.vmem [shape: bf16[2,40,32], index: 8, kind: output, shape index: {}, may-alias: {0,8}]  }
   0x1 LB: > { %s1678_s28 = sadd.s32 4294967295, %s2107_s27   ;;  %p1682_p0 = scmp.ge.s32.totalorder %s2107_s27, 1  ;;  %s2107_s27 = sphi %s2170_s27, %s18_s27  }
   0x2   : > { %p262_p1 = scmp.lt.s32.totalorder %s2107_s27, 3 }
   0x4   : > { %p263_p2 = pnand %p1682_p0, %p262_p1 }
   0x5   : > { %p296_p3 = scmp.lt.s32.totalorder (!%p263_p2), %s1678_s28, 1  ;;  %v317_v0 = vld [vmem:[%s2692_s1] sm:$0xff] (!%p263_p2)  ;;  %v319_v1 = vld [vmem:[%s2692_s1 + $0x10] sm:$0xff] (!%p263_p2)  ;;  %v318_v2 = vld [vmem:[%s2692_s1 + $0x8] sm:$0xff] (!%p263_p2)  ;;  %vm329_vm0 = vcmask (!%p263_p2), 261120   ;;  %v2109_v49 = vmov (!%p263_p2), 0.0  }
   0x6   : > { %266 = sbr.rel (%p263_p2) target bundleno = 1951 (0x79f), region = 52  ;;  %v320_v3 = vld [vmem:[%s2692_s1 + $0x18] sm:$0xff] (!%p263_p2)  ;;  %v321_v16 = vld [vmem:[%s2692_s1 + $0x20] sm:$0xff] (!%p263_p2)  ;;  %1802 = vmatprep.subr.bf16.mxu0 (!%p263_p2), %v2109_v49  ;;  %1818 = vmatprep.subr.bf16.mxu1 (!%p263_p2), %v2109_v49  ;;  %v2008_v50 = vld [vmem:[%s2695_s4 + $0x8] sm:$0xff] (!%p263_p2)   ;;  %vm2110_vm1 = vmmov (!%p263_p2), 0   ;;  %s2112_s13 = smov (!%p263_p2), 88  }
   0x7   : > { %v2007_v48 = vld [vmem:[%s2695_s4] sm:$0xff] (!%p263_p2)   ;;  %1806 = vmatprep.mubr.msk.bf16.mxu0 (!%p263_p2), %vm2110_vm1, %v2109_v49  ;;  %1824 = vmatprep.mubr.msk.bf16.mxu1 (!%p263_p2), %vm2110_vm1, %v2109_v49  ;;  %s2113_s14 = smov (!%p263_p2), 120   ;;  %s2114_s15 = smov (!%p263_p2), 112   ;;  %vm521_vm2 = vcmask (!%p263_p2), 64512   ;;  %vm677_vm3 = vcmask (!%p263_p2), 1043456   ;;  %vm601_vm4 = vcmask (!%p263_p2), 326656  }
   0x8   : > { %1803 = vmatpush3.bf16.msra.mxu0 (!%p263_p2), %v2007_v48  ;;  %s2115_s16 = smov (!%p263_p2), 80   ;;  %s2116_s17 = smov (!%p263_p2), 104   ;;  %vm987_vm5 = vcmask (!%p263_p2), 130112   ;;  %vm1238_vm6 = vcmask (!%p263_p2), 195712   ;;  %vm1489_vm7 = vcmask (!%p263_p2), 261312   ;;  %vm1617_vm8 = vcmask (!%p263_p2), 257024  }
   0x9   : > { %1804 = vmatprep.subr.bf16.mxu0 (!%p263_p2), %v2109_v49  ;;  %s2117_s18 = smov (!%p263_p2), 72   ;;  %s2118_s19 = smov (!%p263_p2), 64  }
   0xa   : > { %s2119_s20 = smov (!%p263_p2), 56   ;;  %s2120_s21 = smov (!%p263_p2), 48  }
   0xb   : > { %s2121_s22 = smov (!%p263_p2), 40   ;;  %s2122_s23 = smov (!%p263_p2), 8  }
   0xc   : > { %1805 = vmatpush3.bf16.msra.mxu0 (!%p263_p2), %v2008_v50  ;;  %s2123_s24 = smov (!%p263_p2), 16   ;;  %s2124_s30 = smov (!%p263_p2), 24  }
   0xd   : > { %s2701_s28 = smov (!%p296_p3, %s1678_s28), 1  ;;  %1836 = vmatprep.subr.bf16.mxu0 %v2109_v49 }
   0xe   : > { %s1982_s29 = smul.u32 20, %s2701_s28 }
  0x10   : > { %s300_s12 = scalar_lea.vmem %s2691_s0, %s1982_s29 }
  0x11   : > { %v1736_v4 = vld [vmem:[%s300_s12] sm:$0xff]   ;;  %v1743_v5 = vld [vmem:[%s300_s12 + $0x8] sm:$0xff]   ;;  %v311_v6 = vld [vmem:[%s300_s12 + $0x10] sm:$0xf]  ;;  %s2111_s12 = smov 96  }
  0x12   : > { %v1737_v7 = vunpack.c.l.bf16 %v1736_v4  ;;  %v1741_v8 = vunpack.c.l.bf16 %v1743_v5  ;;  %v1738_v9 = vunpack.c.h.bf16 %v1736_v4  ;;  %v1742_v10 = vunpack.c.h.bf16 %v1743_v5  ;;  %v1685_v4 = vld [vmem:[%s2693_s2] ss:$0 sm:$0xff] }
  0x13   : > { %v316_v11 = vunpack.c.l.bf16 %v311_v6 }
  0x14   : > { %v2198_v12 = vadd.f32 %v1737_v7, %v317_v0  ;;  %v2200_v13 = vadd.f32 %v1741_v8, %v319_v1  ;;  %v2202_v14 = vadd.f32 %v1738_v9, %v318_v2  ;;  %v2204_v15 = vadd.f32 %v1742_v10, %v320_v3  ;;  %v1686_v9 = vld [vmem:[%s2694_s3] ss:$0 sm:$0xff] }
  0x15   : > { %v2217_v21 = vadd.f32 %v321_v16, %v316_v11 }
  0x16   : > { %v330_v17 = vsel %vm329_vm0, %v2198_v12, 0.0  ;;  %v336_v18 = vsel %vm329_vm0, %v2200_v13, 0.0  ;;  %v333_v19 = vsel %vm329_vm0, %v2202_v14, 0.0  ;;  %v339_v20 = vsel %vm329_vm0, %v2204_v15, 0.0 }
  0x17   : > { %331 = vadd.xlane.f32.xlu0 %v330_v17  ;;  %337 = vadd.xlane.f32.xlu1 %v336_v18  ;;  %v342_v22 = vsel %vm329_vm0, %v2217_v21, 0.0 }
  0x1b   : > { %334 = vadd.xlane.f32.xlu0 %v333_v19  ;;  %340 = vadd.xlane.f32.xlu1 %v339_v20 }
  0x1f   : > { %343 = vadd.xlane.f32.xlu0 %v342_v22 }
  0xa4   : > { %v332_v23 = vpop.xlane.xlu0 %331  ;;  %v338_v24 = vpop.xlane.xlu1 %337 }
  0xa5   : > { %v346_v25 = vmul.f32 0.03125, %v332_v23  ;;  %v348_v26 = vmul.f32 0.03125, %v338_v24 }
  0xa7   : > { %v351_v27 = vsub.f32 %v2198_v12, %v346_v25  ;;  %v2223_v28 = vsub.f32 %v2200_v13, %v348_v26 }
  0xa8   : > { %v335_v29 = vpop.xlane.xlu0 %334  ;;  %v341_v30 = vpop.xlane.xlu1 %340 }
  0xa9   : > { %v347_v31 = vmul.f32 0.03125, %v335_v29  ;;  %v349_v32 = vmul.f32 0.03125, %v341_v30  ;;  %v356_v33 = vmul.f32 %v351_v27, %v351_v27  ;;  %v358_v34 = vmul.f32 %v2223_v28, %v2223_v28 }
  0xab   : > { %v352_v35 = vsub.f32 %v2202_v14, %v347_v31  ;;  %v354_v36 = vsub.f32 %v2204_v15, %v349_v32  ;;  %v361_v37 = vsel %vm329_vm0, %v356_v33, 0.0  ;;  %v367_v40 = vsel %vm329_vm0, %v358_v34, 0.0  ;;  %v1687_v32 = vld [vmem:[%s2696_s5] ss:$0 sm:$0xff] }
  0xac   : > { %362 = vadd.xlane.f32.xlu1 %v361_v37  ;;  %v344_v38 = vpop.xlane.xlu0 %343 }
  0xad   : > { %v350_v39 = vmul.f32 0.03125, %v344_v38  ;;  %v357_v41 = vmul.f32 %v352_v35, %v352_v35  ;;  %v359_v42 = vmul.f32 %v354_v36, %v354_v36 }
  0xaf   : > { %v355_v43 = vsub.f32 %v2217_v21, %v350_v39  ;;  %v364_v44 = vsel %vm329_vm0, %v357_v41, 0.0  ;;  %v370_v45 = vsel %vm329_vm0, %v359_v42, 0.0 }
  0xb0   : > { %368 = vadd.xlane.f32.xlu1 %v367_v40  ;;  %365 = vadd.xlane.f32.xlu0 %v364_v44 }
  0xb1   : > { %v360_v46 = vmul.f32 %v355_v43, %v355_v43 }
  0xb3   : > { %v373_v47 = vsel %vm329_vm0, %v360_v46, 0.0 }
  0xb4   : > { %371 = vadd.xlane.f32.xlu0 %v370_v45  ;;  %374 = vadd.xlane.f32.xlu1 %v373_v47 }
 0x139   : > { %v363_v51 = vpop.xlane.xlu1 %362 }
 0x13a   : > { %v376_v52 = vmul.f32 0.03125, %v363_v51 }
 0x13c   : > { %v381_v53 = vadd.f32 1e-05, %v376_v52 }
 0x13d   : > { %v369_v54 = vpop.xlane.xlu1 %368  ;;  %v366_v55 = vpop.xlane.xlu0 %365 }
 0x13e   : > { %2011 = vrsqrt.f32 %v381_v53  ;;  %v378_v56 = vmul.f32 0.03125, %v369_v54  ;;  %v377_v57 = vmul.f32 0.03125, %v366_v55 }
 0x140   : > { %v382_v58 = vadd.f32 1e-05, %v377_v57  ;;  %v383_v59 = vadd.f32 1e-05, %v378_v56 }
 0x141   : > { %v375_v60 = vpop.xlane.xlu1 %374  ;;  %v372_v61 = vpop.xlane.xlu0 %371 }
 0x142   : > { %v379_v62 = vmul.f32 0.03125, %v372_v61  ;;  %2013 = vrsqrt.f32 %v382_v58  ;;  %v380_v63 = vmul.f32 0.03125, %v375_v60 }
 0x143   : > { %2015 = vrsqrt.f32 %v383_v59 }
 0x144   : > { %v384_v0 = vadd.f32 1e-05, %v379_v62  ;;  %v385_v1 = vadd.f32 1e-05, %v380_v63 }
 0x146   : > { %2017 = vrsqrt.f32 %v384_v0 }
 0x147   : > { %2019 = vrsqrt.f32 %v385_v1 }
 0x148   : > { %v2012_v2 = vpop.eup %2011 }
 0x149   : > { %v391_v3 = vmul.f32 %v2012_v2, %v351_v27 }
 0x14b   : > { %v402_v7 = vmul.f32 %v1685_v4, %v391_v3 }
 0x14c   : > { %v2014_v5 = vpop.eup %2013 }
 0x14d   : > { %v392_v6 = vmul.f32 %v2014_v5, %v352_v35  ;;  %v2016_v8 = vpop.eup %2015  ;;  %v413_v17 = vadd.f32 %v1686_v9, %v402_v7 }
 0x14e   : > { %v393_v19 = vmul.f32 %v2016_v8, %v2223_v28 }
 0x14f   : > { %v403_v10 = vmul.f32 %v1685_v4, %v392_v6 }
 0x150   : > { %v2018_v11 = vpop.eup %2017  ;;  %v404_v24 = vmul.f32 %v1685_v4, %v393_v19 }
 0x151   : > { %v394_v16 = vmul.f32 %v2018_v11, %v354_v36  ;;  %v414_v18 = vadd.f32 %v1686_v9, %v403_v10  ;;  %v2020_v23 = vpop.eup %2019 }
 0x152   : > { %v395_v26 = vmul.f32 %v2020_v23, %v355_v43  ;;  %v415_v27 = vadd.f32 %v1686_v9, %v404_v24 }
 0x153   : > { %v418_v20 = vpack.c.bf16 %v414_v18, %v413_v17  ;;  %v405_v22 = vmul.f32 %v1685_v4, %v394_v16 }
 0x154   : > { %v406_v30 = vmul.f32 %v1685_v4, %v395_v26 }
 0x155   : > { %1807 = vmatmul.mubr.msk.bf16.vlgmr.msra.gmra.mrb[0].mxu0 %vm329_vm0, %v418_v20  ;;  %v416_v25 = vadd.f32 %v1686_v9, %v405_v22 }
 0x156   : > { %1810 = vmatprep.mubr.msk.bf16.mxu0 %vm2110_vm1, %v2109_v49  ;;  %v417_v28 = vadd.f32 %v1686_v9, %v406_v30 }
 0x157   : > { %v419_v29 = vpack.c.bf16 %v416_v25, %v415_v27 }
 0x158   : > { %v420_v31 = vpack.c.bf16 %v417_v28, %v417_v28 }
 0x15d   : > { %1811 = vmatmul.mubr.msk.bf16.gmra.mrb[4].mxu0 %vm329_vm0, %v419_v29 }
 0x15e   : > { %1814 = vmatprep.mubr.msk.bf16.mxu0 %vm2110_vm1, %v2109_v49 }
 0x165   : > { %1815 = vmatmul.mubr.msk.bf16.gmra.mrb[8].mxu0 %vm329_vm0, %v420_v31 }
 0x166   : > { %1842 = vmatprep.mubr.msk.bf16.mxu0 %vm2110_vm1, %v2109_v49 }
 0x228   : > { %v487_v33 = vpop.f32.mrb[0].mxu0 }
 0x229   : > { %v1808_v34 = vpop.f32.mrb[1].mxu0  ;;  %v488_v36 = vadd.f32 %v1687_v32, %v487_v33 }
 0x22a   : > { %v490_v35 = vpop.f32.mrb[2].mxu0 }
 0x22b   : > { %v491_v37 = vadd.f32 %v1687_v32, %v490_v35  ;;  %v1809_v38 = vpop.f32.mrb[3].mxu0 }
 0x22d   : > { %v2268_v39 = vpack.c.bf16 %v491_v37, %v488_v36 }
 0x22f   : > { %515 = vrot.lane.b32.xlu0 %v2268_v39, %s2111_s12 }
 0x230   : > { %v495_v40 = vpop.f32.mrb[4].mxu0 }
 0x231   : > { %v1812_v41 = vpop.f32.mrb[5].mxu0  ;;  %v496_v43 = vadd.f32 %v1687_v32, %v495_v40 }
 0x232   : > { %v498_v42 = vpop.f32.mrb[6].mxu0 }
 0x233   : > { %v499_v44 = vadd.f32 %v1687_v32, %v498_v42  ;;  %v1813_v45 = vpop.f32.mrb[7].mxu0 }
 0x235   : > { %v2271_v46 = vpack.c.bf16 %v499_v44, %v496_v43 }
 0x237   : > { %750 = vrot.lane.b32.xlu0 %v2271_v46, %s2112_s13  ;;  %517 = vrot.lane.b32.xlu1 %v2271_v46, %s2111_s12 }
 0x238   : > { %v503_v47 = vpop.f32.mrb[8].mxu0 }
 0x239   : > { %v504_v48 = vadd.f32 %v1687_v32, %v503_v47  ;;  %v1816_v50 = vpop.f32.mrb[9].mxu0 }
 0x23a   : > { %v506_v51 = vpop.f32.mrb[10].mxu0 }
 0x23b   : > { %v2275_v52 = vpack.c.bf16 %v504_v48, %v504_v48  ;;  %742 = vrot.lane.b32.xlu0 %v2268_v39, %s2113_s14  ;;  %v1817_v53 = vpop.f32.mrb[11].mxu0 }
 0x23d   : > { %519 = vrot.lane.b32.xlu1 %v2275_v52, %s2111_s12 }
 0x23f   : > { %744 = vrot.lane.b32.xlu0 %v2271_v46, %s2113_s14 }
 0x241   : > { %748 = vrot.lane.b32.xlu1 %v2268_v39, %s2112_s13 }
 0x243   : > { %746 = vrot.lane.b32.xlu0 %v2275_v52, %s2113_s14 }
 0x245   : > { %752 = vrot.lane.b32.xlu1 %v2275_v52, %s2112_s13 }
 0x247   : > { %993 = vrot.lane.b32.xlu0 %v2268_v39, %s2114_s15 }
 0x249   : > { %999 = vrot.lane.b32.xlu1 %v2268_v39, %s2115_s16 }
 0x24b   : > { %995 = vrot.lane.b32.xlu0 %v2271_v46, %s2114_s15 }
 0x24d   : > { %1001 = vrot.lane.b32.xlu1 %v2271_v46, %s2115_s16 }
 0x24f   : > { %997 = vrot.lane.b32.xlu0 %v2275_v52, %s2114_s15  ;;  %s305_s15 = scalar_lea.vmem %s2699_s8, %s1982_s29 }
 0x251   : > { %1003 = vrot.lane.b32.xlu1 %v2275_v52, %s2115_s16 }
 0x253   : > { %1244 = vrot.lane.b32.xlu0 %v2268_v39, %s2116_s17 }
 0x255   : > { %1250 = vrot.lane.b32.xlu1 %v2268_v39, %s2117_s18 }
 0x257   : > { %1248 = vrot.lane.b32.xlu0 %v2275_v52, %s2116_s17 }
 0x259   : > { %1252 = vrot.lane.b32.xlu1 %v2271_v46, %s2117_s18 }
 0x25b   : > { %660 = vrot.lane.b32.xlu0 %v2268_v39, %s2118_s19 }
 0x25d   : > { %1254 = vrot.lane.b32.xlu1 %v2275_v52, %s2117_s18 }
 0x25f   : > { %664 = vrot.lane.b32.xlu0 %v2275_v52, %s2118_s19 }
 0x261   : > { %1246 = vrot.lane.b32.xlu1 %v2271_v46, %s2116_s17 }
 0x263   : > { %893 = vrot.lane.b32.xlu0 %v2271_v46, %s2119_s20 }
 0x265   : > { %662 = vrot.lane.b32.xlu1 %v2271_v46, %s2118_s19 }
 0x2a1   : > { %v516_v54 = vpop.permute.xlu0 %515 }
 0x2a2   : > { %v532_v55 = vsel %vm521_vm2, %v516_v54, 0 }
 0x2a3   : > { %1819 = vmatpush3.bf16.xpose.msra.mxu1 %v532_v55 }
 0x2a4   : > { %1820 = vmatprep.subr.bf16.mxu1 %v2109_v49 }
 0x2a9   : > { %v518_v56 = vpop.permute.xlu1 %517  ;;  %v751_v57 = vpop.permute.xlu0 %750 }
 0x2aa   : > { %v535_v58 = vsel %vm521_vm2, %v518_v56, 0  ;;  %v767_v8 = vsel %vm521_vm2, %v751_v57, 0 }
 0x2ab   : > { %1821 = vmatpush3.bf16.xpose.msra.mxu1 %v535_v58 }
 0x2ac   : > { %1822 = vmatprep.subr.bf16.mxu1 %v2109_v49 }
 0x2ad   : > { %v743_v59 = vpop.permute.xlu0 %742 }
 0x2af   : > { %v520_v60 = vpop.permute.xlu1 %519 }
 0x2b0   : > { %v538_v62 = vsel %vm521_vm2, %v520_v60, 0 }
 0x2b1   : > { %v745_v61 = vpop.permute.xlu0 %744 }
 0x2b3   : > { %v749_v63 = vpop.permute.xlu1 %748  ;;  %1823 = vmatpush3.bf16.xpose.msra.mxu1 %v538_v62 }
 0x2b4   : > { %1854 = vmatprep.subr.bf16.mxu1 %v2109_v49  ;;  %v764_v3 = vsel %vm521_vm2, %v749_v63, 0 }
 0x2b5   : > { %v747_v0 = vpop.permute.xlu0 %746 }
 0x2b7   : > { %v753_v1 = vpop.permute.xlu1 %752 }
 0x2b8   : > { %v770_v17 = vsel %vm521_vm2, %v753_v1, 0 }
 0x2b9   : > { %v994_v2 = vpop.permute.xlu0 %993 }
 0x2ba   : > { %1825 = vmatmul.mubr.msk.bf16.vlgmr.msra.gmra.mrb[0].mxu1 %vm521_vm2, %v2268_v39 }
 0x2bb   : > { %v1000_v4 = vpop.permute.xlu1 %999  ;;  %1855 = vmatpush3.bf16.xpose.msra.mxu1 %v764_v3  ;;  %1828 = vmatprep.mubr.msk.bf16.mxu1 %vm2110_vm1, %v2109_v49 }
 0x2bc   : > { %1856 = vmatprep.subr.bf16.mxu1 %v2109_v49  ;;  %v1015_v22 = vsel %vm521_vm2, %v1000_v4, 0 }
 0x2bd   : > { %v996_v5 = vpop.permute.xlu0 %995 }
 0x2bf   : > { %v1002_v6 = vpop.permute.xlu1 %1001 }
 0x2c0   : > { %v1018_v26 = vsel %vm521_vm2, %v1002_v6, 0 }
 0x2c1   : > { %v998_v7 = vpop.permute.xlu0 %997 }
 0x2c2   : > { %1829 = vmatmul.mubr.msk.bf16.gmra.mrb[4].mxu1 %vm521_vm2, %v2271_v46 }
 0x2c3   : > { %v1004_v9 = vpop.permute.xlu1 %1003  ;;  %1857 = vmatpush3.bf16.xpose.msra.mxu1 %v767_v8  ;;  %1832 = vmatprep.mubr.msk.bf16.mxu1 %vm2110_vm1, %v2109_v49 }
 0x2c4   : > { %1858 = vmatprep.subr.bf16.mxu1 %v2109_v49  ;;  %v1021_v29 = vsel %vm521_vm2, %v1004_v9, 0 }
 0x2c5   : > { %v1245_v10 = vpop.permute.xlu0 %1244 }
 0x2c7   : > { %v1251_v11 = vpop.permute.xlu1 %1250 }
 0x2c8   : > { %v1266_v30 = vsel %vm521_vm2, %v1251_v11, 0 }
 0x2c9   : > { %v1249_v16 = vpop.permute.xlu0 %1248 }
 0x2ca   : > { %1833 = vmatmul.mubr.msk.bf16.gmra.mrb[8].mxu1 %vm521_vm2, %v2275_v52 }
 0x2cb   : > { %v1253_v18 = vpop.permute.xlu1 %1252  ;;  %1859 = vmatpush3.bf16.xpose.msra.mxu1 %v770_v17  ;;  %1860 = vmatprep.mubr.msk.bf16.mxu1 %vm2110_vm1, %v2109_v49 }
 0x2cc   : > { %1890 = vmatprep.subr.bf16.mxu1 %v2109_v49  ;;  %v1269_v28 = vsel %vm521_vm2, %v1253_v18, 0 }
 0x2cd   : > { %v661_v19 = vpop.permute.xlu0 %660 }
 0x2ce   : > { %1837 = vmatpush3.bf16.msra.mxu0 %v661_v19 }
 0x2cf   : > { %v1255_v20 = vpop.permute.xlu1 %1254  ;;  %1838 = vmatprep.subr.bf16.mxu0 %v2109_v49 }
 0x2d0   : > { %v1272_v31 = vsel %vm521_vm2, %v1255_v20, 0 }
 0x2d1   : > { %v665_v25 = vpop.permute.xlu0 %664 }
 0x2d2   : > { %1861 = vmatmul.mubr.msk.bf16.vlgmr.msra.gmra.mrb[12].mxu1 %vm521_vm2, %v743_v59  ;;  %v679_v27 = vsel %vm677_vm3, %v665_v25, 0 }
 0x2d3   : > { %v1247_v23 = vpop.permute.xlu1 %1246  ;;  %1891 = vmatpush3.bf16.xpose.msra.mxu1 %v1015_v22  ;;  %1864 = vmatprep.mubr.msk.bf16.mxu1 %vm2110_vm1, %v2109_v49 }
 0x2d4   : > { %1892 = vmatprep.subr.bf16.mxu1 %v2109_v49 }
 0x2d7   : > { %v663_v24 = vpop.permute.xlu1 %662 }
 0x2d8   : > { %1839 = vmatpush3.bf16.msra.mxu0 %v663_v24 }
 0x2d9   : > { %1840 = vmatprep.subr.bf16.mxu0 %v2109_v49 }
 0x2da   : > { %1865 = vmatmul.mubr.msk.bf16.gmra.mrb[16].mxu1 %vm521_vm2, %v745_v61 }
 0x2db   : > { %1893 = vmatpush3.bf16.xpose.msra.mxu1 %v1018_v26  ;;  %1868 = vmatprep.mubr.msk.bf16.mxu1 %vm2110_vm1, %v2109_v49 }
 0x2dc   : > { %1841 = vmatpush3.bf16.msra.mxu0 %v679_v27  ;;  %1894 = vmatprep.subr.bf16.mxu1 %v2109_v49 }
 0x2dd   : > { %1872 = vmatprep.subr.bf16.mxu0 %v2109_v49 }
 0x2e2   : > { %1869 = vmatmul.mubr.msk.bf16.gmra.mrb[20].mxu1 %vm521_vm2, %v747_v0 }
 0x2e3   : > { %1895 = vmatpush3.bf16.xpose.msra.mxu1 %v1021_v29  ;;  %1896 = vmatprep.mubr.msk.bf16.mxu1 %vm2110_vm1, %v2109_v49 }
 0x2e4   : > { %1926 = vmatprep.subr.bf16.mxu1 %v2109_v49 }
 0x2ea   : > { %1897 = vmatmul.mubr.msk.bf16.vlgmr.msra.gmra.mrb[24].mxu1 %vm521_vm2, %v994_v2 }
 0x2eb   : > { %1927 = vmatpush3.bf16.xpose.msra.mxu1 %v1266_v30  ;;  %1900 = vmatprep.mubr.msk.bf16.mxu1 %vm2110_vm1, %v2109_v49 }
 0x2ec   : > { %1928 = vmatprep.subr.bf16.mxu1 %v2109_v49 }
 0x2f2   : > { %1901 = vmatmul.mubr.msk.bf16.gmra.mrb[28].mxu1 %vm521_vm2, %v996_v5 }
 0x2f3   : > { %1929 = vmatpush3.bf16.xpose.msra.mxu1 %v1269_v28  ;;  %1904 = vmatprep.mubr.msk.bf16.mxu1 %vm2110_vm1, %v2109_v49 }
 0x2f4   : > { %1930 = vmatprep.subr.bf16.mxu1 %v2109_v49 }
 0x2fa   : > { %1905 = vmatmul.mubr.msk.bf16.gmra.mrb[32].mxu1 %vm521_vm2, %v998_v7 }
 0x2fb   : > { %1931 = vmatpush3.bf16.xpose.msra.mxu1 %v1272_v31  ;;  %1932 = vmatprep.mubr.msk.bf16.mxu1 %vm2110_vm1, %v2109_v49 }
 0x2fc   : > { %1978 = vmatprep.subr.bf16.mxu1 %v2109_v49 }
 0x302   : > { %1933 = vmatmul.mubr.msk.bf16.vlgmr.msra.gmra.mrb[36].mxu1 %vm521_vm2, %v1245_v10 }
 0x303   : > { %1936 = vmatprep.mubr.msk.bf16.mxu1 %vm2110_vm1, %v2109_v49 }
 0x30a   : > { %1937 = vmatmul.mubr.msk.bf16.gmra.mrb[40].mxu1 %vm521_vm2, %v1247_v23 }
 0x30b   : > { %1940 = vmatprep.mubr.msk.bf16.mxu1 %vm2110_vm1, %v2109_v49 }
 0x312   : > { %1941 = vmatmul.mubr.msk.bf16.gmra.mrb[44].mxu1 %vm521_vm2, %v1249_v16 }
 0x313   : > { %1970 = vmatprep.mubr.msk.bf16.mxu1 %vm2110_vm1, %v2109_v49 }
 0x38d   : > { %v574_v32 = vpop.f32.mrb[0].mxu1 }
 0x38e   : > { %v2367_v33 = vmul.f32 0.35355338, %v574_v32  ;;  %v1826_v34 = vpop.f32.mrb[1].mxu1 }
 0x38f   : > { %v577_v35 = vpop.f32.mrb[2].mxu1 }
 0x390   : > { %v2369_v36 = vmul.f32 0.35355338, %v577_v35  ;;  %v1827_v37 = vpop.f32.mrb[3].mxu1  ;;  %v602_v38 = vsel %vm601_vm4, %v2367_v33, -inf }
 0x391   : > { %603 = vmax.xlane.f32.xlu1 %v602_v38 }
 0x392   : > { %v605_v40 = vsel %vm601_vm4, %v2369_v36, -inf }
 0x393   : > { %606 = vmax.xlane.f32.xlu0 %v605_v40 }
 0x395   : > { %v582_v41 = vpop.f32.mrb[4].mxu1 }
 0x396   : > { %v2375_v42 = vmul.f32 0.35355338, %v582_v41  ;;  %v1830_v43 = vpop.f32.mrb[5].mxu1 }
 0x397   : > { %v585_v44 = vpop.f32.mrb[6].mxu1 }
 0x398   : > { %v2377_v45 = vmul.f32 0.35355338, %v585_v44  ;;  %v1831_v47 = vpop.f32.mrb[7].mxu1  ;;  %v608_v48 = vsel %vm601_vm4, %v2375_v42, -inf }
 0x399   : > { %609 = vmax.xlane.f32.xlu0 %v608_v48 }
 0x39a   : > { %v611_v50 = vsel %vm601_vm4, %v2377_v45, -inf }
 0x39d   : > { %612 = vmax.xlane.f32.xlu0 %v611_v50  ;;  %v590_v51 = vpop.f32.mrb[8].mxu1 }
 0x39e   : > { %v1834_v53 = vpop.f32.mrb[9].mxu1  ;;  %v2391_v10 = vmul.f32 0.35355338, %v590_v51 }
 0x39f   : > { %v593_v54 = vpop.f32.mrb[10].mxu1 }
 0x3a0   : > { %v1835_v55 = vpop.f32.mrb[11].mxu1  ;;  %v614_v17 = vsel %vm601_vm4, %v2391_v10, -inf }
 0x3a2   : > { %891 = vrot.lane.b32.xlu1 %v2268_v39, %s2119_s20 }
 0x3a5   : > { %v806_v56 = vpop.f32.mrb[12].mxu1 }
 0x3a6   : > { %v2385_v57 = vmul.f32 0.35355338, %v806_v56  ;;  %v1862_v58 = vpop.f32.mrb[13].mxu1 }
 0x3a7   : > { %v809_v59 = vpop.f32.mrb[14].mxu1 }
 0x3a8   : > { %v1863_v60 = vpop.f32.mrb[15].mxu1  ;;  %v833_v61 = vsel %vm601_vm4, %v2385_v57, -inf  ;;  %v2393_v11 = vmul.f32 0.35355338, %v809_v59 }
 0x3a9   : > { %834 = vmax.xlane.f32.xlu0 %v833_v61 }
 0x3aa   : > { %v836_v23 = vsel %vm601_vm4, %v2393_v11, -inf }
 0x3ad   : > { %v814_v62 = vpop.f32.mrb[16].mxu1 }
 0x3ae   : > { %v1866_v63 = vpop.f32.mrb[17].mxu1  ;;  %v2413_v41 = vmul.f32 0.35355338, %v814_v62 }
 0x3af   : > { %v817_v0 = vpop.f32.mrb[18].mxu1 }
 0x3b0   : > { %v1867_v1 = vpop.f32.mrb[19].mxu1  ;;  %v2397_v22 = vmul.f32 0.35355338, %v817_v0  ;;  %v839_v50 = vsel %vm601_vm4, %v2413_v41, -inf }
 0x3b2   : > { %v842_v26 = vsel %vm601_vm4, %v2397_v22, -inf }
 0x3b5   : > { %v822_v2 = vpop.f32.mrb[20].mxu1 }
 0x3b6   : > { %v1870_v3 = vpop.f32.mrb[21].mxu1  ;;  %v2419_v47 = vmul.f32 0.35355338, %v822_v2 }
 0x3b7   : > { %v825_v4 = vpop.f32.mrb[22].mxu1 }
 0x3b8   : > { %v1871_v5 = vpop.f32.mrb[23].mxu1  ;;  %v845_v59 = vsel %vm601_vm4, %v2419_v47, -inf }
 0x3bd   : > { %v1057_v6 = vpop.f32.mrb[24].mxu1 }
 0x3be   : > { %v1898_v7 = vpop.f32.mrb[25].mxu1  ;;  %v2401_v24 = vmul.f32 0.35355338, %v1057_v6 }
 0x3bf   : > { %895 = vrot.lane.b32.xlu0 %v2275_v52, %s2119_s20  ;;  %v1060_v8 = vpop.f32.mrb[26].mxu1 }
 0x3c0   : > { %v1899_v9 = vpop.f32.mrb[27].mxu1  ;;  %v1084_v31 = vsel %vm601_vm4, %v2401_v24, -inf  ;;  %v2427_v58 = vmul.f32 0.35355338, %v1060_v8 }
 0x3c2   : > { %v1087_v63 = vsel %vm601_vm4, %v2427_v58, -inf }
 0x3c5   : > { %v1065_v16 = vpop.f32.mrb[28].mxu1 }
 0x3c6   : > { %615 = vmax.xlane.f32.xlu1 %v614_v17  ;;  %v1902_v18 = vpop.f32.mrb[29].mxu1  ;;  %v2405_v28 = vmul.f32 0.35355338, %v1065_v16  ;;  %v2451_v16 = vpop.permute.xlu0 %893 }
 0x3c7   : > { %v1068_v19 = vpop.f32.mrb[30].mxu1 }
 0x3c8   : > { %v1903_v20 = vpop.f32.mrb[31].mxu1  ;;  %v1090_v35 = vsel %vm601_vm4, %v2405_v28, -inf  ;;  %v2433_v61 = vmul.f32 0.35355338, %v1068_v19 }
 0x3ca   : > { %837 = vmax.xlane.f32.xlu1 %v836_v23  ;;  %v1093_v4 = vsel %vm601_vm4, %v2433_v61, -inf }
 0x3cd   : > { %v1073_v25 = vpop.f32.mrb[32].mxu1 }
 0x3ce   : > { %843 = vmax.xlane.f32.xlu1 %v842_v26  ;;  %v1906_v27 = vpop.f32.mrb[33].mxu1  ;;  %v2409_v32 = vmul.f32 0.35355338, %v1073_v25 }
 0x3cf   : > { %v1076_v29 = vpop.f32.mrb[34].mxu1 }
 0x3d0   : > { %v1907_v30 = vpop.f32.mrb[35].mxu1  ;;  %v1096_v44 = vsel %vm601_vm4, %v2409_v32, -inf }
 0x3d2   : > { %1085 = vmax.xlane.f32.xlu1 %v1084_v31 }
 0x3d5   : > { %v1308_v34 = vpop.f32.mrb[36].mxu1 }
 0x3d6   : > { %1091 = vmax.xlane.f32.xlu1 %v1090_v35  ;;  %v1934_v37 = vpop.f32.mrb[37].mxu1  ;;  %v2437_v3 = vmul.f32 0.35355338, %v1308_v34 }
 0x3d7   : > { %v1311_v38 = vpop.f32.mrb[38].mxu1 }
 0x3d8   : > { %v1935_v40 = vpop.f32.mrb[39].mxu1  ;;  %v2415_v43 = vmul.f32 0.35355338, %v1311_v38  ;;  %v1335_v6 = vsel %vm601_vm4, %v2437_v3, -inf }
 0x3da   : > { %1097 = vmax.xlane.f32.xlu1 %v1096_v44  ;;  %v1338_v51 = vsel %vm601_vm4, %v2415_v43, -inf }
 0x3dd   : > { %v1316_v48 = vpop.f32.mrb[40].mxu1 }
 0x3de   : > { %840 = vmax.xlane.f32.xlu0 %v839_v50  ;;  %1339 = vmax.xlane.f32.xlu1 %v1338_v51  ;;  %v1938_v53 = vpop.f32.mrb[41].mxu1  ;;  %v2441_v5 = vmul.f32 0.35355338, %v1316_v48 }
 0x3df   : > { %v1319_v54 = vpop.f32.mrb[42].mxu1 }
 0x3e0   : > { %v2425_v55 = vmul.f32 0.35355338, %v1319_v54  ;;  %v1939_v56 = vpop.f32.mrb[43].mxu1  ;;  %v1341_v8 = vsel %vm601_vm4, %v2441_v5, -inf }
 0x3e2   : > { %846 = vmax.xlane.f32.xlu0 %v845_v59  ;;  %v1344_v60 = vsel %vm601_vm4, %v2425_v55, -inf }
 0x3e3   : > { %1345 = vmax.xlane.f32.xlu1 %v1344_v60 }
 0x3e5   : > { %v1324_v62 = vpop.f32.mrb[44].mxu1 }
 0x3e6   : > { %1088 = vmax.xlane.f32.xlu0 %v1087_v63  ;;  %v1942_v0 = vpop.f32.mrb[45].mxu1  ;;  %v2445_v7 = vmul.f32 0.35355338, %v1324_v62 }
 0x3e7   : > { %v1327_v1 = vpop.f32.mrb[46].mxu1 }
 0x3e8   : > { %v1943_v2 = vpop.f32.mrb[47].mxu1  ;;  %v1347_v9 = vsel %vm601_vm4, %v2445_v7, -inf }
 0x3ea   : > { %1094 = vmax.xlane.f32.xlu0 %v1093_v4 }
 0x3ee   : > { %1336 = vmax.xlane.f32.xlu0 %v1335_v6 }
 0x3f2   : > { %1342 = vmax.xlane.f32.xlu0 %v1341_v8 }
 0x3f6   : > { %1348 = vmax.xlane.f32.xlu0 %v1347_v9 }
 0x41e   : > { %v604_v17 = vpop.xlane.xlu1 %603 }
 0x41f   : > { %v617_v18 = vsub.f32 %v2367_v33, %v604_v17 }
 0x420   : > { %v607_v19 = vpop.xlane.xlu0 %606 }
 0x421   : > { %v622_v20 = vmul.f32 1.442695, %v617_v18  ;;  %v618_v23 = vsub.f32 %v2369_v36, %v607_v19 }
 0x423   : > { %2021 = vpow2.f32 %v622_v20  ;;  %v624_v25 = vmul.f32 1.442695, %v618_v23 }
 0x425   : > { %2023 = vpow2.f32 %v624_v25 }
 0x426   : > { %v610_v26 = vpop.xlane.xlu0 %609 }
 0x427   : > { %v619_v38 = vsub.f32 %v2375_v42, %v610_v26 }
 0x429   : > { %v626_v44 = vmul.f32 1.442695, %v619_v38 }
 0x42a   : > { %v613_v27 = vpop.xlane.xlu0 %612 }
 0x42b   : > { %v620_v29 = vsub.f32 %v2377_v45, %v613_v27  ;;  %v2470_v45 = vpop.permute.xlu1 %891 }
 0x42d   : > { %v2456_v30 = vpop.eup %2021  ;;  %v628_v31 = vmul.f32 1.442695, %v620_v29 }
 0x42e   : > { %v632_v34 = vsel %vm601_vm4, %v2456_v30, 0.0 }
 0x42f   : > { %v2460_v35 = vpop.eup %2023  ;;  %2025 = vpow2.f32 %v628_v31  ;;  %633 = vadd.xlane.f32.xlu0 %v632_v34 }
 0x430   : > { %v635_v33 = vsel %vm601_vm4, %v2460_v35, 0.0  ;;  %2027 = vpow2.f32 %v626_v44 }
 0x431   : > { %636 = vadd.xlane.f32.xlu1 %v635_v33 }
 0x436   : > { %v835_v50 = vpop.xlane.xlu0 %834 }
 0x437   : > { %v848_v54 = vsub.f32 %v2385_v57, %v835_v50 }
 0x439   : > { %v2464_v36 = vpop.eup %2025  ;;  %v853_v60 = vmul.f32 1.442695, %v848_v54 }
 0x43a   : > { %v641_v37 = vsel %vm601_vm4, %v2464_v36, 0.0  ;;  %v2476_v62 = vpop.eup %2027  ;;  %v2484_v0 = vpop.permute.xlu0 %895 }
 0x43b   : > { %642 = vadd.xlane.f32.xlu0 %v641_v37 }
 0x442   : > { %1142 = vrot.lane.b32.xlu1 %v2268_v39, %s2120_s21 }
 0x453   : > { %v616_v40 = vpop.xlane.xlu1 %615 }
 0x454   : > { %v621_v48 = vsub.f32 %v2391_v10, %v616_v40  ;;  %v638_v10 = vsel %vm601_vm4, %v2476_v62, 0.0 }
 0x456   : > { %v630_v51 = vmul.f32 1.442695, %v621_v48 }
 0x457   : > { %v838_v53 = vpop.xlane.xlu1 %837 }
 0x458   : > { %v849_v56 = vsub.f32 %v2393_v11, %v838_v53  ;;  %2029 = vpow2.f32 %v630_v51 }
 0x45a   : > { %v855_v59 = vmul.f32 1.442695, %v849_v56 }
 0x45b   : > { %v844_v11 = vpop.xlane.xlu1 %843 }
 0x45c   : > { %2031 = vpow2.f32 %v855_v59  ;;  %v851_v4 = vsub.f32 %v2397_v22, %v844_v11 }
 0x45d   : > { %2033 = vpow2.f32 %v853_v60 }
 0x45e   : > { %v859_v19 = vmul.f32 1.442695, %v851_v4 }
 0x45f   : > { %v1086_v17 = vpop.xlane.xlu1 %1085 }
 0x462   : > { %v2478_v42 = vpop.eup %2029 }
 0x463   : > { %v644_v1 = vsel %vm601_vm4, %v2478_v42, 0.0  ;;  %v1092_v27 = vpop.xlane.xlu1 %1091 }
 0x464   : > { %v1101_v29 = vsub.f32 %v2405_v28, %v1092_v27 }
 0x466   : > { %v2482_v63 = vpop.eup %2031  ;;  %639 = vadd.xlane.f32.xlu1 %v638_v10  ;;  %v1108_v37 = vmul.f32 1.442695, %v1101_v29 }
 0x467   : > { %v866_v57 = vsel %vm601_vm4, %v2482_v63, 0.0  ;;  %v2490_v2 = vpop.eup %2033  ;;  %v1098_v34 = vpop.xlane.xlu1 %1097 }
 0x468   : > { %867 = vadd.xlane.f32.xlu0 %v866_v57  ;;  %v863_v9 = vsel %vm601_vm4, %v2490_v2, 0.0  ;;  %v1103_v28 = vsub.f32 %v2409_v32, %v1098_v34  ;;  %v1099_v32 = vsub.f32 %v2401_v24, %v1086_v17 }
 0x46a   : > { %645 = vadd.xlane.f32.xlu1 %v644_v1 }
 0x46b   : > { %v841_v6 = vpop.xlane.xlu0 %840  ;;  %v1340_v48 = vpop.xlane.xlu1 %1339 }
 0x46c   : > { %v850_v8 = vsub.f32 %v2413_v41, %v841_v6  ;;  %v1351_v53 = vsub.f32 %v2415_v43, %v1340_v48  ;;  %v1104_v43 = vmul.f32 1.442695, %v1099_v32 }
 0x46e   : > { %v857_v18 = vmul.f32 1.442695, %v850_v8  ;;  %864 = vadd.xlane.f32.xlu1 %v863_v9  ;;  %v1357_v60 = vmul.f32 1.442695, %v1351_v53 }
 0x46f   : > { %v847_v20 = vpop.xlane.xlu0 %846 }
 0x470   : > { %v852_v23 = vsub.f32 %v2419_v47, %v847_v20  ;;  %2035 = vpow2.f32 %v857_v18  ;;  %v1346_v10 = vpop.xlane.xlu1 %1345 }
 0x471   : > { %2037 = vpow2.f32 %v859_v19  ;;  %v1353_v4 = vsub.f32 %v2425_v55, %v1346_v10 }
 0x472   : > { %v861_v25 = vmul.f32 1.442695, %v852_v23 }
 0x473   : > { %v1089_v26 = vpop.xlane.xlu0 %1088 }
 0x474   : > { %v1100_v22 = vsub.f32 %v2427_v58, %v1089_v26  ;;  %2039 = vpow2.f32 %v861_v25 }
 0x476   : > { %v1106_v41 = vmul.f32 1.442695, %v1100_v22 }
 0x477   : > { %v1095_v31 = vpop.xlane.xlu0 %1094 }
 0x478   : > { %2041 = vpow2.f32 %v1106_v41  ;;  %v1102_v38 = vsub.f32 %v2433_v61, %v1095_v31  ;;  %v1112_v61 = vmul.f32 1.442695, %v1103_v28 }
 0x479   : > { %2043 = vpow2.f32 %v1108_v37 }
 0x47a   : > { %v2499_v33 = vpop.eup %2035  ;;  %v1110_v58 = vmul.f32 1.442695, %v1102_v38 }
 0x47b   : > { %v869_v47 = vsel %vm601_vm4, %v2499_v33, 0.0  ;;  %v2504_v40 = vpop.eup %2037  ;;  %v1337_v44 = vpop.xlane.xlu0 %1336 }
 0x47c   : > { %870 = vadd.xlane.f32.xlu1 %v869_v47  ;;  %v872_v50 = vsel %vm601_vm4, %v2504_v40, 0.0  ;;  %2045 = vpow2.f32 %v1110_v58  ;;  %v1350_v6 = vsub.f32 %v2437_v3, %v1337_v44 }
 0x47d   : > { %2047 = vpow2.f32 %v1112_v61 }
 0x47e   : > { %1144 = vrot.lane.b32.xlu0 %v2271_v46, %s2120_s21  ;;  %v2511_v51 = vpop.eup %2039  ;;  %2049 = vpow2.f32 %v1357_v60  ;;  %v1355_v17 = vmul.f32 1.442695, %v1350_v6 }
 0x47f   : > { %v1343_v54 = vpop.xlane.xlu0 %1342  ;;  %v875_v56 = vsel %vm601_vm4, %v2511_v51, 0.0  ;;  %2051 = vpow2.f32 %v1104_v43 }
 0x480   : > { %873 = vadd.xlane.f32.xlu1 %v872_v50  ;;  %v1352_v57 = vsub.f32 %v2441_v5, %v1343_v54  ;;  %v1361_v5 = vmul.f32 1.442695, %v1353_v4 }
 0x482   : > { %v2516_v59 = vpop.eup %2041  ;;  %v1359_v8 = vmul.f32 1.442695, %v1352_v57 }
 0x483   : > { %v1117_v11 = vsel %vm601_vm4, %v2516_v59, 0.0  ;;  %v2522_v1 = vpop.eup %2043  ;;  %v1349_v34 = vpop.xlane.xlu0 %1348 }
 0x484   : > { %876 = vadd.xlane.f32.xlu1 %v875_v56  ;;  %v1120_v24 = vsel %vm601_vm4, %v2522_v1, 0.0  ;;  %2053 = vpow2.f32 %v1359_v8  ;;  %v1354_v47 = vsub.f32 %v2445_v7, %v1349_v34 }
 0x485   : > { %2055 = vpow2.f32 %v1361_v5 }
 0x486   : > { %v2528_v9 = vpop.eup %2045  ;;  %2057 = vpow2.f32 %v1355_v17  ;;  %v1363_v44 = vmul.f32 1.442695, %v1354_v47 }
 0x487   : > { %v1123_v18 = vsel %vm601_vm4, %v2528_v9, 0.0  ;;  %v2532_v19 = vpop.eup %2047 }
 0x488   : > { %1118 = vadd.xlane.f32.xlu1 %v1117_v11  ;;  %v1126_v55 = vsel %vm601_vm4, %v2532_v19, 0.0  ;;  %v2536_v3 = vpop.eup %2049 }
 0x489   : > { %v2538_v20 = vpop.eup %2051  ;;  %v1368_v23 = vsel %vm601_vm4, %v2536_v3, 0.0 }
 0x48a   : > { %v1114_v22 = vsel %vm601_vm4, %v2538_v20, 0.0 }
 0x48c   : > { %1121 = vadd.xlane.f32.xlu1 %v1120_v24 }
 0x48e   : > { %v2542_v25 = vpop.eup %2053 }
 0x48f   : > { %v2544_v26 = vpop.eup %2055  ;;  %v1371_v27 = vsel %vm601_vm4, %v2542_v25, 0.0 }
 0x490   : > { %1124 = vadd.xlane.f32.xlu1 %v1123_v18  ;;  %v2550_v29 = vpop.eup %2057  ;;  %v1374_v41 = vsel %vm601_vm4, %v2544_v26, 0.0 }
 0x491   : > { %v1365_v31 = vsel %vm601_vm4, %v2550_v29, 0.0 }
 0x494   : > { %1127 = vadd.xlane.f32.xlu1 %v1126_v55 }
 0x498   : > { %1369 = vadd.xlane.f32.xlu1 %v1368_v23 }
 0x49c   : > { %1372 = vadd.xlane.f32.xlu1 %v1371_v27 }
 0x49d   : > { %1115 = vadd.xlane.f32.xlu0 %v1114_v22 }
 0x4a0   : > { %1375 = vadd.xlane.f32.xlu1 %v1374_v41 }
 0x4a1   : > { %1366 = vadd.xlane.f32.xlu0 %v1365_v31 }
 0x4b1   : > { %1393 = vrot.lane.b32.xlu1 %v2268_v39, %s2121_s22 }
 0x4b5   : > { %1395 = vrot.lane.b32.xlu1 %v2271_v46, %s2121_s22 }
 0x4b7   : > { %1146 = vrot.lane.b32.xlu0 %v2275_v52, %s2120_s21 }
 0x4b9   : > { %1397 = vrot.lane.b32.xlu1 %v2275_v52, %s2121_s22 }
 0x4bc   : > { %v634_v37 = vpop.xlane.xlu0 %633 }
 0x4bd   : > { %2059 = vrcp.f32 %v634_v37 }
 0x4be   : > { %v637_v38 = vpop.xlane.xlu1 %636 }
 0x4bf   : > { %2061 = vrcp.f32 %v637_v38 }
 0x4c0   : > { %2063 = vpow2.f32 %v1363_v44 }
 0x4c7   : > { %v2060_v28 = vpop.eup %2059 }
 0x4c8   : > { %v652_v39 = vmul.f32 %v2060_v28, %v2456_v30  ;;  %v909_v30 = vsel %vm677_vm3, %v2484_v0, 0 }
 0x4c9   : > { %v2062_v58 = vpop.eup %2061 }
 0x4ca   : > { %v653_v46 = vmul.f32 %v2062_v58, %v2460_v35  ;;  %v2569_v52 = vpop.eup %2063  ;;  %v1143_v35 = vpop.permute.xlu1 %1142 }
 0x4cb   : > { %v1377_v7 = vsel %vm601_vm4, %v2569_v52, 0.0 }
 0x4cc   : > { %v657_v48 = vpack.c.bf16 %v653_v46, %v652_v39 }
 0x4ce   : > { %1843 = vmatmul.mubr.msk.bf16.vlgmr.msra.gmra.mrb[12].mxu0 %vm601_vm4, %v657_v48 }
 0x4cf   : > { %1873 = vmatpush3.bf16.msra.mxu0 %v2470_v45  ;;  %1846 = vmatprep.mubr.msk.bf16.mxu0 %vm2110_vm1, %v2109_v49  ;;  %v643_v45 = vpop.xlane.xlu0 %642 }
 0x4d0   : > { %1874 = vmatprep.subr.bf16.mxu0 %v2109_v49  ;;  %2065 = vrcp.f32 %v643_v45 }
 0x4d3   : > { %1875 = vmatpush3.bf16.msra.mxu0 %v2451_v16 }
 0x4d4   : > { %1876 = vmatprep.subr.bf16.mxu0 %v2109_v49 }
 0x4d6   : > { %1378 = vadd.xlane.f32.xlu0 %v1377_v7 }
 0x4d7   : > { %1877 = vmatpush3.bf16.msra.mxu0 %v909_v30 }
 0x4d8   : > { %1908 = vmatprep.subr.bf16.mxu0 %v2109_v49 }
 0x4da   : > { %v2066_v16 = vpop.eup %2065 }
 0x4db   : > { %v655_v60 = vmul.f32 %v2066_v16, %v2464_v36 }
 0x4f3   : > { %v640_v50 = vpop.xlane.xlu1 %639 }
 0x4f4   : > { %2067 = vrcp.f32 %v640_v50 }
 0x4f5   : > { %v868_v56 = vpop.xlane.xlu0 %867 }
 0x4f7   : > { %v646_v61 = vpop.xlane.xlu1 %645 }
 0x4f8   : > { %2069 = vrcp.f32 %v646_v61 }
 0x4f9   : > { %v1145_v18 = vpop.permute.xlu0 %1144 }
 0x4fb   : > { %v865_v53 = vpop.xlane.xlu1 %864 }
 0x4fc   : > { %2071 = vrcp.f32 %v865_v53 }
 0x4fd   : > { %2073 = vrcp.f32 %v868_v56 }
 0x4fe   : > { %v2068_v54 = vpop.eup %2067 }
 0x4ff   : > { %v654_v32 = vmul.f32 %v2068_v54, %v2476_v62 }
 0x501   : > { %v658_v0 = vpack.c.bf16 %v655_v60, %v654_v32 }
 0x502   : > { %v2070_v10 = vpop.eup %2069 }
 0x503   : > { %1847 = vmatmul.mubr.msk.bf16.gmra.mrb[16].mxu0 %vm601_vm4, %v658_v0  ;;  %v656_v57 = vmul.f32 %v2070_v10, %v2478_v42 }
 0x504   : > { %1850 = vmatprep.mubr.msk.bf16.mxu0 %vm2110_vm1, %v2109_v49 }
 0x505   : > { %v659_v11 = vpack.c.bf16 %v656_v57, %v656_v57 }
 0x506   : > { %v2072_v43 = vpop.eup %2071 }
 0x507   : > { %v2074_v6 = vpop.eup %2073  ;;  %v883_v36 = vmul.f32 %v2072_v43, %v2490_v2 }
 0x508   : > { %v884_v8 = vmul.f32 %v2074_v6, %v2482_v63 }
 0x509   : > { %v871_v4 = vpop.xlane.xlu1 %870 }
 0x50a   : > { %2075 = vrcp.f32 %v871_v4  ;;  %v888_v24 = vpack.c.bf16 %v884_v8, %v883_v36 }
 0x50b   : > { %1851 = vmatmul.mubr.msk.bf16.gmra.mrb[20].mxu0 %vm601_vm4, %v659_v11 }
 0x50c   : > { %1878 = vmatprep.mubr.msk.bf16.mxu0 %vm2110_vm1, %v2109_v49 }
 0x50d   : > { %v874_v62 = vpop.xlane.xlu1 %873 }
 0x50e   : > { %2077 = vrcp.f32 %v874_v62 }
 0x511   : > { %v877_v5 = vpop.xlane.xlu1 %876 }
 0x512   : > { %2079 = vrcp.f32 %v877_v5 }
 0x513   : > { %1879 = vmatmul.mubr.msk.bf16.vlgmr.msra.gmra.mrb[24].mxu0 %vm601_vm4, %v888_v24 }
 0x514   : > { %1909 = vmatpush3.bf16.msra.mxu0 %v1143_v35  ;;  %1882 = vmatprep.mubr.msk.bf16.mxu0 %vm2110_vm1, %v2109_v49  ;;  %v2076_v17 = vpop.eup %2075 }
 0x515   : > { %1910 = vmatprep.subr.bf16.mxu0 %v2109_v49  ;;  %v1119_v42 = vpop.xlane.xlu1 %1118  ;;  %v885_v55 = vmul.f32 %v2076_v17, %v2499_v33 }
 0x516   : > { %2081 = vrcp.f32 %v1119_v42 }
 0x518   : > { %1911 = vmatpush3.bf16.msra.mxu0 %v1145_v18  ;;  %v2078_v2 = vpop.eup %2077 }
 0x519   : > { %1912 = vmatprep.subr.bf16.mxu0 %v2109_v49  ;;  %v1122_v63 = vpop.xlane.xlu1 %1121  ;;  %v886_v23 = vmul.f32 %v2078_v2, %v2504_v40 }
 0x51b   : > { %v889_v27 = vpack.c.bf16 %v886_v23, %v885_v55 }
 0x51c   : > { %v2080_v22 = vpop.eup %2079 }
 0x51d   : > { %v1125_v41 = vpop.xlane.xlu1 %1124  ;;  %1883 = vmatmul.mubr.msk.bf16.gmra.mrb[28].mxu0 %vm601_vm4, %v889_v27  ;;  %v887_v31 = vmul.f32 %v2080_v22, %v2511_v51 }
 0x51e   : > { %1886 = vmatprep.mubr.msk.bf16.mxu0 %vm2110_vm1, %v2109_v49 }
 0x51f   : > { %v890_v37 = vpack.c.bf16 %v887_v31, %v887_v31 }
 0x520   : > { %v2082_v51 = vpop.eup %2081 }
 0x521   : > { %v1128_v34 = vpop.xlane.xlu1 %1127  ;;  %v1135_v48 = vmul.f32 %v2082_v51, %v2516_v59 }
 0x525   : > { %v1370_v38 = vpop.xlane.xlu1 %1369  ;;  %1887 = vmatmul.mubr.msk.bf16.gmra.mrb[32].mxu0 %vm601_vm4, %v890_v37 }
 0x526   : > { %1914 = vmatprep.mubr.msk.bf16.mxu0 %vm2110_vm1, %v2109_v49 }
 0x529   : > { %v1373_v33 = vpop.xlane.xlu1 %1372 }
 0x52a   : > { %v1116_v40 = vpop.xlane.xlu0 %1115 }
 0x52b   : > { %2083 = vrcp.f32 %v1116_v40 }
 0x52c   : > { %2085 = vrcp.f32 %v1125_v41 }
 0x52d   : > { %v1376_v47 = vpop.xlane.xlu1 %1375  ;;  %2087 = vrcp.f32 %v1122_v63 }
 0x52e   : > { %v1367_v44 = vpop.xlane.xlu0 %1366  ;;  %2089 = vrcp.f32 %v1128_v34 }
 0x52f   : > { %2091 = vrcp.f32 %v1367_v44 }
 0x530   : > { %2093 = vrcp.f32 %v1370_v38 }
 0x531   : > { %v1394_v39 = vpop.permute.xlu1 %1393  ;;  %2095 = vrcp.f32 %v1376_v47 }
 0x532   : > { %v1147_v28 = vpop.permute.xlu0 %1146  ;;  %2097 = vrcp.f32 %v1373_v33 }
 0x533   : > { %v1160_v58 = vsel %vm677_vm3, %v1147_v28, 0 }
 0x534   : > { %1913 = vmatpush3.bf16.msra.mxu0 %v1160_v58 }
 0x535   : > { %1944 = vmatprep.subr.bf16.mxu0 %v2109_v49  ;;  %v2084_v46 = vpop.eup %2083  ;;  %v1396_v45 = vpop.permute.xlu1 %1395 }
 0x536   : > { %v1134_v7 = vmul.f32 %v2084_v46, %v2538_v20  ;;  %v2086_v35 = vpop.eup %2085 }
 0x537   : > { %v2088_v50 = vpop.eup %2087  ;;  %v1137_v61 = vmul.f32 %v2086_v35, %v2528_v9 }
 0x538   : > { %v1139_v30 = vpack.c.bf16 %v1135_v48, %v1134_v7  ;;  %v1136_v16 = vmul.f32 %v2088_v50, %v2522_v1  ;;  %v2090_v53 = vpop.eup %2089 }
 0x539   : > { %v1398_v59 = vpop.permute.xlu1 %1397  ;;  %v1138_v9 = vmul.f32 %v2090_v53, %v2532_v19  ;;  %v2092_v56 = vpop.eup %2091 }
 0x53a   : > { %1915 = vmatmul.mubr.msk.bf16.vlgmr.msra.gmra.mrb[36].mxu0 %vm601_vm4, %v1139_v30  ;;  %v1140_v20 = vpack.c.bf16 %v1137_v61, %v1136_v16  ;;  %v1411_v54 = vsel %vm677_vm3, %v1398_v59, 0  ;;  %v2094_v32 = vpop.eup %2093  ;;  %v1385_v60 = vmul.f32 %v2092_v56, %v2550_v29  ;;  %v2009_v61 = vld [vmem:[%s2697_s6] sm:$0xff]  }
 0x53b   : > { %1945 = vmatpush3.bf16.msra.mxu0 %v1394_v39  ;;  %1918 = vmatprep.mubr.msk.bf16.mxu0 %vm2110_vm1, %v2109_v49  ;;  %v1141_v1 = vpack.c.bf16 %v1138_v9, %v1138_v9  ;;  %v1386_v0 = vmul.f32 %v2094_v32, %v2536_v3  ;;  %v2096_v57 = vpop.eup %2095 }
 0x53c   : > { %1946 = vmatprep.subr.bf16.mxu0 %v2109_v49  ;;  %v2098_v19 = vpop.eup %2097  ;;  %v1388_v11 = vmul.f32 %v2096_v57, %v2544_v26  ;;  %1980 = vmatpush3.bf16.msra.mxu1 %v2009_v61 }
 0x53d   : > { %v1390_v10 = vpack.c.bf16 %v1386_v0, %v1385_v60  ;;  %v1387_v43 = vmul.f32 %v2098_v19, %v2542_v25  ;;  %1979 = vmatprep.subr.bf16.mxu1 %v2109_v49 }
 0x53f   : > { %1947 = vmatpush3.bf16.msra.mxu0 %v1396_v45  ;;  %v1391_v4 = vpack.c.bf16 %v1388_v11, %v1387_v43 }
 0x540   : > { %1948 = vmatprep.subr.bf16.mxu0 %v2109_v49 }
 0x542   : > { %1919 = vmatmul.mubr.msk.bf16.gmra.mrb[40].mxu0 %vm601_vm4, %v1140_v20 }
 0x543   : > { %1949 = vmatpush3.bf16.msra.mxu0 %v1411_v54  ;;  %1922 = vmatprep.mubr.msk.bf16.mxu0 %vm2110_vm1, %v2109_v49  ;;  %v2010_v54 = vld [vmem:[%s2697_s6 + $0x8] sm:$0xff]  }
 0x544   : > { %1962 = vmatprep.subr.bf16.mxu0 %v2109_v49  ;;  %1981 = vmatpush3.bf16.msra.mxu1 %v2010_v54 }
 0x54a   : > { %1923 = vmatmul.mubr.msk.bf16.gmra.mrb[44].mxu0 %vm601_vm4, %v1141_v1 }
 0x54b   : > { %1950 = vmatprep.mubr.msk.bf16.mxu0 %vm2110_vm1, %v2109_v49 }
 0x552   : > { %1951 = vmatmul.mubr.msk.bf16.vlgmr.msra.gmra.mrb[48].mxu0 %vm601_vm4, %v1390_v10 }
 0x553   : > { %1954 = vmatprep.mubr.msk.bf16.mxu0 %vm2110_vm1, %v2109_v49  ;;  %1963 = vmatpush3.bf16.msra.mxu0 %v2009_v61 }
 0x554   : > { %1964 = vmatprep.subr.bf16.mxu0 %v2109_v49 }
 0x557   : > { %1965 = vmatpush3.bf16.msra.mxu0 %v2010_v54 }
 0x55a   : > { %1955 = vmatmul.mubr.msk.bf16.gmra.mrb[52].mxu0 %vm601_vm4, %v1391_v4 }
 0x55b   : > { %1958 = vmatprep.mubr.msk.bf16.mxu0 %vm2110_vm1, %v2109_v49 }
 0x563   : > { %v1379_v29 = vpop.xlane.xlu0 %1378 }
 0x564   : > { %2099 = vrcp.f32 %v1379_v29 }
 0x56e   : > { %v2100_v3 = vpop.eup %2099 }
 0x56f   : > { %v1389_v6 = vmul.f32 %v2100_v3, %v2569_v52 }
 0x571   : > { %v1392_v36 = vpack.c.bf16 %v1389_v6, %v1389_v6 }
 0x573   : > { %1959 = vmatmul.mubr.msk.bf16.gmra.mrb[56].mxu0 %vm601_vm4, %v1392_v36 }
 0x574   : > { %1966 = vmatprep.mubr.msk.bf16.mxu0 %vm2110_vm1, %v2109_v49 }
 0x5a1   : > { %v715_v26 = vpop.f32.mrb[12].mxu0 }
 0x5a2   : > { %737 = vst.msk [vmem:[#allocation2] sm:$0xff] %vm521_vm2, %v715_v26  ;;  %v1844_v25 = vpop.f32.mrb[13].mxu0 }
 0x5a3   : > { %v718_v62 = vpop.f32.mrb[14].mxu0 }
 0x5a4   : > { %738 = vst.msk [vmem:[#allocation2 + $0x8] sm:$0xff] %vm521_vm2, %v718_v62  ;;  %v1845_v8 = vpop.f32.mrb[15].mxu0 }
 0x5d6   : > { %v723_v24 = vpop.f32.mrb[16].mxu0 }
 0x5d7   : > { %739 = vst.msk [vmem:[#allocation2 + $0x10] sm:$0xff] %vm521_vm2, %v723_v24  ;;  %v1848_v5 = vpop.f32.mrb[17].mxu0 }
 0x5d8   : > { %v726_v42 = vpop.f32.mrb[18].mxu0 }
 0x5d9   : > { %740 = vst.msk [vmem:[#allocation2 + $0x18] sm:$0xff] %vm521_vm2, %v726_v42  ;;  %v1849_v52 = vpop.f32.mrb[19].mxu0 }
 0x5de   : > { %v731_v17 = vpop.f32.mrb[20].mxu0 }
 0x5df   : > { %741 = vst.msk [vmem:[#allocation2 + $0x20] sm:$0xff] %vm521_vm2, %v731_v17  ;;  %v1852_v18 = vpop.f32.mrb[21].mxu0 }
 0x5e0   : > { %v734_v2 = vpop.f32.mrb[22].mxu0 }
 0x5e1   : > { %v1853_v63 = vpop.f32.mrb[23].mxu0 }
 0x5e6   : > { %v945_v55 = vpop.f32.mrb[24].mxu0 }
 0x5e7   : > { %972 = vrot.lane.b32.xlu1 %v945_v55, %s2122_s23  ;;  %v1880_v23 = vpop.f32.mrb[25].mxu0 }
 0x5e8   : > { %v948_v27 = vpop.f32.mrb[26].mxu0 }
 0x5e9   : > { %v1881_v22 = vpop.f32.mrb[27].mxu0 }
 0x5ea   : > { %v1717_v22 = vld [vmem:[%s2698_s7] ss:$0 sm:$0xff] }
 0x5eb   : > { %974 = vrot.lane.b32.xlu1 %v948_v27, %s2122_s23 }
 0x5f0   : > { %v953_v41 = vpop.f32.mrb[28].mxu0 }
 0x5f1   : > { %976 = vrot.lane.b32.xlu1 %v953_v41, %s2122_s23  ;;  %v1884_v31 = vpop.f32.mrb[29].mxu0 }
 0x5f2   : > { %v956_v34 = vpop.f32.mrb[30].mxu0 }
 0x5f3   : > { %978 = vrot.lane.b32.xlu0 %v956_v34, %s2122_s23  ;;  %v1885_v37 = vpop.f32.mrb[31].mxu0 }
 0x5f8   : > { %v961_v38 = vpop.f32.mrb[32].mxu0 }
 0x5f9   : > { %980 = vrot.lane.b32.xlu0 %v961_v38, %s2122_s23  ;;  %v1888_v33 = vpop.f32.mrb[33].mxu0 }
 0x5fa   : > { %v964_v40 = vpop.f32.mrb[34].mxu0 }
 0x5fb   : > { %v1889_v47 = vpop.f32.mrb[35].mxu0 }
 0x60d   : > { %v1196_v44 = vpop.f32.mrb[36].mxu0 }
 0x60e   : > { %1223 = vrot.lane.b32.xlu0 %v1196_v44, %s2123_s24  ;;  %v1916_v28 = vpop.f32.mrb[37].mxu0 }
 0x60f   : > { %v1199_v58 = vpop.f32.mrb[38].mxu0 }
 0x610   : > { %1225 = vrot.lane.b32.xlu1 %v1199_v58, %s2123_s24  ;;  %v1917_v51 = vpop.f32.mrb[39].mxu0 }
 0x615   : > { %v1204_v39 = vpop.f32.mrb[40].mxu0 }
 0x616   : > { %1227 = vrot.lane.b32.xlu1 %v1204_v39, %s2123_s24  ;;  %v1920_v46 = vpop.f32.mrb[41].mxu0 }
 0x617   : > { %v1207_v48 = vpop.f32.mrb[42].mxu0 }
 0x618   : > { %v1921_v7 = vpop.f32.mrb[43].mxu0 }
 0x61a   : > { %1229 = vrot.lane.b32.xlu1 %v1207_v48, %s2123_s24 }
 0x61d   : > { %v1212_v30 = vpop.f32.mrb[44].mxu0 }
 0x61e   : > { %v1924_v35 = vpop.f32.mrb[45].mxu0 }
 0x61f   : > { %v1215_v45 = vpop.f32.mrb[46].mxu0 }
 0x620   : > { %v1925_v50 = vpop.f32.mrb[47].mxu0 }
 0x625   : > { %v1447_v16 = vpop.f32.mrb[48].mxu0 }
 0x626   : > { %v1952_v59 = vpop.f32.mrb[49].mxu0 }
 0x627   : > { %v1450_v20 = vpop.f32.mrb[50].mxu0 }
 0x628   : > { %1476 = vrot.lane.b32.xlu0 %v1450_v20, %s2124_s30  ;;  %v1953_v53 = vpop.f32.mrb[51].mxu0 }
 0x62d   : > { %v1455_v9 = vpop.f32.mrb[52].mxu0 }
 0x62e   : > { %1478 = vrot.lane.b32.xlu1 %v1455_v9, %s2124_s30  ;;  %v1956_v1 = vpop.f32.mrb[53].mxu0 }
 0x62f   : > { %v1458_v56 = vpop.f32.mrb[54].mxu0 }
 0x630   : > { %v1957_v32 = vpop.f32.mrb[55].mxu0 }
 0x632   : > { %1480 = vrot.lane.b32.xlu1 %v1458_v56, %s2124_s30 }
 0x636   : > { %1474 = vrot.lane.b32.xlu1 %v1447_v16, %s2124_s30 }
 0x63a   : > { %1231 = vrot.lane.b32.xlu1 %v1212_v30, %s2123_s24 }
 0x646   : > { %v1463_v60 = vpop.f32.mrb[56].mxu0 }
 0x647   : > { %1482 = vrot.lane.b32.xlu0 %v1463_v60, %s2124_s30  ;;  %v1960_v0 = vpop.f32.mrb[57].mxu0 }
 0x648   : > { %v1466_v10 = vpop.f32.mrb[58].mxu0 }
 0x649   : > { %v1961_v57 = vpop.f32.mrb[59].mxu0 }
 0x659   : > { %v973_v19 = vpop.permute.xlu1 %972 }
 0x65a   : > { %988 = vst.msk [vmem:[#allocation2] sm:$0xff] %vm987_vm5, %v973_v19 }
 0x65d   : > { %v975_v11 = vpop.permute.xlu1 %974 }
 0x65e   : > { %989 = vst.msk [vmem:[#allocation2 + $0x8] sm:$0xff] %vm987_vm5, %v975_v11 }
 0x663   : > { %v977_v43 = vpop.permute.xlu1 %976 }
 0x664   : > { %990 = vst.msk [vmem:[#allocation2 + $0x10] sm:$0xff] %vm987_vm5, %v977_v43 }
 0x665   : > { %v979_v4 = vpop.permute.xlu0 %978 }
 0x666   : > { %991 = vst.msk [vmem:[#allocation2 + $0x18] sm:$0xff] %vm987_vm5, %v979_v4 }
 0x66b   : > { %v981_v29 = vpop.permute.xlu0 %980 }
 0x66c   : > { %992 = vst.msk [vmem:[#allocation2 + $0x20] sm:$0xff] %vm987_vm5, %v981_v29 }
 0x680   : > { %v1224_v3 = vpop.permute.xlu0 %1223 }
 0x681   : > { %1239 = vst.msk [vmem:[#allocation2] sm:$0xff] %vm1238_vm6, %v1224_v3 }
 0x682   : > { %v1226_v6 = vpop.permute.xlu1 %1225 }
 0x683   : > { %1240 = vst.msk [vmem:[#allocation2 + $0x8] sm:$0xff] %vm1238_vm6, %v1226_v6 }
 0x688   : > { %v1228_v36 = vpop.permute.xlu1 %1227 }
 0x689   : > { %1241 = vst.msk [vmem:[#allocation2 + $0x10] sm:$0xff] %vm1238_vm6, %v1228_v36 }
 0x68c   : > { %v1230_v26 = vpop.permute.xlu1 %1229 }
 0x68d   : > { %1242 = vst.msk [vmem:[#allocation2 + $0x18] sm:$0xff] %vm1238_vm6, %v1230_v26 }
 0x69a   : > { %v1477_v25 = vpop.permute.xlu0 %1476 }
 0x69b   : > { %1491 = vst.msk [vmem:[#allocation2 + $0x8] sm:$0xff] %vm1489_vm7, %v1477_v25 }
 0x6a0   : > { %v1479_v62 = vpop.permute.xlu1 %1478 }
 0x6a1   : > { %1492 = vst.msk [vmem:[#allocation2 + $0x10] sm:$0xff] %vm1489_vm7, %v1479_v62 }
 0x6a2   : > { %v1496_v2 = vld [vmem:[#allocation2 + $0x8] sm:$0xff] }
 0x6a4   : > { %v1481_v8 = vpop.permute.xlu1 %1480 }
 0x6a5   : > { %1493 = vst.msk [vmem:[#allocation2 + $0x18] sm:$0xff] %vm1489_vm7, %v1481_v8 }
 0x6a8   : > { %v1475_v24 = vpop.permute.xlu1 %1474  ;;  %v1497_v42 = vld [vmem:[#allocation2 + $0x10] sm:$0xff] }
 0x6a9   : > { %1490 = vst.msk [vmem:[#allocation2] sm:$0xff] %vm1489_vm7, %v1475_v24 }
 0x6ac   : > { %v1232_v5 = vpop.permute.xlu1 %1231  ;;  %v1498_v52 = vld [vmem:[#allocation2 + $0x18] sm:$0xff] }
 0x6ad   : > { %1243 = vst.msk [vmem:[#allocation2 + $0x20] sm:$0xff] %vm1238_vm6, %v1232_v5  ;;  %v1501_v17 = vpack.c.bf16 %v1498_v52, %v1497_v42 }
 0x6af   : > { %1971 = vmatmul.mubr.msk.bf16.vlgmr.msra.gmra.mrb[48].mxu1 %vm329_vm0, %v1501_v17 }
 0x6b0   : > { %v1495_v18 = vld [vmem:[#allocation2] sm:$0xff]  ;;  %1974 = vmatprep.mubr.msk.bf16.mxu1 %vm2110_vm1, %v2109_v49 }
 0x6b1   : > { %v1500_v63 = vpack.c.bf16 %v1496_v2, %v1495_v18 }
 0x6b3   : > { %1967 = vmatmul.mubr.msk.bf16.vlgmr.msra.gmra.mrb[60].mxu0 %vm329_vm0, %v1500_v63 }
 0x6b9   : > { %v1483_v55 = vpop.permute.xlu0 %1482 }
 0x6ba   : > { %1494 = vst.msk [vmem:[#allocation2 + $0x20] sm:$0xff] %vm1489_vm7, %v1483_v55 }
 0x6c1   : > { %v1499_v23 = vld [vmem:[#allocation2 + $0x20] sm:$0xff] }
 0x6c2   : > { %v1502_v27 = vpack.c.bf16 %v1499_v23, %v1499_v23 }
 0x6c4   : > { %1975 = vmatmul.mubr.msk.bf16.gmra.mrb[52].mxu1 %vm329_vm0, %v1502_v27 }
 0x782   : > { %v1577_v41 = vpop.f32.mrb[48].mxu1 }
 0x783   : > { %v1578_v31 = vadd.f32 %v1717_v22, %v1577_v41  ;;  %v1972_v34 = vpop.f32.mrb[49].mxu1 }
 0x784   : > { %v1580_v37 = vpop.f32.mrb[50].mxu1 }
 0x785   : > { %v1593_v49 = vadd.f32 %v1578_v31, %v2200_v13  ;;  %v1581_v38 = vadd.f32 %v1717_v22, %v1580_v37  ;;  %v1973_v33 = vpop.f32.mrb[51].mxu1 }
 0x786   : > { %v1569_v40 = vpop.f32.mrb[60].mxu0 }
 0x787   : > { %v1732_v47 = vpack.c.bf16 %v1593_v49, %v1593_v49  ;;  %v1594_v44 = vadd.f32 %v1581_v38, %v2204_v15  ;;  %v1570_v28 = vadd.f32 %v1717_v22, %v1569_v40  ;;  %v1968_v58 = vpop.f32.mrb[61].mxu0 }
 0x788   : > { %v1572_v51 = vpop.f32.mrb[62].mxu0 }
 0x789   : > { %1620 = vst.msk [vmem:[%s305_s15 + $0x8] sm:$0xf] %vm1617_vm8, %v1732_v47  ;;  %v1733_v39 = vpack.c.bf16 %v1594_v44, %v1594_v44  ;;  %v1591_v13 = vadd.f32 %v1570_v28, %v2198_v12  ;;  %v1573_v46 = vadd.f32 %v1717_v22, %v1572_v51  ;;  %v1969_v48 = vpop.f32.mrb[63].mxu0 }
 0x78b   : > { %1621 = vst.msk [vmem:[%s305_s15 + $0xc] sm:$0xf] %vm1617_vm8, %v1733_v39  ;;  %v1730_v7 = vpack.c.bf16 %v1591_v13, %v1591_v13  ;;  %v1592_v30 = vadd.f32 %v1573_v46, %v2202_v14 }
 0x78d   : > { %1618 = vst.msk [vmem:[%s305_s15] sm:$0xf] %vm1617_vm8, %v1730_v7  ;;  %v1731_v35 = vpack.c.bf16 %v1592_v30, %v1592_v30 }
 0x78f   : > { %1619 = vst.msk [vmem:[%s305_s15 + $0x4] sm:$0xf] %vm1617_vm8, %v1731_v35 }
 0x797   : > { %v1585_v15 = vpop.f32.mrb[52].mxu1 }
 0x798   : > { %v1586_v45 = vadd.f32 %v1717_v22, %v1585_v15  ;;  %v1976_v50 = vpop.f32.mrb[53].mxu1 }
 0x799   : > { %v1588_v61 = vpop.f32.mrb[54].mxu1 }
 0x79a   : > { %v1595_v16 = vadd.f32 %v1586_v45, %v2217_v21  ;;  %v1977_v59 = vpop.f32.mrb[55].mxu1 }
 0x79c   : > { %v1734_v12 = vpack.c.bf16 %v1595_v16, %v1595_v16 }
 0x79e   : > { %1622 = vst.msk [vmem:[%s305_s15 + $0x10] sm:$0xf] %vm1617_vm8, %v1734_v12 }
 0x79f PF: > { %s18_s27 = sadd.s32 1, %s2107_s27  }
 0x7a0   : > { %p15_p4 = scmp.ge.s32.totalorder %s18_s27, 4  }
 0x7a2   :  { %17 = sbr.rel (!%p15_p4) target bundleno = 1 (0x1), region = 82 }

// kernel: text_encoder_forward.7
= control target key start
LH: loop header
LB: loop body
LE: loop exit
PB: predicated region body
PF: predicated region fallthrough
CT: control target
= control target key end

     0   :  { %s2128_s24 = smov 0   ;;  %s2634_s0 = inlined_call_operand.vmem [shape: bf16[2,40,32], index: 0, kind: input, shape index: {}, may-alias: {0,7}]   ;;  %s2635_s1 = inlined_call_operand.vmem [shape: f32[1,32], index: 1, kind: input, shape index: {}]   ;;  %s2636_s2 = inlined_call_operand.vmem [shape: f32[1,32], index: 2, kind: input, shape index: {}]   ;;  %s2637_s3 = inlined_call_operand.vmem [shape: bf16[32,96], index: 3, kind: input, shape index: {}]   ;;  %s2638_s4 = inlined_call_operand.vmem [shape: f32[1,96], index: 4, kind: input, shape index: {}]   ;;  %s2639_s5 = inlined_call_operand.vmem [shape: bf16[32,32], index: 5, kind: input, shape index: {}]   ;;  %s2640_s6 = inlined_call_operand.vmem [shape: f32[1,32], index: 6, kind: input, shape index: {}]   ;;  %s2641_s7 = inlined_call_operand.vmem [shape: bf16[2,40,32], index: 7, kind: output, shape index: {}, may-alias: {0,7}]  }
   0x1 LB: > { %s1641_s25 = sadd.s32 4294967295, %s2070_s24   ;;  %p1645_p0 = scmp.ge.s32.totalorder %s2070_s24, 1  ;;  %s2070_s24 = sphi %s2128_s24, %s17_s24  }
   0x2   : > { %p237_p1 = scmp.lt.s32.totalorder %s2070_s24, 3 }
   0x4   : > { %p238_p2 = pnand %p1645_p0, %p237_p1 }
   0x5   : > { %p269_p3 = scmp.lt.s32.totalorder (!%p238_p2), %s1641_s25, 1  ;;  %vm292_vm0 = vcmask (!%p238_p2), 261120   ;;  %v1970_v38 = vld [vmem:[%s2637_s3] sm:$0xff] (!%p238_p2)   ;;  %v2072_v39 = vmov (!%p238_p2), 0.0   ;;  %v1971_v40 = vld [vmem:[%s2637_s3 + $0x8] sm:$0xff] (!%p238_p2)   ;;  %vm2073_vm1 = vmmov (!%p238_p2), 0  }
   0x6   : > { %241 = sbr.rel (%p238_p2) target bundleno = 1949 (0x79d), region = 48  ;;  %1765 = vmatprep.subr.bf16.mxu0 (!%p238_p2), %v2072_v39  ;;  %1781 = vmatprep.subr.bf16.mxu1 (!%p238_p2), %v2072_v39  ;;  %v1648_v58 = vld [vmem:[%s2635_s1] ss:$0 sm:$0xff] (!%p238_p2)  ;;  %s2074_s17 = smov (!%p238_p2), 96   ;;  %vm484_vm2 = vcmask (!%p238_p2), 64512   ;;  %vm640_vm3 = vcmask (!%p238_p2), 1043456  }
   0x7   : > { %1766 = vmatpush3.bf16.msra.mxu0 (!%p238_p2), %v1970_v38  ;;  %1769 = vmatprep.mubr.msk.bf16.mxu0 (!%p238_p2), %vm2073_vm1, %v2072_v39  ;;  %v1649_v63 = vld [vmem:[%s2636_s2] ss:$0 sm:$0xff] (!%p238_p2)  ;;  %s2075_s18 = smov (!%p238_p2), 88   ;;  %s2076_s19 = smov (!%p238_p2), 120   ;;  %vm564_vm4 = vcmask (!%p238_p2), 326656   ;;  %vm950_vm5 = vcmask (!%p238_p2), 130112  }
   0x8   : > { %1767 = vmatprep.subr.bf16.mxu0 (!%p238_p2), %v2072_v39  ;;  %1787 = vmatprep.mubr.msk.bf16.mxu1 (!%p238_p2), %vm2073_vm1, %v2072_v39  ;;  %s2077_s20 = smov (!%p238_p2), 112   ;;  %s2078_s21 = smov (!%p238_p2), 80   ;;  %vm1201_vm6 = vcmask (!%p238_p2), 195712   ;;  %vm1452_vm7 = vcmask (!%p238_p2), 261312   ;;  %vm1580_vm8 = vcmask (!%p238_p2), 257024  }
   0x9   : > { %s2079_s22 = smov (!%p238_p2), 104   ;;  %s2080_s23 = smov (!%p238_p2), 72  }
   0xa   : > { %s2081_s27 = smov (!%p238_p2), 64   ;;  %s2082_s28 = smov (!%p238_p2), 56  }
   0xb   : > { %1768 = vmatpush3.bf16.msra.mxu0 (!%p238_p2), %v1971_v40  ;;  %s2084_s30 = smov (!%p238_p2), 40   ;;  %s2085_s8 = smov (!%p238_p2), 8  }
   0xc   : > { %1799 = vmatprep.subr.bf16.mxu0 (!%p238_p2), %v2072_v39  ;;  %s2086_s9 = smov (!%p238_p2), 16   ;;  %s2087_s12 = smov (!%p238_p2), 24  }
   0xd   : > { %s2643_s25 = smov (!%p269_p3, %s1641_s25), 1 }
   0xe   : > { %s1945_s26 = smul.u32 20, %s2643_s25 }
  0x10   : > { %s273_s29 = scalar_lea.vmem %s2634_s0, %s1945_s26 }
  0x11   : > { %v1699_v0 = vld [vmem:[%s273_s29] sm:$0xff]   ;;  %v1706_v1 = vld [vmem:[%s273_s29 + $0x8] sm:$0xff]   ;;  %v284_v6 = vld [vmem:[%s273_s29 + $0x10] sm:$0xf]  ;;  %s2083_s29 = smov 48  }
  0x12   : > { %v2144_v2 = vunpack.c.l.bf16 %v1699_v0  ;;  %v2146_v3 = vunpack.c.l.bf16 %v1706_v1  ;;  %v2148_v4 = vunpack.c.h.bf16 %v1699_v0  ;;  %v2150_v5 = vunpack.c.h.bf16 %v1706_v1 }
  0x13   : > { %v2160_v11 = vunpack.c.l.bf16 %v284_v6 }
  0x14   : > { %v293_v7 = vsel %vm292_vm0, %v2144_v2, 0.0  ;;  %v299_v8 = vsel %vm292_vm0, %v2146_v3, 0.0  ;;  %v296_v9 = vsel %vm292_vm0, %v2148_v4, 0.0  ;;  %v302_v10 = vsel %vm292_vm0, %v2150_v5, 0.0 }
  0x15   : > { %294 = vadd.xlane.f32.xlu0 %v293_v7  ;;  %300 = vadd.xlane.f32.xlu1 %v299_v8  ;;  %v305_v12 = vsel %vm292_vm0, %v2160_v11, 0.0 }
  0x19   : > { %297 = vadd.xlane.f32.xlu0 %v296_v9  ;;  %303 = vadd.xlane.f32.xlu1 %v302_v10 }
  0x1d   : > { %306 = vadd.xlane.f32.xlu0 %v305_v12 }
  0xa2   : > { %v295_v13 = vpop.xlane.xlu0 %294  ;;  %v301_v14 = vpop.xlane.xlu1 %300 }
  0xa3   : > { %v309_v15 = vmul.f32 0.03125, %v295_v13  ;;  %v311_v16 = vmul.f32 0.03125, %v301_v14 }
  0xa5   : > { %v314_v17 = vsub.f32 %v2144_v2, %v309_v15  ;;  %v2166_v18 = vsub.f32 %v2146_v3, %v311_v16 }
  0xa6   : > { %v298_v19 = vpop.xlane.xlu0 %297  ;;  %v304_v20 = vpop.xlane.xlu1 %303 }
  0xa7   : > { %v310_v21 = vmul.f32 0.03125, %v298_v19  ;;  %v312_v22 = vmul.f32 0.03125, %v304_v20  ;;  %v319_v23 = vmul.f32 %v314_v17, %v314_v17  ;;  %v321_v24 = vmul.f32 %v2166_v18, %v2166_v18 }
  0xa9   : > { %v315_v25 = vsub.f32 %v2148_v4, %v310_v21  ;;  %v317_v26 = vsub.f32 %v2150_v5, %v312_v22  ;;  %v324_v27 = vsel %vm292_vm0, %v319_v23, 0.0  ;;  %v330_v30 = vsel %vm292_vm0, %v321_v24, 0.0  ;;  %v1650_v22 = vld [vmem:[%s2638_s4] ss:$0 sm:$0xff] }
  0xaa   : > { %325 = vadd.xlane.f32.xlu1 %v324_v27  ;;  %v307_v28 = vpop.xlane.xlu0 %306 }
  0xab   : > { %v313_v29 = vmul.f32 0.03125, %v307_v28  ;;  %v320_v31 = vmul.f32 %v315_v25, %v315_v25  ;;  %v322_v32 = vmul.f32 %v317_v26, %v317_v26 }
  0xad   : > { %v318_v33 = vsub.f32 %v2160_v11, %v313_v29  ;;  %v327_v34 = vsel %vm292_vm0, %v320_v31, 0.0  ;;  %v333_v35 = vsel %vm292_vm0, %v322_v32, 0.0 }
  0xae   : > { %331 = vadd.xlane.f32.xlu1 %v330_v30  ;;  %328 = vadd.xlane.f32.xlu0 %v327_v34 }
  0xaf   : > { %v323_v36 = vmul.f32 %v318_v33, %v318_v33 }
  0xb1   : > { %v336_v37 = vsel %vm292_vm0, %v323_v36, 0.0 }
  0xb2   : > { %334 = vadd.xlane.f32.xlu0 %v333_v35  ;;  %337 = vadd.xlane.f32.xlu1 %v336_v37 }
 0x137   : > { %v326_v41 = vpop.xlane.xlu1 %325 }
 0x138   : > { %v339_v42 = vmul.f32 0.03125, %v326_v41 }
 0x13a   : > { %v344_v43 = vadd.f32 1e-05, %v339_v42 }
 0x13b   : > { %v332_v44 = vpop.xlane.xlu1 %331  ;;  %v329_v45 = vpop.xlane.xlu0 %328 }
 0x13c   : > { %1974 = vrsqrt.f32 %v344_v43  ;;  %v341_v46 = vmul.f32 0.03125, %v332_v44  ;;  %v340_v47 = vmul.f32 0.03125, %v329_v45 }
 0x13e   : > { %v345_v48 = vadd.f32 1e-05, %v340_v47  ;;  %v346_v49 = vadd.f32 1e-05, %v341_v46 }
 0x13f   : > { %v338_v50 = vpop.xlane.xlu1 %337  ;;  %v335_v51 = vpop.xlane.xlu0 %334 }
 0x140   : > { %v342_v52 = vmul.f32 0.03125, %v335_v51  ;;  %1976 = vrsqrt.f32 %v345_v48  ;;  %v343_v53 = vmul.f32 0.03125, %v338_v50 }
 0x141   : > { %1978 = vrsqrt.f32 %v346_v49 }
 0x142   : > { %v347_v54 = vadd.f32 1e-05, %v342_v52  ;;  %v348_v55 = vadd.f32 1e-05, %v343_v53 }
 0x144   : > { %1980 = vrsqrt.f32 %v347_v54 }
 0x145   : > { %1982 = vrsqrt.f32 %v348_v55 }
 0x146   : > { %v1975_v56 = vpop.eup %1974 }
 0x147   : > { %v354_v57 = vmul.f32 %v1975_v56, %v314_v17 }
 0x149   : > { %v365_v61 = vmul.f32 %v1648_v58, %v354_v57 }
 0x14a   : > { %v1977_v59 = vpop.eup %1976 }
 0x14b   : > { %v355_v60 = vmul.f32 %v1977_v59, %v315_v25  ;;  %v1979_v62 = vpop.eup %1978  ;;  %v376_v7 = vadd.f32 %v1649_v63, %v365_v61 }
 0x14c   : > { %v356_v9 = vmul.f32 %v1979_v62, %v2166_v18 }
 0x14d   : > { %v366_v0 = vmul.f32 %v1648_v58, %v355_v60 }
 0x14e   : > { %v1981_v1 = vpop.eup %1980  ;;  %v367_v14 = vmul.f32 %v1648_v58, %v356_v9 }
 0x14f   : > { %v357_v6 = vmul.f32 %v1981_v1, %v317_v26  ;;  %v377_v8 = vadd.f32 %v1649_v63, %v366_v0  ;;  %v1983_v13 = vpop.eup %1982 }
 0x150   : > { %v358_v16 = vmul.f32 %v1983_v13, %v318_v33  ;;  %v378_v17 = vadd.f32 %v1649_v63, %v367_v14 }
 0x151   : > { %v381_v10 = vpack.c.bf16 %v377_v8, %v376_v7  ;;  %v368_v12 = vmul.f32 %v1648_v58, %v357_v6 }
 0x152   : > { %v369_v20 = vmul.f32 %v1648_v58, %v358_v16 }
 0x153   : > { %1770 = vmatmul.mubr.msk.bf16.vlgmr.msra.gmra.mrb[0].mxu0 %vm292_vm0, %v381_v10  ;;  %v379_v15 = vadd.f32 %v1649_v63, %v368_v12 }
 0x154   : > { %1773 = vmatprep.mubr.msk.bf16.mxu0 %vm2073_vm1, %v2072_v39  ;;  %v380_v18 = vadd.f32 %v1649_v63, %v369_v20 }
 0x155   : > { %v382_v19 = vpack.c.bf16 %v379_v15, %v378_v17 }
 0x156   : > { %v383_v21 = vpack.c.bf16 %v380_v18, %v380_v18 }
 0x15b   : > { %1774 = vmatmul.mubr.msk.bf16.gmra.mrb[4].mxu0 %vm292_vm0, %v382_v19 }
 0x15c   : > { %1777 = vmatprep.mubr.msk.bf16.mxu0 %vm2073_vm1, %v2072_v39 }
 0x163   : > { %1778 = vmatmul.mubr.msk.bf16.gmra.mrb[8].mxu0 %vm292_vm0, %v383_v21 }
 0x164   : > { %1805 = vmatprep.mubr.msk.bf16.mxu0 %vm2073_vm1, %v2072_v39 }
 0x226   : > { %v450_v23 = vpop.f32.mrb[0].mxu0 }
 0x227   : > { %v1771_v24 = vpop.f32.mrb[1].mxu0  ;;  %v451_v26 = vadd.f32 %v1650_v22, %v450_v23 }
 0x228   : > { %v453_v25 = vpop.f32.mrb[2].mxu0 }
 0x229   : > { %v454_v27 = vadd.f32 %v1650_v22, %v453_v25  ;;  %v1772_v28 = vpop.f32.mrb[3].mxu0 }
 0x22b   : > { %v2211_v29 = vpack.c.bf16 %v454_v27, %v451_v26 }
 0x22d   : > { %478 = vrot.lane.b32.xlu0 %v2211_v29, %s2074_s17 }
 0x22e   : > { %v458_v30 = vpop.f32.mrb[4].mxu0 }
 0x22f   : > { %v1775_v31 = vpop.f32.mrb[5].mxu0  ;;  %v459_v33 = vadd.f32 %v1650_v22, %v458_v30 }
 0x230   : > { %v461_v32 = vpop.f32.mrb[6].mxu0 }
 0x231   : > { %v462_v34 = vadd.f32 %v1650_v22, %v461_v32  ;;  %v1776_v35 = vpop.f32.mrb[7].mxu0 }
 0x233   : > { %v2214_v36 = vpack.c.bf16 %v462_v34, %v459_v33 }
 0x235   : > { %713 = vrot.lane.b32.xlu0 %v2214_v36, %s2075_s18  ;;  %480 = vrot.lane.b32.xlu1 %v2214_v36, %s2074_s17 }
 0x236   : > { %v466_v37 = vpop.f32.mrb[8].mxu0 }
 0x237   : > { %v467_v38 = vadd.f32 %v1650_v22, %v466_v37  ;;  %v1779_v40 = vpop.f32.mrb[9].mxu0 }
 0x238   : > { %v469_v41 = vpop.f32.mrb[10].mxu0 }
 0x239   : > { %v2218_v42 = vpack.c.bf16 %v467_v38, %v467_v38  ;;  %705 = vrot.lane.b32.xlu0 %v2211_v29, %s2076_s19  ;;  %v1780_v43 = vpop.f32.mrb[11].mxu0 }
 0x23b   : > { %482 = vrot.lane.b32.xlu1 %v2218_v42, %s2074_s17 }
 0x23d   : > { %707 = vrot.lane.b32.xlu0 %v2214_v36, %s2076_s19 }
 0x23f   : > { %711 = vrot.lane.b32.xlu1 %v2211_v29, %s2075_s18 }
 0x241   : > { %709 = vrot.lane.b32.xlu0 %v2218_v42, %s2076_s19  ;;  %s278_s19 = scalar_lea.vmem %s2641_s7, %s1945_s26 }
 0x243   : > { %715 = vrot.lane.b32.xlu1 %v2218_v42, %s2075_s18 }
 0x245   : > { %956 = vrot.lane.b32.xlu0 %v2211_v29, %s2077_s20 }
 0x247   : > { %962 = vrot.lane.b32.xlu1 %v2211_v29, %s2078_s21 }
 0x249   : > { %958 = vrot.lane.b32.xlu0 %v2214_v36, %s2077_s20 }
 0x24b   : > { %964 = vrot.lane.b32.xlu1 %v2214_v36, %s2078_s21 }
 0x24d   : > { %960 = vrot.lane.b32.xlu0 %v2218_v42, %s2077_s20 }
 0x24f   : > { %966 = vrot.lane.b32.xlu1 %v2218_v42, %s2078_s21 }
 0x251   : > { %1207 = vrot.lane.b32.xlu0 %v2211_v29, %s2079_s22 }
 0x253   : > { %1213 = vrot.lane.b32.xlu1 %v2211_v29, %s2080_s23 }
 0x255   : > { %1211 = vrot.lane.b32.xlu0 %v2218_v42, %s2079_s22 }
 0x257   : > { %1215 = vrot.lane.b32.xlu1 %v2214_v36, %s2080_s23 }
 0x259   : > { %623 = vrot.lane.b32.xlu0 %v2211_v29, %s2081_s27 }
 0x25b   : > { %1217 = vrot.lane.b32.xlu1 %v2218_v42, %s2080_s23 }
 0x25d   : > { %627 = vrot.lane.b32.xlu0 %v2218_v42, %s2081_s27 }
 0x25f   : > { %1209 = vrot.lane.b32.xlu1 %v2214_v36, %s2079_s22 }
 0x261   : > { %856 = vrot.lane.b32.xlu0 %v2214_v36, %s2082_s28 }
 0x263   : > { %625 = vrot.lane.b32.xlu1 %v2214_v36, %s2081_s27 }
 0x29f   : > { %v479_v44 = vpop.permute.xlu0 %478 }
 0x2a0   : > { %v495_v45 = vsel %vm484_vm2, %v479_v44, 0 }
 0x2a1   : > { %1782 = vmatpush3.bf16.xpose.msra.mxu1 %v495_v45 }
 0x2a2   : > { %1783 = vmatprep.subr.bf16.mxu1 %v2072_v39 }
 0x2a7   : > { %v481_v46 = vpop.permute.xlu1 %480  ;;  %v714_v47 = vpop.permute.xlu0 %713 }
 0x2a8   : > { %v498_v48 = vsel %vm484_vm2, %v481_v46, 0  ;;  %v730_v62 = vsel %vm484_vm2, %v714_v47, 0 }
 0x2a9   : > { %1784 = vmatpush3.bf16.xpose.msra.mxu1 %v498_v48 }
 0x2aa   : > { %1785 = vmatprep.subr.bf16.mxu1 %v2072_v39 }
 0x2ab   : > { %v706_v49 = vpop.permute.xlu0 %705 }
 0x2ad   : > { %v483_v50 = vpop.permute.xlu1 %482 }
 0x2ae   : > { %v501_v52 = vsel %vm484_vm2, %v483_v50, 0 }
 0x2af   : > { %v708_v51 = vpop.permute.xlu0 %707 }
 0x2b1   : > { %v712_v53 = vpop.permute.xlu1 %711  ;;  %1786 = vmatpush3.bf16.xpose.msra.mxu1 %v501_v52 }
 0x2b2   : > { %1817 = vmatprep.subr.bf16.mxu1 %v2072_v39  ;;  %v727_v57 = vsel %vm484_vm2, %v712_v53, 0 }
 0x2b3   : > { %v710_v54 = vpop.permute.xlu0 %709 }
 0x2b5   : > { %v716_v55 = vpop.permute.xlu1 %715 }
 0x2b6   : > { %v733_v7 = vsel %vm484_vm2, %v716_v55, 0 }
 0x2b7   : > { %v957_v56 = vpop.permute.xlu0 %956 }
 0x2b8   : > { %1788 = vmatmul.mubr.msk.bf16.vlgmr.msra.gmra.mrb[0].mxu1 %vm484_vm2, %v2211_v29 }
 0x2b9   : > { %v963_v58 = vpop.permute.xlu1 %962  ;;  %1818 = vmatpush3.bf16.xpose.msra.mxu1 %v727_v57  ;;  %1791 = vmatprep.mubr.msk.bf16.mxu1 %vm2073_vm1, %v2072_v39 }
 0x2ba   : > { %1819 = vmatprep.subr.bf16.mxu1 %v2072_v39  ;;  %v978_v12 = vsel %vm484_vm2, %v963_v58, 0 }
 0x2bb   : > { %v959_v59 = vpop.permute.xlu0 %958 }
 0x2bd   : > { %v965_v60 = vpop.permute.xlu1 %964 }
 0x2be   : > { %v981_v16 = vsel %vm484_vm2, %v965_v60, 0 }
 0x2bf   : > { %v961_v61 = vpop.permute.xlu0 %960 }
 0x2c0   : > { %1792 = vmatmul.mubr.msk.bf16.gmra.mrb[4].mxu1 %vm484_vm2, %v2214_v36 }
 0x2c1   : > { %v967_v63 = vpop.permute.xlu1 %966  ;;  %1820 = vmatpush3.bf16.xpose.msra.mxu1 %v730_v62  ;;  %1795 = vmatprep.mubr.msk.bf16.mxu1 %vm2073_vm1, %v2072_v39 }
 0x2c2   : > { %1821 = vmatprep.subr.bf16.mxu1 %v2072_v39  ;;  %v984_v19 = vsel %vm484_vm2, %v967_v63, 0 }
 0x2c3   : > { %v1208_v0 = vpop.permute.xlu0 %1207 }
 0x2c5   : > { %v1214_v1 = vpop.permute.xlu1 %1213 }
 0x2c6   : > { %v1229_v20 = vsel %vm484_vm2, %v1214_v1, 0 }
 0x2c7   : > { %v1212_v6 = vpop.permute.xlu0 %1211 }
 0x2c8   : > { %1796 = vmatmul.mubr.msk.bf16.gmra.mrb[8].mxu1 %vm484_vm2, %v2218_v42 }
 0x2c9   : > { %v1216_v8 = vpop.permute.xlu1 %1215  ;;  %1822 = vmatpush3.bf16.xpose.msra.mxu1 %v733_v7  ;;  %1823 = vmatprep.mubr.msk.bf16.mxu1 %vm2073_vm1, %v2072_v39 }
 0x2ca   : > { %1853 = vmatprep.subr.bf16.mxu1 %v2072_v39  ;;  %v1232_v18 = vsel %vm484_vm2, %v1216_v8, 0 }
 0x2cb   : > { %v624_v9 = vpop.permute.xlu0 %623 }
 0x2cc   : > { %1800 = vmatpush3.bf16.msra.mxu0 %v624_v9 }
 0x2cd   : > { %v1218_v10 = vpop.permute.xlu1 %1217  ;;  %1801 = vmatprep.subr.bf16.mxu0 %v2072_v39 }
 0x2ce   : > { %v1235_v21 = vsel %vm484_vm2, %v1218_v10, 0 }
 0x2cf   : > { %v628_v15 = vpop.permute.xlu0 %627 }
 0x2d0   : > { %1824 = vmatmul.mubr.msk.bf16.vlgmr.msra.gmra.mrb[12].mxu1 %vm484_vm2, %v706_v49  ;;  %v642_v17 = vsel %vm640_vm3, %v628_v15, 0 }
 0x2d1   : > { %v1210_v13 = vpop.permute.xlu1 %1209  ;;  %1854 = vmatpush3.bf16.xpose.msra.mxu1 %v978_v12  ;;  %1827 = vmatprep.mubr.msk.bf16.mxu1 %vm2073_vm1, %v2072_v39 }
 0x2d2   : > { %1855 = vmatprep.subr.bf16.mxu1 %v2072_v39 }
 0x2d5   : > { %v626_v14 = vpop.permute.xlu1 %625 }
 0x2d6   : > { %1802 = vmatpush3.bf16.msra.mxu0 %v626_v14 }
 0x2d7   : > { %1803 = vmatprep.subr.bf16.mxu0 %v2072_v39 }
 0x2d8   : > { %1828 = vmatmul.mubr.msk.bf16.gmra.mrb[16].mxu1 %vm484_vm2, %v708_v51 }
 0x2d9   : > { %1856 = vmatpush3.bf16.xpose.msra.mxu1 %v981_v16  ;;  %1831 = vmatprep.mubr.msk.bf16.mxu1 %vm2073_vm1, %v2072_v39 }
 0x2da   : > { %1804 = vmatpush3.bf16.msra.mxu0 %v642_v17  ;;  %1857 = vmatprep.subr.bf16.mxu1 %v2072_v39 }
 0x2db   : > { %1835 = vmatprep.subr.bf16.mxu0 %v2072_v39 }
 0x2e0   : > { %1832 = vmatmul.mubr.msk.bf16.gmra.mrb[20].mxu1 %vm484_vm2, %v710_v54 }
 0x2e1   : > { %1858 = vmatpush3.bf16.xpose.msra.mxu1 %v984_v19  ;;  %1859 = vmatprep.mubr.msk.bf16.mxu1 %vm2073_vm1, %v2072_v39 }
 0x2e2   : > { %1889 = vmatprep.subr.bf16.mxu1 %v2072_v39 }
 0x2e8   : > { %1860 = vmatmul.mubr.msk.bf16.vlgmr.msra.gmra.mrb[24].mxu1 %vm484_vm2, %v957_v56 }
 0x2e9   : > { %1890 = vmatpush3.bf16.xpose.msra.mxu1 %v1229_v20  ;;  %1863 = vmatprep.mubr.msk.bf16.mxu1 %vm2073_vm1, %v2072_v39 }
 0x2ea   : > { %1891 = vmatprep.subr.bf16.mxu1 %v2072_v39 }
 0x2f0   : > { %1864 = vmatmul.mubr.msk.bf16.gmra.mrb[28].mxu1 %vm484_vm2, %v959_v59 }
 0x2f1   : > { %1892 = vmatpush3.bf16.xpose.msra.mxu1 %v1232_v18  ;;  %1867 = vmatprep.mubr.msk.bf16.mxu1 %vm2073_vm1, %v2072_v39 }
 0x2f2   : > { %1893 = vmatprep.subr.bf16.mxu1 %v2072_v39 }
 0x2f8   : > { %1868 = vmatmul.mubr.msk.bf16.gmra.mrb[32].mxu1 %vm484_vm2, %v961_v61 }
 0x2f9   : > { %1894 = vmatpush3.bf16.xpose.msra.mxu1 %v1235_v21  ;;  %1895 = vmatprep.mubr.msk.bf16.mxu1 %vm2073_vm1, %v2072_v39 }
 0x2fa   : > { %1941 = vmatprep.subr.bf16.mxu1 %v2072_v39 }
 0x300   : > { %1896 = vmatmul.mubr.msk.bf16.vlgmr.msra.gmra.mrb[36].mxu1 %vm484_vm2, %v1208_v0 }
 0x301   : > { %1899 = vmatprep.mubr.msk.bf16.mxu1 %vm2073_vm1, %v2072_v39 }
 0x308   : > { %1900 = vmatmul.mubr.msk.bf16.gmra.mrb[40].mxu1 %vm484_vm2, %v1210_v13 }
 0x309   : > { %1903 = vmatprep.mubr.msk.bf16.mxu1 %vm2073_vm1, %v2072_v39 }
 0x310   : > { %1904 = vmatmul.mubr.msk.bf16.gmra.mrb[44].mxu1 %vm484_vm2, %v1212_v6 }
 0x311   : > { %1933 = vmatprep.mubr.msk.bf16.mxu1 %vm2073_vm1, %v2072_v39 }
 0x38b   : > { %v537_v22 = vpop.f32.mrb[0].mxu1 }
 0x38c   : > { %v2310_v23 = vmul.f32 0.35355338, %v537_v22  ;;  %v1789_v24 = vpop.f32.mrb[1].mxu1 }
 0x38d   : > { %v540_v25 = vpop.f32.mrb[2].mxu1 }
 0x38e   : > { %v2312_v26 = vmul.f32 0.35355338, %v540_v25  ;;  %v1790_v27 = vpop.f32.mrb[3].mxu1  ;;  %v565_v28 = vsel %vm564_vm4, %v2310_v23, -inf }
 0x38f   : > { %566 = vmax.xlane.f32.xlu1 %v565_v28 }
 0x390   : > { %v568_v30 = vsel %vm564_vm4, %v2312_v26, -inf }
 0x391   : > { %569 = vmax.xlane.f32.xlu0 %v568_v30 }
 0x393   : > { %v545_v31 = vpop.f32.mrb[4].mxu1 }
 0x394   : > { %v2318_v32 = vmul.f32 0.35355338, %v545_v31  ;;  %v1793_v33 = vpop.f32.mrb[5].mxu1 }
 0x395   : > { %v548_v34 = vpop.f32.mrb[6].mxu1 }
 0x396   : > { %v2320_v35 = vmul.f32 0.35355338, %v548_v34  ;;  %v1794_v37 = vpop.f32.mrb[7].mxu1  ;;  %v571_v38 = vsel %vm564_vm4, %v2318_v32, -inf }
 0x397   : > { %572 = vmax.xlane.f32.xlu0 %v571_v38 }
 0x398   : > { %v574_v40 = vsel %vm564_vm4, %v2320_v35, -inf }
 0x39b   : > { %575 = vmax.xlane.f32.xlu0 %v574_v40  ;;  %v553_v41 = vpop.f32.mrb[8].mxu1 }
 0x39c   : > { %v1797_v43 = vpop.f32.mrb[9].mxu1  ;;  %v2334_v0 = vmul.f32 0.35355338, %v553_v41 }
 0x39d   : > { %v556_v44 = vpop.f32.mrb[10].mxu1 }
 0x39e   : > { %v1798_v45 = vpop.f32.mrb[11].mxu1  ;;  %v577_v7 = vsel %vm564_vm4, %v2334_v0, -inf }
 0x3a0   : > { %854 = vrot.lane.b32.xlu1 %v2211_v29, %s2082_s28 }
 0x3a3   : > { %v769_v46 = vpop.f32.mrb[12].mxu1 }
 0x3a4   : > { %v2328_v47 = vmul.f32 0.35355338, %v769_v46  ;;  %v1825_v48 = vpop.f32.mrb[13].mxu1 }
 0x3a5   : > { %v772_v49 = vpop.f32.mrb[14].mxu1 }
 0x3a6   : > { %v1826_v50 = vpop.f32.mrb[15].mxu1  ;;  %v796_v51 = vsel %vm564_vm4, %v2328_v47, -inf  ;;  %v2336_v1 = vmul.f32 0.35355338, %v772_v49 }
 0x3a7   : > { %797 = vmax.xlane.f32.xlu0 %v796_v51 }
 0x3a8   : > { %v799_v13 = vsel %vm564_vm4, %v2336_v1, -inf }
 0x3ab   : > { %v777_v52 = vpop.f32.mrb[16].mxu1 }
 0x3ac   : > { %v1829_v53 = vpop.f32.mrb[17].mxu1  ;;  %v2356_v31 = vmul.f32 0.35355338, %v777_v52 }
 0x3ad   : > { %v780_v54 = vpop.f32.mrb[18].mxu1 }
 0x3ae   : > { %v1830_v55 = vpop.f32.mrb[19].mxu1  ;;  %v2340_v12 = vmul.f32 0.35355338, %v780_v54  ;;  %v802_v40 = vsel %vm564_vm4, %v2356_v31, -inf }
 0x3b0   : > { %v805_v16 = vsel %vm564_vm4, %v2340_v12, -inf }
 0x3b3   : > { %v785_v56 = vpop.f32.mrb[20].mxu1 }
 0x3b4   : > { %v1833_v57 = vpop.f32.mrb[21].mxu1  ;;  %v2362_v37 = vmul.f32 0.35355338, %v785_v56 }
 0x3b5   : > { %v788_v58 = vpop.f32.mrb[22].mxu1 }
 0x3b6   : > { %v1834_v59 = vpop.f32.mrb[23].mxu1  ;;  %v808_v49 = vsel %vm564_vm4, %v2362_v37, -inf }
 0x3bb   : > { %v1020_v60 = vpop.f32.mrb[24].mxu1 }
 0x3bc   : > { %v1861_v61 = vpop.f32.mrb[25].mxu1  ;;  %v2344_v14 = vmul.f32 0.35355338, %v1020_v60 }
 0x3bd   : > { %858 = vrot.lane.b32.xlu0 %v2218_v42, %s2082_s28  ;;  %v1023_v62 = vpop.f32.mrb[26].mxu1 }
 0x3be   : > { %v1862_v63 = vpop.f32.mrb[27].mxu1  ;;  %v1047_v21 = vsel %vm564_vm4, %v2344_v14, -inf  ;;  %v2370_v48 = vmul.f32 0.35355338, %v1023_v62 }
 0x3c0   : > { %v1050_v53 = vsel %vm564_vm4, %v2370_v48, -inf }
 0x3c3   : > { %v1028_v6 = vpop.f32.mrb[28].mxu1 }
 0x3c4   : > { %578 = vmax.xlane.f32.xlu1 %v577_v7  ;;  %v1865_v8 = vpop.f32.mrb[29].mxu1  ;;  %v2348_v18 = vmul.f32 0.35355338, %v1028_v6  ;;  %v2394_v6 = vpop.permute.xlu0 %856 }
 0x3c5   : > { %v1031_v9 = vpop.f32.mrb[30].mxu1 }
 0x3c6   : > { %v1866_v10 = vpop.f32.mrb[31].mxu1  ;;  %v1053_v25 = vsel %vm564_vm4, %v2348_v18, -inf  ;;  %v2376_v51 = vmul.f32 0.35355338, %v1031_v9 }
 0x3c8   : > { %800 = vmax.xlane.f32.xlu1 %v799_v13  ;;  %v1056_v58 = vsel %vm564_vm4, %v2376_v51, -inf }
 0x3cb   : > { %v1036_v15 = vpop.f32.mrb[32].mxu1 }
 0x3cc   : > { %806 = vmax.xlane.f32.xlu1 %v805_v16  ;;  %v1869_v17 = vpop.f32.mrb[33].mxu1  ;;  %v2352_v22 = vmul.f32 0.35355338, %v1036_v15 }
 0x3cd   : > { %v1039_v19 = vpop.f32.mrb[34].mxu1 }
 0x3ce   : > { %v1870_v20 = vpop.f32.mrb[35].mxu1  ;;  %v1059_v34 = vsel %vm564_vm4, %v2352_v22, -inf }
 0x3d0   : > { %1048 = vmax.xlane.f32.xlu1 %v1047_v21 }
 0x3d3   : > { %v1271_v24 = vpop.f32.mrb[36].mxu1 }
 0x3d4   : > { %1054 = vmax.xlane.f32.xlu1 %v1053_v25  ;;  %v1897_v27 = vpop.f32.mrb[37].mxu1  ;;  %v2380_v57 = vmul.f32 0.35355338, %v1271_v24 }
 0x3d5   : > { %v1274_v28 = vpop.f32.mrb[38].mxu1 }
 0x3d6   : > { %v1898_v30 = vpop.f32.mrb[39].mxu1  ;;  %v2358_v33 = vmul.f32 0.35355338, %v1274_v28  ;;  %v1298_v60 = vsel %vm564_vm4, %v2380_v57, -inf }
 0x3d8   : > { %1060 = vmax.xlane.f32.xlu1 %v1059_v34  ;;  %v1301_v41 = vsel %vm564_vm4, %v2358_v33, -inf }
 0x3db   : > { %v1279_v38 = vpop.f32.mrb[40].mxu1 }
 0x3dc   : > { %803 = vmax.xlane.f32.xlu0 %v802_v40  ;;  %1302 = vmax.xlane.f32.xlu1 %v1301_v41  ;;  %v1901_v43 = vpop.f32.mrb[41].mxu1  ;;  %v2384_v59 = vmul.f32 0.35355338, %v1279_v38 }
 0x3dd   : > { %v1282_v44 = vpop.f32.mrb[42].mxu1 }
 0x3de   : > { %v2368_v45 = vmul.f32 0.35355338, %v1282_v44  ;;  %v1902_v46 = vpop.f32.mrb[43].mxu1  ;;  %v1304_v62 = vsel %vm564_vm4, %v2384_v59, -inf }
 0x3e0   : > { %809 = vmax.xlane.f32.xlu0 %v808_v49  ;;  %v1307_v50 = vsel %vm564_vm4, %v2368_v45, -inf }
 0x3e1   : > { %1308 = vmax.xlane.f32.xlu1 %v1307_v50 }
 0x3e3   : > { %v1287_v52 = vpop.f32.mrb[44].mxu1 }
 0x3e4   : > { %1051 = vmax.xlane.f32.xlu0 %v1050_v53  ;;  %v1905_v54 = vpop.f32.mrb[45].mxu1  ;;  %v2388_v61 = vmul.f32 0.35355338, %v1287_v52 }
 0x3e5   : > { %v1290_v55 = vpop.f32.mrb[46].mxu1 }
 0x3e6   : > { %v1906_v56 = vpop.f32.mrb[47].mxu1  ;;  %v1310_v63 = vsel %vm564_vm4, %v2388_v61, -inf }
 0x3e8   : > { %1057 = vmax.xlane.f32.xlu0 %v1056_v58 }
 0x3ec   : > { %1299 = vmax.xlane.f32.xlu0 %v1298_v60 }
 0x3f0   : > { %1305 = vmax.xlane.f32.xlu0 %v1304_v62 }
 0x3f4   : > { %1311 = vmax.xlane.f32.xlu0 %v1310_v63 }
 0x41c   : > { %v567_v7 = vpop.xlane.xlu1 %566 }
 0x41d   : > { %v580_v8 = vsub.f32 %v2310_v23, %v567_v7 }
 0x41e   : > { %v570_v9 = vpop.xlane.xlu0 %569 }
 0x41f   : > { %v585_v10 = vmul.f32 1.442695, %v580_v8  ;;  %v581_v13 = vsub.f32 %v2312_v26, %v570_v9 }
 0x421   : > { %1984 = vpow2.f32 %v585_v10  ;;  %v587_v15 = vmul.f32 1.442695, %v581_v13 }
 0x423   : > { %1986 = vpow2.f32 %v587_v15 }
 0x424   : > { %v573_v16 = vpop.xlane.xlu0 %572 }
 0x425   : > { %v582_v28 = vsub.f32 %v2318_v32, %v573_v16 }
 0x427   : > { %v589_v34 = vmul.f32 1.442695, %v582_v28 }
 0x428   : > { %v576_v17 = vpop.xlane.xlu0 %575 }
 0x429   : > { %v583_v19 = vsub.f32 %v2320_v35, %v576_v17  ;;  %v2413_v35 = vpop.permute.xlu1 %854 }
 0x42b   : > { %v2399_v20 = vpop.eup %1984  ;;  %v591_v21 = vmul.f32 1.442695, %v583_v19 }
 0x42c   : > { %v595_v24 = vsel %vm564_vm4, %v2399_v20, 0.0 }
 0x42d   : > { %v2403_v25 = vpop.eup %1986  ;;  %1988 = vpow2.f32 %v591_v21  ;;  %596 = vadd.xlane.f32.xlu0 %v595_v24 }
 0x42e   : > { %v598_v23 = vsel %vm564_vm4, %v2403_v25, 0.0  ;;  %1990 = vpow2.f32 %v589_v34 }
 0x42f   : > { %599 = vadd.xlane.f32.xlu1 %v598_v23 }
 0x434   : > { %v798_v40 = vpop.xlane.xlu0 %797 }
 0x435   : > { %v811_v44 = vsub.f32 %v2328_v47, %v798_v40 }
 0x437   : > { %v2407_v26 = vpop.eup %1988  ;;  %v816_v50 = vmul.f32 1.442695, %v811_v44 }
 0x438   : > { %v604_v27 = vsel %vm564_vm4, %v2407_v26, 0.0  ;;  %v2419_v52 = vpop.eup %1990  ;;  %v2427_v54 = vpop.permute.xlu0 %858 }
 0x439   : > { %605 = vadd.xlane.f32.xlu0 %v604_v27 }
 0x440   : > { %1105 = vrot.lane.b32.xlu1 %v2211_v29, %s2083_s29 }
 0x451   : > { %v579_v30 = vpop.xlane.xlu1 %578 }
 0x452   : > { %v584_v38 = vsub.f32 %v2334_v0, %v579_v30  ;;  %v601_v0 = vsel %vm564_vm4, %v2419_v52, 0.0 }
 0x454   : > { %v593_v41 = vmul.f32 1.442695, %v584_v38 }
 0x455   : > { %v801_v43 = vpop.xlane.xlu1 %800 }
 0x456   : > { %v812_v46 = vsub.f32 %v2336_v1, %v801_v43  ;;  %1992 = vpow2.f32 %v593_v41 }
 0x458   : > { %v818_v49 = vmul.f32 1.442695, %v812_v46 }
 0x459   : > { %v807_v1 = vpop.xlane.xlu1 %806 }
 0x45a   : > { %1994 = vpow2.f32 %v818_v49  ;;  %v814_v58 = vsub.f32 %v2340_v12, %v807_v1 }
 0x45b   : > { %1996 = vpow2.f32 %v816_v50 }
 0x45c   : > { %v822_v9 = vmul.f32 1.442695, %v814_v58 }
 0x45d   : > { %v1049_v7 = vpop.xlane.xlu1 %1048 }
 0x460   : > { %v2421_v32 = vpop.eup %1992 }
 0x461   : > { %v607_v55 = vsel %vm564_vm4, %v2421_v32, 0.0  ;;  %v1055_v17 = vpop.xlane.xlu1 %1054 }
 0x462   : > { %v1064_v19 = vsub.f32 %v2348_v18, %v1055_v17 }
 0x464   : > { %v2425_v53 = vpop.eup %1994  ;;  %602 = vadd.xlane.f32.xlu1 %v601_v0  ;;  %v1071_v27 = vmul.f32 1.442695, %v1064_v19 }
 0x465   : > { %v829_v47 = vsel %vm564_vm4, %v2425_v53, 0.0  ;;  %v2433_v56 = vpop.eup %1996  ;;  %v1061_v24 = vpop.xlane.xlu1 %1060 }
 0x466   : > { %830 = vadd.xlane.f32.xlu0 %v829_v47  ;;  %v826_v63 = vsel %vm564_vm4, %v2433_v56, 0.0  ;;  %v1066_v18 = vsub.f32 %v2352_v22, %v1061_v24  ;;  %v1062_v22 = vsub.f32 %v2344_v14, %v1049_v7 }
 0x468   : > { %608 = vadd.xlane.f32.xlu1 %v607_v55 }
 0x469   : > { %v804_v60 = vpop.xlane.xlu0 %803  ;;  %v1303_v38 = vpop.xlane.xlu1 %1302 }
 0x46a   : > { %v813_v62 = vsub.f32 %v2356_v31, %v804_v60  ;;  %v1314_v43 = vsub.f32 %v2358_v33, %v1303_v38  ;;  %v1067_v33 = vmul.f32 1.442695, %v1062_v22 }
 0x46c   : > { %v820_v8 = vmul.f32 1.442695, %v813_v62  ;;  %827 = vadd.xlane.f32.xlu1 %v826_v63  ;;  %v1320_v50 = vmul.f32 1.442695, %v1314_v43 }
 0x46d   : > { %v810_v10 = vpop.xlane.xlu0 %809 }
 0x46e   : > { %v815_v13 = vsub.f32 %v2362_v37, %v810_v10  ;;  %1998 = vpow2.f32 %v820_v8  ;;  %v1309_v0 = vpop.xlane.xlu1 %1308 }
 0x46f   : > { %2000 = vpow2.f32 %v822_v9  ;;  %v1316_v58 = vsub.f32 %v2368_v45, %v1309_v0 }
 0x470   : > { %v824_v15 = vmul.f32 1.442695, %v815_v13 }
 0x471   : > { %v1052_v16 = vpop.xlane.xlu0 %1051 }
 0x472   : > { %v1063_v12 = vsub.f32 %v2370_v48, %v1052_v16  ;;  %2002 = vpow2.f32 %v824_v15 }
 0x474   : > { %v1069_v31 = vmul.f32 1.442695, %v1063_v12 }
 0x475   : > { %v1058_v21 = vpop.xlane.xlu0 %1057 }
 0x476   : > { %2004 = vpow2.f32 %v1069_v31  ;;  %v1065_v28 = vsub.f32 %v2376_v51, %v1058_v21  ;;  %v1075_v51 = vmul.f32 1.442695, %v1066_v18 }
 0x477   : > { %2006 = vpow2.f32 %v1071_v27 }
 0x478   : > { %v2442_v23 = vpop.eup %1998  ;;  %v1073_v48 = vmul.f32 1.442695, %v1065_v28 }
 0x479   : > { %v832_v37 = vsel %vm564_vm4, %v2442_v23, 0.0  ;;  %v2447_v30 = vpop.eup %2000  ;;  %v1300_v34 = vpop.xlane.xlu0 %1299 }
 0x47a   : > { %833 = vadd.xlane.f32.xlu1 %v832_v37  ;;  %v835_v40 = vsel %vm564_vm4, %v2447_v30, 0.0  ;;  %2008 = vpow2.f32 %v1073_v48  ;;  %v1313_v60 = vsub.f32 %v2380_v57, %v1300_v34 }
 0x47b   : > { %2010 = vpow2.f32 %v1075_v51 }
 0x47c   : > { %1107 = vrot.lane.b32.xlu0 %v2214_v36, %s2083_s29  ;;  %v2454_v41 = vpop.eup %2002  ;;  %2012 = vpow2.f32 %v1320_v50  ;;  %v1318_v7 = vmul.f32 1.442695, %v1313_v60 }
 0x47d   : > { %v1306_v44 = vpop.xlane.xlu0 %1305  ;;  %v838_v46 = vsel %vm564_vm4, %v2454_v41, 0.0  ;;  %2014 = vpow2.f32 %v1067_v33 }
 0x47e   : > { %836 = vadd.xlane.f32.xlu1 %v835_v40  ;;  %v1315_v47 = vsub.f32 %v2384_v59, %v1306_v44  ;;  %v1324_v59 = vmul.f32 1.442695, %v1316_v58 }
 0x480   : > { %v2459_v49 = vpop.eup %2004  ;;  %v1322_v62 = vmul.f32 1.442695, %v1315_v47 }
 0x481   : > { %v1080_v1 = vsel %vm564_vm4, %v2459_v49, 0.0  ;;  %v2465_v55 = vpop.eup %2006  ;;  %v1312_v24 = vpop.xlane.xlu0 %1311 }
 0x482   : > { %839 = vadd.xlane.f32.xlu1 %v838_v46  ;;  %v1083_v14 = vsel %vm564_vm4, %v2465_v55, 0.0  ;;  %2016 = vpow2.f32 %v1322_v62  ;;  %v1317_v37 = vsub.f32 %v2388_v61, %v1312_v24 }
 0x483   : > { %2018 = vpow2.f32 %v1324_v59 }
 0x484   : > { %v2471_v63 = vpop.eup %2008  ;;  %2020 = vpow2.f32 %v1318_v7  ;;  %v1326_v34 = vmul.f32 1.442695, %v1317_v37 }
 0x485   : > { %v1086_v8 = vsel %vm564_vm4, %v2471_v63, 0.0  ;;  %v2475_v9 = vpop.eup %2010 }
 0x486   : > { %1081 = vadd.xlane.f32.xlu1 %v1080_v1  ;;  %v1089_v45 = vsel %vm564_vm4, %v2475_v9, 0.0  ;;  %v2479_v57 = vpop.eup %2012 }
 0x487   : > { %v2481_v10 = vpop.eup %2014  ;;  %v1331_v13 = vsel %vm564_vm4, %v2479_v57, 0.0 }
 0x488   : > { %v1077_v12 = vsel %vm564_vm4, %v2481_v10, 0.0 }
 0x48a   : > { %1084 = vadd.xlane.f32.xlu1 %v1083_v14 }
 0x48c   : > { %v2485_v15 = vpop.eup %2016 }
 0x48d   : > { %v2487_v16 = vpop.eup %2018  ;;  %v1334_v17 = vsel %vm564_vm4, %v2485_v15, 0.0 }
 0x48e   : > { %1087 = vadd.xlane.f32.xlu1 %v1086_v8  ;;  %v2493_v19 = vpop.eup %2020  ;;  %v1337_v31 = vsel %vm564_vm4, %v2487_v16, 0.0 }
 0x48f   : > { %v1328_v21 = vsel %vm564_vm4, %v2493_v19, 0.0 }
 0x492   : > { %1090 = vadd.xlane.f32.xlu1 %v1089_v45 }
 0x496   : > { %1332 = vadd.xlane.f32.xlu1 %v1331_v13 }
 0x49a   : > { %1335 = vadd.xlane.f32.xlu1 %v1334_v17 }
 0x49b   : > { %1078 = vadd.xlane.f32.xlu0 %v1077_v12 }
 0x49e   : > { %1338 = vadd.xlane.f32.xlu1 %v1337_v31 }
 0x49f   : > { %1329 = vadd.xlane.f32.xlu0 %v1328_v21 }
 0x4af   : > { %1356 = vrot.lane.b32.xlu1 %v2211_v29, %s2084_s30 }
 0x4b3   : > { %1358 = vrot.lane.b32.xlu1 %v2214_v36, %s2084_s30 }
 0x4b5   : > { %1109 = vrot.lane.b32.xlu0 %v2218_v42, %s2083_s29 }
 0x4b7   : > { %1360 = vrot.lane.b32.xlu1 %v2218_v42, %s2084_s30 }
 0x4ba   : > { %v597_v27 = vpop.xlane.xlu0 %596 }
 0x4bb   : > { %2022 = vrcp.f32 %v597_v27 }
 0x4bc   : > { %v600_v28 = vpop.xlane.xlu1 %599 }
 0x4bd   : > { %2024 = vrcp.f32 %v600_v28 }
 0x4be   : > { %2026 = vpow2.f32 %v1326_v34 }
 0x4c5   : > { %v2023_v18 = vpop.eup %2022 }
 0x4c6   : > { %v615_v29 = vmul.f32 %v2023_v18, %v2399_v20  ;;  %v872_v20 = vsel %vm640_vm3, %v2427_v54, 0 }
 0x4c7   : > { %v2025_v48 = vpop.eup %2024 }
 0x4c8   : > { %v616_v36 = vmul.f32 %v2025_v48, %v2403_v25  ;;  %v2512_v42 = vpop.eup %2026  ;;  %v1106_v25 = vpop.permute.xlu1 %1105 }
 0x4c9   : > { %v1340_v61 = vsel %vm564_vm4, %v2512_v42, 0.0 }
 0x4ca   : > { %v620_v38 = vpack.c.bf16 %v616_v36, %v615_v29 }
 0x4cc   : > { %1806 = vmatmul.mubr.msk.bf16.vlgmr.msra.gmra.mrb[12].mxu0 %vm564_vm4, %v620_v38 }
 0x4cd   : > { %1836 = vmatpush3.bf16.msra.mxu0 %v2413_v35  ;;  %1809 = vmatprep.mubr.msk.bf16.mxu0 %vm2073_vm1, %v2072_v39  ;;  %v606_v35 = vpop.xlane.xlu0 %605 }
 0x4ce   : > { %1837 = vmatprep.subr.bf16.mxu0 %v2072_v39  ;;  %2028 = vrcp.f32 %v606_v35 }
 0x4d1   : > { %1838 = vmatpush3.bf16.msra.mxu0 %v2394_v6 }
 0x4d2   : > { %1839 = vmatprep.subr.bf16.mxu0 %v2072_v39 }
 0x4d4   : > { %1341 = vadd.xlane.f32.xlu0 %v1340_v61 }
 0x4d5   : > { %1840 = vmatpush3.bf16.msra.mxu0 %v872_v20 }
 0x4d6   : > { %1871 = vmatprep.subr.bf16.mxu0 %v2072_v39 }
 0x4d8   : > { %v2029_v6 = vpop.eup %2028 }
 0x4d9   : > { %v618_v50 = vmul.f32 %v2029_v6, %v2407_v26 }
 0x4f1   : > { %v603_v40 = vpop.xlane.xlu1 %602 }
 0x4f2   : > { %2030 = vrcp.f32 %v603_v40 }
 0x4f3   : > { %v831_v46 = vpop.xlane.xlu0 %830 }
 0x4f5   : > { %v609_v51 = vpop.xlane.xlu1 %608 }
 0x4f6   : > { %2032 = vrcp.f32 %v609_v51 }
 0x4f7   : > { %v1108_v8 = vpop.permute.xlu0 %1107 }
 0x4f9   : > { %v828_v43 = vpop.xlane.xlu1 %827 }
 0x4fa   : > { %2034 = vrcp.f32 %v828_v43 }
 0x4fb   : > { %2036 = vrcp.f32 %v831_v46 }
 0x4fc   : > { %v2031_v44 = vpop.eup %2030 }
 0x4fd   : > { %v617_v22 = vmul.f32 %v2031_v44, %v2419_v52 }
 0x4ff   : > { %v621_v54 = vpack.c.bf16 %v618_v50, %v617_v22 }
 0x500   : > { %v2033_v0 = vpop.eup %2032 }
 0x501   : > { %1810 = vmatmul.mubr.msk.bf16.gmra.mrb[16].mxu0 %vm564_vm4, %v621_v54  ;;  %v619_v47 = vmul.f32 %v2033_v0, %v2421_v32 }
 0x502   : > { %1813 = vmatprep.mubr.msk.bf16.mxu0 %vm2073_vm1, %v2072_v39 }
 0x503   : > { %v622_v1 = vpack.c.bf16 %v619_v47, %v619_v47 }
 0x504   : > { %v2035_v33 = vpop.eup %2034 }
 0x505   : > { %v2037_v60 = vpop.eup %2036  ;;  %v846_v26 = vmul.f32 %v2035_v33, %v2433_v56 }
 0x506   : > { %v847_v62 = vmul.f32 %v2037_v60, %v2425_v53 }
 0x507   : > { %v834_v58 = vpop.xlane.xlu1 %833 }
 0x508   : > { %2038 = vrcp.f32 %v834_v58  ;;  %v851_v14 = vpack.c.bf16 %v847_v62, %v846_v26 }
 0x509   : > { %1814 = vmatmul.mubr.msk.bf16.gmra.mrb[20].mxu0 %vm564_vm4, %v622_v1 }
 0x50a   : > { %1841 = vmatprep.mubr.msk.bf16.mxu0 %vm2073_vm1, %v2072_v39 }
 0x50b   : > { %v837_v52 = vpop.xlane.xlu1 %836 }
 0x50c   : > { %2040 = vrcp.f32 %v837_v52 }
 0x50f   : > { %v840_v59 = vpop.xlane.xlu1 %839 }
 0x510   : > { %2042 = vrcp.f32 %v840_v59 }
 0x511   : > { %1842 = vmatmul.mubr.msk.bf16.vlgmr.msra.gmra.mrb[24].mxu0 %vm564_vm4, %v851_v14 }
 0x512   : > { %1872 = vmatpush3.bf16.msra.mxu0 %v1106_v25  ;;  %1845 = vmatprep.mubr.msk.bf16.mxu0 %vm2073_vm1, %v2072_v39  ;;  %v2039_v7 = vpop.eup %2038 }
 0x513   : > { %1873 = vmatprep.subr.bf16.mxu0 %v2072_v39  ;;  %v1082_v32 = vpop.xlane.xlu1 %1081  ;;  %v848_v45 = vmul.f32 %v2039_v7, %v2442_v23 }
 0x514   : > { %2044 = vrcp.f32 %v1082_v32 }
 0x516   : > { %1874 = vmatpush3.bf16.msra.mxu0 %v1108_v8  ;;  %v2041_v56 = vpop.eup %2040 }
 0x517   : > { %1875 = vmatprep.subr.bf16.mxu0 %v2072_v39  ;;  %v1085_v53 = vpop.xlane.xlu1 %1084  ;;  %v849_v13 = vmul.f32 %v2041_v56, %v2447_v30 }
 0x519   : > { %v852_v17 = vpack.c.bf16 %v849_v13, %v848_v45 }
 0x51a   : > { %v2043_v12 = vpop.eup %2042 }
 0x51b   : > { %v1088_v31 = vpop.xlane.xlu1 %1087  ;;  %1846 = vmatmul.mubr.msk.bf16.gmra.mrb[28].mxu0 %vm564_vm4, %v852_v17  ;;  %v850_v21 = vmul.f32 %v2043_v12, %v2454_v41 }
 0x51c   : > { %1849 = vmatprep.mubr.msk.bf16.mxu0 %vm2073_vm1, %v2072_v39 }
 0x51d   : > { %v853_v27 = vpack.c.bf16 %v850_v21, %v850_v21 }
 0x51e   : > { %v2045_v41 = vpop.eup %2044 }
 0x51f   : > { %v1091_v24 = vpop.xlane.xlu1 %1090  ;;  %v1098_v38 = vmul.f32 %v2045_v41, %v2459_v49 }
 0x523   : > { %v1333_v28 = vpop.xlane.xlu1 %1332  ;;  %1850 = vmatmul.mubr.msk.bf16.gmra.mrb[32].mxu0 %vm564_vm4, %v853_v27 }
 0x524   : > { %1877 = vmatprep.mubr.msk.bf16.mxu0 %vm2073_vm1, %v2072_v39 }
 0x527   : > { %v1336_v23 = vpop.xlane.xlu1 %1335 }
 0x528   : > { %v1079_v30 = vpop.xlane.xlu0 %1078 }
 0x529   : > { %2046 = vrcp.f32 %v1079_v30 }
 0x52a   : > { %2048 = vrcp.f32 %v1088_v31 }
 0x52b   : > { %v1339_v37 = vpop.xlane.xlu1 %1338  ;;  %2050 = vrcp.f32 %v1085_v53 }
 0x52c   : > { %v1330_v34 = vpop.xlane.xlu0 %1329  ;;  %2052 = vrcp.f32 %v1091_v24 }
 0x52d   : > { %2054 = vrcp.f32 %v1330_v34 }
 0x52e   : > { %2056 = vrcp.f32 %v1333_v28 }
 0x52f   : > { %v1357_v29 = vpop.permute.xlu1 %1356  ;;  %2058 = vrcp.f32 %v1339_v37 }
 0x530   : > { %v1110_v18 = vpop.permute.xlu0 %1109  ;;  %2060 = vrcp.f32 %v1336_v23 }
 0x531   : > { %v1123_v48 = vsel %vm640_vm3, %v1110_v18, 0 }
 0x532   : > { %1876 = vmatpush3.bf16.msra.mxu0 %v1123_v48 }
 0x533   : > { %1907 = vmatprep.subr.bf16.mxu0 %v2072_v39  ;;  %v2047_v36 = vpop.eup %2046  ;;  %v1359_v35 = vpop.permute.xlu1 %1358 }
 0x534   : > { %v1097_v61 = vmul.f32 %v2047_v36, %v2481_v10  ;;  %v2049_v25 = vpop.eup %2048 }
 0x535   : > { %v2051_v40 = vpop.eup %2050  ;;  %v1100_v51 = vmul.f32 %v2049_v25, %v2471_v63 }
 0x536   : > { %v1102_v20 = vpack.c.bf16 %v1098_v38, %v1097_v61  ;;  %v1099_v6 = vmul.f32 %v2051_v40, %v2465_v55  ;;  %v2053_v43 = vpop.eup %2052 }
 0x537   : > { %v1361_v49 = vpop.permute.xlu1 %1360  ;;  %v1101_v63 = vmul.f32 %v2053_v43, %v2475_v9  ;;  %v2055_v46 = vpop.eup %2054 }
 0x538   : > { %1878 = vmatmul.mubr.msk.bf16.vlgmr.msra.gmra.mrb[36].mxu0 %vm564_vm4, %v1102_v20  ;;  %v1103_v10 = vpack.c.bf16 %v1100_v51, %v1099_v6  ;;  %v1374_v44 = vsel %vm640_vm3, %v1361_v49, 0  ;;  %v2057_v22 = vpop.eup %2056  ;;  %v1348_v50 = vmul.f32 %v2055_v46, %v2493_v19  ;;  %v1972_v51 = vld [vmem:[%s2639_s5] sm:$0xff]  }
 0x539   : > { %1908 = vmatpush3.bf16.msra.mxu0 %v1357_v29  ;;  %1881 = vmatprep.mubr.msk.bf16.mxu0 %vm2073_vm1, %v2072_v39  ;;  %v1104_v55 = vpack.c.bf16 %v1101_v63, %v1101_v63  ;;  %v1349_v54 = vmul.f32 %v2057_v22, %v2479_v57  ;;  %v2059_v47 = vpop.eup %2058 }
 0x53a   : > { %1909 = vmatprep.subr.bf16.mxu0 %v2072_v39  ;;  %v2061_v9 = vpop.eup %2060  ;;  %v1351_v1 = vmul.f32 %v2059_v47, %v2487_v16  ;;  %1943 = vmatpush3.bf16.msra.mxu1 %v1972_v51 }
 0x53b   : > { %v1353_v0 = vpack.c.bf16 %v1349_v54, %v1348_v50  ;;  %v1350_v33 = vmul.f32 %v2061_v9, %v2485_v15  ;;  %1942 = vmatprep.subr.bf16.mxu1 %v2072_v39 }
 0x53d   : > { %1910 = vmatpush3.bf16.msra.mxu0 %v1359_v35  ;;  %v1354_v58 = vpack.c.bf16 %v1351_v1, %v1350_v33 }
 0x53e   : > { %1911 = vmatprep.subr.bf16.mxu0 %v2072_v39 }
 0x540   : > { %1882 = vmatmul.mubr.msk.bf16.gmra.mrb[40].mxu0 %vm564_vm4, %v1103_v10 }
 0x541   : > { %1912 = vmatpush3.bf16.msra.mxu0 %v1374_v44  ;;  %1885 = vmatprep.mubr.msk.bf16.mxu0 %vm2073_vm1, %v2072_v39  ;;  %v1973_v44 = vld [vmem:[%s2639_s5 + $0x8] sm:$0xff]  }
 0x542   : > { %1925 = vmatprep.subr.bf16.mxu0 %v2072_v39  ;;  %1944 = vmatpush3.bf16.msra.mxu1 %v1973_v44 }
 0x548   : > { %1886 = vmatmul.mubr.msk.bf16.gmra.mrb[44].mxu0 %vm564_vm4, %v1104_v55 }
 0x549   : > { %1913 = vmatprep.mubr.msk.bf16.mxu0 %vm2073_vm1, %v2072_v39 }
 0x550   : > { %1914 = vmatmul.mubr.msk.bf16.vlgmr.msra.gmra.mrb[48].mxu0 %vm564_vm4, %v1353_v0 }
 0x551   : > { %1917 = vmatprep.mubr.msk.bf16.mxu0 %vm2073_vm1, %v2072_v39  ;;  %1926 = vmatpush3.bf16.msra.mxu0 %v1972_v51 }
 0x552   : > { %1927 = vmatprep.subr.bf16.mxu0 %v2072_v39 }
 0x555   : > { %1928 = vmatpush3.bf16.msra.mxu0 %v1973_v44 }
 0x558   : > { %1918 = vmatmul.mubr.msk.bf16.gmra.mrb[52].mxu0 %vm564_vm4, %v1354_v58 }
 0x559   : > { %1921 = vmatprep.mubr.msk.bf16.mxu0 %vm2073_vm1, %v2072_v39 }
 0x561   : > { %v1342_v19 = vpop.xlane.xlu0 %1341 }
 0x562   : > { %2062 = vrcp.f32 %v1342_v19 }
 0x56c   : > { %v2063_v57 = vpop.eup %2062 }
 0x56d   : > { %v1352_v60 = vmul.f32 %v2063_v57, %v2512_v42 }
 0x56f   : > { %v1355_v26 = vpack.c.bf16 %v1352_v60, %v1352_v60 }
 0x571   : > { %1922 = vmatmul.mubr.msk.bf16.gmra.mrb[56].mxu0 %vm564_vm4, %v1355_v26 }
 0x572   : > { %1929 = vmatprep.mubr.msk.bf16.mxu0 %vm2073_vm1, %v2072_v39 }
 0x59f   : > { %v678_v16 = vpop.f32.mrb[12].mxu0 }
 0x5a0   : > { %700 = vst.msk [vmem:[#allocation2] sm:$0xff] %vm484_vm2, %v678_v16  ;;  %v1807_v15 = vpop.f32.mrb[13].mxu0 }
 0x5a1   : > { %v681_v52 = vpop.f32.mrb[14].mxu0 }
 0x5a2   : > { %701 = vst.msk [vmem:[#allocation2 + $0x8] sm:$0xff] %vm484_vm2, %v681_v52  ;;  %v1808_v62 = vpop.f32.mrb[15].mxu0 }
 0x5d4   : > { %v686_v14 = vpop.f32.mrb[16].mxu0 }
 0x5d5   : > { %702 = vst.msk [vmem:[#allocation2 + $0x10] sm:$0xff] %vm484_vm2, %v686_v14  ;;  %v1811_v59 = vpop.f32.mrb[17].mxu0 }
 0x5d6   : > { %v689_v32 = vpop.f32.mrb[18].mxu0 }
 0x5d7   : > { %703 = vst.msk [vmem:[#allocation2 + $0x18] sm:$0xff] %vm484_vm2, %v689_v32  ;;  %v1812_v42 = vpop.f32.mrb[19].mxu0 }
 0x5dc   : > { %v694_v7 = vpop.f32.mrb[20].mxu0 }
 0x5dd   : > { %704 = vst.msk [vmem:[#allocation2 + $0x20] sm:$0xff] %vm484_vm2, %v694_v7  ;;  %v1815_v8 = vpop.f32.mrb[21].mxu0 }
 0x5de   : > { %v697_v56 = vpop.f32.mrb[22].mxu0 }
 0x5df   : > { %v1816_v53 = vpop.f32.mrb[23].mxu0 }
 0x5e4   : > { %v908_v45 = vpop.f32.mrb[24].mxu0 }
 0x5e5   : > { %935 = vrot.lane.b32.xlu1 %v908_v45, %s2085_s8  ;;  %v1843_v13 = vpop.f32.mrb[25].mxu0 }
 0x5e6   : > { %v911_v17 = vpop.f32.mrb[26].mxu0 }
 0x5e7   : > { %v1844_v12 = vpop.f32.mrb[27].mxu0 }
 0x5e8   : > { %v1680_v12 = vld [vmem:[%s2640_s6] ss:$0 sm:$0xff] }
 0x5e9   : > { %937 = vrot.lane.b32.xlu1 %v911_v17, %s2085_s8 }
 0x5ee   : > { %v916_v31 = vpop.f32.mrb[28].mxu0 }
 0x5ef   : > { %939 = vrot.lane.b32.xlu1 %v916_v31, %s2085_s8  ;;  %v1847_v21 = vpop.f32.mrb[29].mxu0 }
 0x5f0   : > { %v919_v24 = vpop.f32.mrb[30].mxu0 }
 0x5f1   : > { %941 = vrot.lane.b32.xlu0 %v919_v24, %s2085_s8  ;;  %v1848_v27 = vpop.f32.mrb[31].mxu0 }
 0x5f6   : > { %v924_v28 = vpop.f32.mrb[32].mxu0 }
 0x5f7   : > { %943 = vrot.lane.b32.xlu0 %v924_v28, %s2085_s8  ;;  %v1851_v23 = vpop.f32.mrb[33].mxu0 }
 0x5f8   : > { %v927_v30 = vpop.f32.mrb[34].mxu0 }
 0x5f9   : > { %v1852_v37 = vpop.f32.mrb[35].mxu0 }
 0x60b   : > { %v1159_v34 = vpop.f32.mrb[36].mxu0 }
 0x60c   : > { %1186 = vrot.lane.b32.xlu0 %v1159_v34, %s2086_s9  ;;  %v1879_v18 = vpop.f32.mrb[37].mxu0 }
 0x60d   : > { %v1162_v48 = vpop.f32.mrb[38].mxu0 }
 0x60e   : > { %1188 = vrot.lane.b32.xlu1 %v1162_v48, %s2086_s9  ;;  %v1880_v41 = vpop.f32.mrb[39].mxu0 }
 0x613   : > { %v1167_v29 = vpop.f32.mrb[40].mxu0 }
 0x614   : > { %1190 = vrot.lane.b32.xlu1 %v1167_v29, %s2086_s9  ;;  %v1883_v36 = vpop.f32.mrb[41].mxu0 }
 0x615   : > { %v1170_v38 = vpop.f32.mrb[42].mxu0 }
 0x616   : > { %v1884_v61 = vpop.f32.mrb[43].mxu0 }
 0x618   : > { %1192 = vrot.lane.b32.xlu1 %v1170_v38, %s2086_s9 }
 0x61b   : > { %v1175_v20 = vpop.f32.mrb[44].mxu0 }
 0x61c   : > { %v1887_v25 = vpop.f32.mrb[45].mxu0 }
 0x61d   : > { %v1178_v35 = vpop.f32.mrb[46].mxu0 }
 0x61e   : > { %v1888_v40 = vpop.f32.mrb[47].mxu0 }
 0x623   : > { %v1410_v6 = vpop.f32.mrb[48].mxu0 }
 0x624   : > { %v1915_v49 = vpop.f32.mrb[49].mxu0 }
 0x625   : > { %v1413_v10 = vpop.f32.mrb[50].mxu0 }
 0x626   : > { %1439 = vrot.lane.b32.xlu0 %v1413_v10, %s2087_s12  ;;  %v1916_v43 = vpop.f32.mrb[51].mxu0 }
 0x62b   : > { %v1418_v63 = vpop.f32.mrb[52].mxu0 }
 0x62c   : > { %1441 = vrot.lane.b32.xlu1 %v1418_v63, %s2087_s12  ;;  %v1919_v55 = vpop.f32.mrb[53].mxu0 }
 0x62d   : > { %v1421_v46 = vpop.f32.mrb[54].mxu0 }
 0x62e   : > { %v1920_v22 = vpop.f32.mrb[55].mxu0 }
 0x630   : > { %1443 = vrot.lane.b32.xlu1 %v1421_v46, %s2087_s12 }
 0x634   : > { %1437 = vrot.lane.b32.xlu1 %v1410_v6, %s2087_s12 }
 0x638   : > { %1194 = vrot.lane.b32.xlu1 %v1175_v20, %s2086_s9 }
 0x644   : > { %v1426_v50 = vpop.f32.mrb[56].mxu0 }
 0x645   : > { %1445 = vrot.lane.b32.xlu0 %v1426_v50, %s2087_s12  ;;  %v1923_v54 = vpop.f32.mrb[57].mxu0 }
 0x646   : > { %v1429_v0 = vpop.f32.mrb[58].mxu0 }
 0x647   : > { %v1924_v47 = vpop.f32.mrb[59].mxu0 }
 0x657   : > { %v936_v9 = vpop.permute.xlu1 %935 }
 0x658   : > { %951 = vst.msk [vmem:[#allocation2] sm:$0xff] %vm950_vm5, %v936_v9 }
 0x65b   : > { %v938_v1 = vpop.permute.xlu1 %937 }
 0x65c   : > { %952 = vst.msk [vmem:[#allocation2 + $0x8] sm:$0xff] %vm950_vm5, %v938_v1 }
 0x661   : > { %v940_v33 = vpop.permute.xlu1 %939 }
 0x662   : > { %953 = vst.msk [vmem:[#allocation2 + $0x10] sm:$0xff] %vm950_vm5, %v940_v33 }
 0x663   : > { %v942_v58 = vpop.permute.xlu0 %941 }
 0x664   : > { %954 = vst.msk [vmem:[#allocation2 + $0x18] sm:$0xff] %vm950_vm5, %v942_v58 }
 0x669   : > { %v944_v19 = vpop.permute.xlu0 %943 }
 0x66a   : > { %955 = vst.msk [vmem:[#allocation2 + $0x20] sm:$0xff] %vm950_vm5, %v944_v19 }
 0x67e   : > { %v1187_v57 = vpop.permute.xlu0 %1186 }
 0x67f   : > { %1202 = vst.msk [vmem:[#allocation2] sm:$0xff] %vm1201_vm6, %v1187_v57 }
 0x680   : > { %v1189_v60 = vpop.permute.xlu1 %1188 }
 0x681   : > { %1203 = vst.msk [vmem:[#allocation2 + $0x8] sm:$0xff] %vm1201_vm6, %v1189_v60 }
 0x686   : > { %v1191_v26 = vpop.permute.xlu1 %1190 }
 0x687   : > { %1204 = vst.msk [vmem:[#allocation2 + $0x10] sm:$0xff] %vm1201_vm6, %v1191_v26 }
 0x68a   : > { %v1193_v16 = vpop.permute.xlu1 %1192 }
 0x68b   : > { %1205 = vst.msk [vmem:[#allocation2 + $0x18] sm:$0xff] %vm1201_vm6, %v1193_v16 }
 0x698   : > { %v1440_v15 = vpop.permute.xlu0 %1439 }
 0x699   : > { %1454 = vst.msk [vmem:[#allocation2 + $0x8] sm:$0xff] %vm1452_vm7, %v1440_v15 }
 0x69e   : > { %v1442_v52 = vpop.permute.xlu1 %1441 }
 0x69f   : > { %1455 = vst.msk [vmem:[#allocation2 + $0x10] sm:$0xff] %vm1452_vm7, %v1442_v52 }
 0x6a0   : > { %v1459_v56 = vld [vmem:[#allocation2 + $0x8] sm:$0xff] }
 0x6a2   : > { %v1444_v62 = vpop.permute.xlu1 %1443 }
 0x6a3   : > { %1456 = vst.msk [vmem:[#allocation2 + $0x18] sm:$0xff] %vm1452_vm7, %v1444_v62 }
 0x6a6   : > { %v1438_v14 = vpop.permute.xlu1 %1437  ;;  %v1460_v32 = vld [vmem:[#allocation2 + $0x10] sm:$0xff] }
 0x6a7   : > { %1453 = vst.msk [vmem:[#allocation2] sm:$0xff] %vm1452_vm7, %v1438_v14 }
 0x6aa   : > { %v1195_v59 = vpop.permute.xlu1 %1194  ;;  %v1461_v42 = vld [vmem:[#allocation2 + $0x18] sm:$0xff] }
 0x6ab   : > { %1206 = vst.msk [vmem:[#allocation2 + $0x20] sm:$0xff] %vm1201_vm6, %v1195_v59  ;;  %v1464_v7 = vpack.c.bf16 %v1461_v42, %v1460_v32 }
 0x6ad   : > { %1934 = vmatmul.mubr.msk.bf16.vlgmr.msra.gmra.mrb[48].mxu1 %vm292_vm0, %v1464_v7 }
 0x6ae   : > { %v1458_v8 = vld [vmem:[#allocation2] sm:$0xff]  ;;  %1937 = vmatprep.mubr.msk.bf16.mxu1 %vm2073_vm1, %v2072_v39 }
 0x6af   : > { %v1463_v53 = vpack.c.bf16 %v1459_v56, %v1458_v8 }
 0x6b1   : > { %1930 = vmatmul.mubr.msk.bf16.vlgmr.msra.gmra.mrb[60].mxu0 %vm292_vm0, %v1463_v53 }
 0x6b7   : > { %v1446_v45 = vpop.permute.xlu0 %1445 }
 0x6b8   : > { %1457 = vst.msk [vmem:[#allocation2 + $0x20] sm:$0xff] %vm1452_vm7, %v1446_v45 }
 0x6bf   : > { %v1462_v13 = vld [vmem:[#allocation2 + $0x20] sm:$0xff] }
 0x6c0   : > { %v1465_v17 = vpack.c.bf16 %v1462_v13, %v1462_v13 }
 0x6c2   : > { %1938 = vmatmul.mubr.msk.bf16.gmra.mrb[52].mxu1 %vm292_vm0, %v1465_v17 }
 0x780   : > { %v1540_v31 = vpop.f32.mrb[48].mxu1 }
 0x781   : > { %v1541_v21 = vadd.f32 %v1680_v12, %v1540_v31  ;;  %v1935_v24 = vpop.f32.mrb[49].mxu1 }
 0x782   : > { %v1543_v27 = vpop.f32.mrb[50].mxu1 }
 0x783   : > { %v1556_v39 = vadd.f32 %v2146_v3, %v1541_v21  ;;  %v1544_v28 = vadd.f32 %v1680_v12, %v1543_v27  ;;  %v1936_v23 = vpop.f32.mrb[51].mxu1 }
 0x784   : > { %v1532_v30 = vpop.f32.mrb[60].mxu0 }
 0x785   : > { %v1695_v37 = vpack.c.bf16 %v1556_v39, %v1556_v39  ;;  %v1557_v34 = vadd.f32 %v2150_v5, %v1544_v28  ;;  %v1533_v18 = vadd.f32 %v1680_v12, %v1532_v30  ;;  %v1931_v48 = vpop.f32.mrb[61].mxu0 }
 0x786   : > { %v1535_v41 = vpop.f32.mrb[62].mxu0 }
 0x787   : > { %1583 = vst.msk [vmem:[%s278_s19 + $0x8] sm:$0xf] %vm1580_vm8, %v1695_v37  ;;  %v1696_v29 = vpack.c.bf16 %v1557_v34, %v1557_v34  ;;  %v1554_v3 = vadd.f32 %v2144_v2, %v1533_v18  ;;  %v1536_v36 = vadd.f32 %v1680_v12, %v1535_v41  ;;  %v1932_v38 = vpop.f32.mrb[63].mxu0 }
 0x789   : > { %1584 = vst.msk [vmem:[%s278_s19 + $0xc] sm:$0xf] %vm1580_vm8, %v1696_v29  ;;  %v1693_v61 = vpack.c.bf16 %v1554_v3, %v1554_v3  ;;  %v1555_v20 = vadd.f32 %v2148_v4, %v1536_v36 }
 0x78b   : > { %1581 = vst.msk [vmem:[%s278_s19] sm:$0xf] %vm1580_vm8, %v1693_v61  ;;  %v1694_v25 = vpack.c.bf16 %v1555_v20, %v1555_v20 }
 0x78d   : > { %1582 = vst.msk [vmem:[%s278_s19 + $0x4] sm:$0xf] %vm1580_vm8, %v1694_v25 }
 0x795   : > { %v1548_v5 = vpop.f32.mrb[52].mxu1 }
 0x796   : > { %v1549_v35 = vadd.f32 %v1680_v12, %v1548_v5  ;;  %v1939_v40 = vpop.f32.mrb[53].mxu1 }
 0x797   : > { %v1551_v51 = vpop.f32.mrb[54].mxu1 }
 0x798   : > { %v1558_v6 = vadd.f32 %v1549_v35, %v2160_v11  ;;  %v1940_v49 = vpop.f32.mrb[55].mxu1 }
 0x79a   : > { %v1697_v2 = vpack.c.bf16 %v1558_v6, %v1558_v6 }
 0x79c   : > { %1585 = vst.msk [vmem:[%s278_s19 + $0x10] sm:$0xf] %vm1580_vm8, %v1697_v2 }
 0x79d PF: > { %s17_s24 = sadd.s32 1, %s2070_s24  }
 0x79e   : > { %p14_p4 = scmp.ge.s32.totalorder %s17_s24, 4  }
 0x7a0   :  { %16 = sbr.rel (!%p14_p4) target bundleno = 1 (0x1), region = 78 }

</bundles_post_ra>
